<compile_context>
chip_gen: v5e
topology: v5e:2x2
jax: 0.10.0
libtpu: 0.0.40
codegen_flags: <defaults>
</compile_context>

<pallas_src>
import functools

import jax
import jax.numpy as jnp
import numpy as np
from jax.experimental import pallas as pl
from jax.experimental.pallas import tpu as pltpu


# --------------------------------------------------------------------------- #
# Kernel
# --------------------------------------------------------------------------- #
def topdown_core_kernel(l_chunk,
                        xt_ref, fc_ref, att_ref, patt_ref, h_ref, c_ref,
                        w_att_prevh_ref, w_att_fc_ref, w_att_xt_ref,
                        w_att_hh_ref, b_att_ref,
                        w_lang_att_ref, w_lang_h_ref, w_lang_hh_ref, b_lang_ref,
                        w_h2att_ref, b_h2att_ref, w_alpha_ref, b_alpha_ref,
                        h_out_ref, c_out_ref):
    f32, bf16 = jnp.float32, jnp.bfloat16
    Bt = xt_ref.shape[0]
    R = h_ref.shape[-1]
    L = att_ref.shape[1]
    n_chunks = L // l_chunk        # wrapper guarantees divisibility

    def mm(x_bf16, w_ref):
        # bf16 MXU matmul, f32 accumulation (weights pre-cast to bf16 on host).
        return jnp.dot(x_bf16, w_ref[...], preferred_element_type=f32)

    def lstm_from_gates(gates, c):
        # PyTorch nn.LSTMCell, gate order (i, f, g, o); i/f share one sigmoid
        # over the contiguous lane range [0:2R].  Element-wise math stays f32.
        i_f = jax.nn.sigmoid(gates[:, :2 * R])
        i, f = i_f[:, :R], i_f[:, R:]
        g = jnp.tanh(gates[:, 2 * R:3 * R])
        o = jnp.tanh(gates[:, 3 * R:]) * 0.0 + jax.nn.sigmoid(gates[:, 3 * R:])
        c_new = f * c + i * g
        return o * jnp.tanh(c_new), c_new

    h_att_prev = h_ref[0]          # state[0][0]  (att_lstm hidden)
    h_lang_prev = h_ref[1]         # state[0][1]  (lang_lstm hidden == prev_h)
    c_att_prev = c_ref[0]
    c_lang_prev = c_ref[1]

    # ---- attention LSTM: K-split matmuls replace cat([prev_h, fc, xt], 1) ----
    att_gates = (mm(h_lang_prev.astype(bf16), w_att_prevh_ref)
                 + mm(fc_ref[...].astype(bf16), w_att_fc_ref)
                 + mm(xt_ref[...].astype(bf16), w_att_xt_ref)
                 + mm(h_att_prev.astype(bf16), w_att_hh_ref)
                 + b_att_ref[...])
    h_att, c_att = lstm_from_gates(att_gates, c_att_prev)
    h_att_bf = h_att.astype(bf16)              # hoisted: reused by two matmuls

    # ---- attention scores, L-chunked: never materialize (Bt, L, A) in f32 ----
    att_h = mm(h_att_bf, w_h2att_ref) + b_h2att_ref[...]        # (Bt, A) f32
    att_h_b = att_h[:, None, :]                                  # (Bt, 1, A)
    alpha_row = w_alpha_ref[...]                                 # (1, A), hoisted
    score_chunks = []
    for ci in range(n_chunks):                 # static trip count -> static slices
        off = ci * l_chunk
        patt_c = patt_ref[:, off:off + l_chunk, :].astype(f32)   # (Bt, lc, A)
        dot = jnp.tanh(patt_c + att_h_b)
        score_chunks.append(jnp.sum(dot * alpha_row, axis=-1))   # (Bt, lc)
    scores = jnp.concatenate(score_chunks, axis=-1) + b_alpha_ref[...]   # (Bt, L)

    # ---- softmax over L; the divide goes to the EUP via approx reciprocal ----
    e = jnp.exp(scores - jnp.max(scores, axis=-1, keepdims=True))
    weight = e * pl.reciprocal(jnp.sum(e, axis=-1, keepdims=True), approx=True)
    # TODO(synk): att_masks renormalization branch not implemented (masks=None path only).

    # ---- att_res accumulated chunk-by-chunk: never (Bt, L, R) in f32 ----
    att_res = jnp.zeros((Bt, R), f32)
    for ci in range(n_chunks):
        off = ci * l_chunk
        w_c = weight[:, off:off + l_chunk]                        # (Bt, lc)
        att_c = att_ref[:, off:off + l_chunk, :].astype(f32)      # (Bt, lc, R)
        att_res = att_res + jnp.sum(w_c[:, :, None] * att_c, axis=1)

    # ---- language LSTM: K-split matmuls replace cat([att_res, h_att], 1) ----
    lang_gates = (mm(att_res.astype(bf16), w_lang_att_ref)
                  + mm(h_att_bf, w_lang_h_ref)
                  + mm(h_lang_prev.astype(bf16), w_lang_hh_ref)
                  + b_lang_ref[...])
    h_lang, c_lang = lstm_from_gates(lang_gates, c_lang_prev)

    # F.dropout(training=False) is identity, so the module output == h_lang ==
    # h_out[1].  Stacked state is written directly: each store is a full (Bt, R) slab.
    h_out_ref[0] = h_att
    h_out_ref[1] = h_lang
    c_out_ref[0] = c_att
    c_out_ref[1] = c_lang


# --------------------------------------------------------------------------- #
# Host-side helpers / wrapper
# --------------------------------------------------------------------------- #
def prepare_topdown_params(params):
    """Split & cast weights ONCE at model init (not inside the per-step call).

    Row-splitting the input-to-hidden matrices removes the in-kernel lane-axis
    concatenations; biases are reshaped lane-major (1, N) and kept f32.
    """
    bf16, f32 = jnp.bfloat16, jnp.float32
    R = params['w_att_hh'].shape[0]
    w_att_ih = params['w_att_ih']         # rows: [prev_h (R) | fc (R) | xt (E)]
    w_lang_ih = params['w_lang_ih']       # rows: [att_res (R) | h_att (R)]
    return dict(
        w_att_prevh=w_att_ih[:R].astype(bf16),
        w_att_fc=w_att_ih[R:2 * R].astype(bf16),
        w_att_xt=w_att_ih[2 * R:].astype(bf16),
        w_att_hh=params['w_att_hh'].astype(bf16),
        b_att=params['b_att'].reshape(1, -1).astype(f32),
        w_lang_att=w_lang_ih[:R].astype(bf16),
        w_lang_h=w_lang_ih[R:].astype(bf16),
        w_lang_hh=params['w_lang_hh'].astype(bf16),
        b_lang=params['b_lang'].reshape(1, -1).astype(f32),
        w_h2att=params['w_h2att'].astype(bf16),
        b_h2att=params['b_h2att'].reshape(1, -1).astype(f32),
        w_alpha=params['w_alpha'].reshape(1, -1).astype(f32),
        b_alpha=params['b_alpha'].reshape(1, 1).astype(f32),
    )


def _choose_l_chunk(L, requested):
    """Largest chunk <= requested that divides L (falls back to 1 in the worst case)."""
    c = max(1, min(int(requested), L))
    while L % c:
        c -= 1
    return c


def _vmem_limit_bytes():
    # Raise the scoped-VMEM limit above the 16/32 MiB defaults.  Derived per
    # generation: ~85% of physical (=> ~109 MiB on v5e/v6e @128 MiB, ~54 MiB on
    # v7x @64 MiB).  Falls back to a conservative 64 MiB if the query is unavailable.
    try:
        return int(pltpu.get_tpu_info().vmem_capacity_bytes * 0.85)
    except Exception:
        return 64 * 1024 * 1024


def topdown_core(xt, fc_feats, att_feats, p_att_feats, state, prep,
                 *, b_tile=None, l_chunk=64, single_buffer_weights=True):
    """One TopDownCore step.  att_feats / p_att_feats should already be bf16
    (cast once per image, outside the decode loop); `prep` comes from
    prepare_topdown_params().  state = (h (2,B,R), c (2,B,R))."""
    h_st, c_st = state
    B, R = h_st.shape[1], h_st.shape[2]
    E = xt.shape[1]
    L = att_feats.shape[1]
    A = p_att_feats.shape[2]
    f32 = jnp.float32

    # Batch-tile sizing:
    #  * multiple of 8 (f32 sublanes); >=128 at production so the gate matmuls'
    #    M dimension feeds the 256x256 MXU (v6e/v7x) / 128x128 (v5e).
    #  * >=2 tiles on v7x so both TensorCores get work ("parallel" grid axis).
    #  * upper bound from the VMEM budget: resident bf16 weights (single-buffered)
    #    + 2x double-buffered b_tile*(L*(A+R))*2B att/p_att tiles + small state.
    # TODO(synk): if the full-L bf16 att/p_att tiles still force b_tile < ~128 on
    # v7x (64 MiB VMEM), move them to memory_space=pl.ANY and stream L-chunks with
    # pltpu.emit_pipeline so b_tile is decoupled from L*(A+R).
    if b_tile is None:
        b_tile = B
    grid = (pl.cdiv(B, b_tile),)
    lc = _choose_l_chunk(L, l_chunk)

    weight_names = ('w_att_prevh', 'w_att_fc', 'w_att_xt', 'w_att_hh', 'b_att',
                    'w_lang_att', 'w_lang_h', 'w_lang_hh', 'b_lang',
                    'w_h2att', 'b_h2att', 'w_alpha', 'b_alpha')
    weights = [prep[k] for k in weight_names]

    def resident(arr):
        # Whole-array block, constant index_map -> stays in VMEM across batch tiles.
        idx = lambda i: (0, 0)
        if single_buffer_weights:
            # Never re-fetched, so don't double-buffer (saves ~weight-size of VMEM).
            return pl.BlockSpec(arr.shape, idx, pipeline_mode=pl.Buffered(1))
        return pl.BlockSpec(arr.shape, idx)

    in_specs = [
        pl.BlockSpec((b_tile, E), lambda i: (i, 0)),            # xt
        pl.BlockSpec((b_tile, R), lambda i: (i, 0)),            # fc_feats
        pl.BlockSpec((b_tile, L, R), lambda i: (i, 0, 0)),      # att_feats (bf16)
        pl.BlockSpec((b_tile, L, A), lambda i: (i, 0, 0)),      # p_att_feats (bf16)
        pl.BlockSpec((2, b_tile, R), lambda i: (0, i, 0)),      # h state (stacked)
        pl.BlockSpec((2, b_tile, R), lambda i: (0, i, 0)),      # c state (stacked)
    ] + [resident(w) for w in weights]

    out_specs = (pl.BlockSpec((2, b_tile, R), lambda i: (0, i, 0)),   # h_new
                 pl.BlockSpec((2, b_tile, R), lambda i: (0, i, 0)))   # c_new
    out_shape = (jax.ShapeDtypeStruct((2, B, R), f32),
                 jax.ShapeDtypeStruct((2, B, R), f32))

    h_new, c_new = pl.pallas_call(
        functools.partial(topdown_core_kernel, lc),
        grid=grid,
        in_specs=in_specs,
        out_specs=out_specs,
        out_shape=out_shape,
        compiler_params=pltpu.CompilerParams(
            dimension_semantics=("parallel",),
            vmem_limit_bytes=_vmem_limit_bytes()),
    )(xt, fc_feats, att_feats, p_att_feats, h_st, c_st, *weights)

    # dropout (eval mode) is identity -> module output == h_new[1].
    return h_new[1], (h_new, c_new)


# --------------------------------------------------------------------------- #
# Plain-JAX reference (mirrors the PyTorch forward, att_masks=None, eval mode)
# --------------------------------------------------------------------------- #
def topdown_core_reference(xt, fc_feats, att_feats, p_att_feats, state, params):
    h_st, c_st = state

    def lstm(x, h, c, w_ih, w_hh, b):
        gates = x @ w_ih + h @ w_hh + b
        R = h.shape[-1]
        i = jax.nn.sigmoid(gates[:, :R])
        f = jax.nn.sigmoid(gates[:, R:2 * R])
        g = jnp.tanh(gates[:, 2 * R:3 * R])
        o = jax.nn.sigmoid(gates[:, 3 * R:])
        c_new = f * c + i * g
        return o * jnp.tanh(c_new), c_new

    prev_h = h_st[1]
    att_in = jnp.concatenate([prev_h, fc_feats, xt], 1)
    h_att, c_att = lstm(att_in, h_st[0], c_st[0],
                        params['w_att_ih'], params['w_att_hh'], params['b_att'])
    att_h = h_att @ params['w_h2att'] + params['b_h2att']
    dot = jnp.tanh(p_att_feats + att_h[:, None, :])
    scores = jnp.sum(dot * params['w_alpha'][None, None, :], -1) + params['b_alpha']
    w = jax.nn.softmax(scores, -1)
    att_res = jnp.einsum('bl,blr->br', w, att_feats)
    lang_in = jnp.concatenate([att_res, h_att], 1)
    h_lang, c_lang = lstm(lang_in, h_st[1], c_st[1],
                          params['w_lang_ih'], params['w_lang_hh'], params['b_lang'])
    return h_lang, (jnp.stack([h_att, h_lang]), jnp.stack([c_att, c_lang]))


# --------------------------------------------------------------------------- #
# Demo / self-test
# --------------------------------------------------------------------------- #
if __name__ == "__main__":
    # Small shapes consistent with the module:
    #   batch B=8, input_encoding_size E=32, rnn_size R=32,
    #   att_hid_size A=32, attention locations L=16.
    B, E, R, A, L = 8, 32, 32, 32, 16
    key = jax.random.PRNGKey(0)
    ks = jax.random.split(key, 16)

    def init(k, shape, scale=0.1):
        return (scale * jax.random.normal(k, shape)).astype(jnp.float32)

    xt = init(ks[0], (B, E), 1.0)
    fc_feats = init(ks[1], (B, R), 1.0)
    att_feats = init(ks[2], (B, L, R), 1.0)
    p_att_feats = init(ks[3], (B, L, A), 1.0)
    h_state = init(ks[4], (2, B, R), 1.0)
    c_state = init(ks[5], (2, B, R), 1.0)

    params = dict(
        # att_lstm: LSTMCell(E + 2R -> R); b_att = bias_ih + bias_hh pre-summed.
        w_att_ih=init(ks[6], (E + 2 * R, 4 * R)),
        w_att_hh=init(ks[7], (R, 4 * R)),
        b_att=init(ks[8], (4 * R,)),
        # lang_lstm: LSTMCell(2R -> R)
        w_lang_ih=init(ks[9], (2 * R, 4 * R)),
        w_lang_hh=init(ks[10], (R, 4 * R)),
        b_lang=init(ks[11], (4 * R,)),
        # attention: h2att (R -> A), alpha_net (A -> 1)
        w_h2att=init(ks[12], (R, A)),
        b_h2att=init(ks[13], (A,)),
        w_alpha=init(ks[14], (A,)),
        b_alpha=init(ks[15], (1,)),
    )

    # Done ONCE (model init / per image), not per decode step.
    prep = prepare_topdown_params(params)
    att_feats_q = att_feats.astype(jnp.bfloat16)
    p_att_feats_q = p_att_feats.astype(jnp.bfloat16)

    state = (h_state, c_state)
    # l_chunk=8 exercises the chunked attention loop (2 chunks) at the demo L=16.
    run = functools.partial(topdown_core, xt, fc_feats, att_feats_q, p_att_feats_q,
                            state, prep, l_chunk=8)
    try:
        out, (h_new, c_new) = run(single_buffer_weights=True)
        jax.block_until_ready((out, h_new, c_new))
    except Exception:
        # Fallback for JAX versions without BlockSpec(pipeline_mode=pl.Buffered(1)):
        # keep default (double) buffering for the resident weights.
        out, (h_new, c_new) = run(single_buffer_weights=False)
        jax.block_until_ready((out, h_new, c_new))

    ref_out, (ref_h, ref_c) = topdown_core_reference(
        xt, fc_feats, att_feats, p_att_feats, state, params)
    # bf16 MXU operands + bf16 att/p_att storage + approx reciprocal vs f32 reference
    # -> looser tolerance than a pure-f32 kernel.
    np.testing.assert_allclose(np.asarray(out), np.asarray(ref_out), atol=3e-2, rtol=3e-2)
    np.testing.assert_allclose(np.asarray(h_new), np.asarray(ref_h), atol=3e-2, rtol=3e-2)
    np.testing.assert_allclose(np.asarray(c_new), np.asarray(ref_c), atol=3e-2, rtol=3e-2)

    print("KERNEL_OK")
</pallas_src>

<mosaic_0001>
module attributes {stable_mosaic.version = 11 : i64} {
  func.func @topdown_core_kernel(%arg0: i32, %arg1: memref<8x32xf32, #tpu.memory_space<vmem>>, %arg2: memref<8x32xf32, #tpu.memory_space<vmem>>, %arg3: memref<8x16x32xbf16, #tpu.memory_space<vmem>>, %arg4: memref<8x16x32xbf16, #tpu.memory_space<vmem>>, %arg5: memref<2x8x32xf32, #tpu.memory_space<vmem>>, %arg6: memref<2x8x32xf32, #tpu.memory_space<vmem>>, %arg7: memref<32x128xbf16, #tpu.memory_space<vmem>>, %arg8: memref<32x128xbf16, #tpu.memory_space<vmem>>, %arg9: memref<32x128xbf16, #tpu.memory_space<vmem>>, %arg10: memref<32x128xbf16, #tpu.memory_space<vmem>>, %arg11: memref<1x128xf32, #tpu.memory_space<vmem>>, %arg12: memref<32x128xbf16, #tpu.memory_space<vmem>>, %arg13: memref<32x128xbf16, #tpu.memory_space<vmem>>, %arg14: memref<32x128xbf16, #tpu.memory_space<vmem>>, %arg15: memref<1x128xf32, #tpu.memory_space<vmem>>, %arg16: memref<32x32xbf16, #tpu.memory_space<vmem>>, %arg17: memref<1x32xf32, #tpu.memory_space<vmem>>, %arg18: memref<1x32xf32, #tpu.memory_space<vmem>>, %arg19: memref<1x1xf32, #tpu.memory_space<vmem>>, %arg20: memref<2x8x32xf32, #tpu.memory_space<vmem>>, %arg21: memref<2x8x32xf32, #tpu.memory_space<vmem>>) attributes {dimension_semantics = [#tpu.dimension_semantics<parallel>], iteration_bounds = array<i64: 1>, scalar_prefetch = 0 : i64, scratch_operands = 0 : i64, tpu.core_type = #tpu.core_type<tc>, window_params = [{transform_indices = @transform_0, window_bounds = array<i64: 8, 32>}, {transform_indices = @transform_1, window_bounds = array<i64: 8, 32>}, {transform_indices = @transform_2, window_bounds = array<i64: 8, 16, 32>}, {transform_indices = @transform_3, window_bounds = array<i64: 8, 16, 32>}, {transform_indices = @transform_4, window_bounds = array<i64: 2, 8, 32>}, {transform_indices = @transform_5, window_bounds = array<i64: 2, 8, 32>}, {pipeline_mode = #tpu.pipeline_mode<synchronous>, transform_indices = @transform_6, window_bounds = array<i64: 32, 128>}, {pipeline_mode = #tpu.pipeline_mode<synchronous>, transform_indices = @transform_7, window_bounds = array<i64: 32, 128>}, {pipeline_mode = #tpu.pipeline_mode<synchronous>, transform_indices = @transform_8, window_bounds = array<i64: 32, 128>}, {pipeline_mode = #tpu.pipeline_mode<synchronous>, transform_indices = @transform_9, window_bounds = array<i64: 32, 128>}, {pipeline_mode = #tpu.pipeline_mode<synchronous>, transform_indices = @transform_10, window_bounds = array<i64: 1, 128>}, {pipeline_mode = #tpu.pipeline_mode<synchronous>, transform_indices = @transform_11, window_bounds = array<i64: 32, 128>}, {pipeline_mode = #tpu.pipeline_mode<synchronous>, transform_indices = @transform_12, window_bounds = array<i64: 32, 128>}, {pipeline_mode = #tpu.pipeline_mode<synchronous>, transform_indices = @transform_13, window_bounds = array<i64: 32, 128>}, {pipeline_mode = #tpu.pipeline_mode<synchronous>, transform_indices = @transform_14, window_bounds = array<i64: 1, 128>}, {pipeline_mode = #tpu.pipeline_mode<synchronous>, transform_indices = @transform_15, window_bounds = array<i64: 32, 32>}, {pipeline_mode = #tpu.pipeline_mode<synchronous>, transform_indices = @transform_16, window_bounds = array<i64: 1, 32>}, {pipeline_mode = #tpu.pipeline_mode<synchronous>, transform_indices = @transform_17, window_bounds = array<i64: 1, 32>}, {pipeline_mode = #tpu.pipeline_mode<synchronous>, transform_indices = @transform_18, window_bounds = array<i64: 1, 1>}, {transform_indices = @transform_19, window_bounds = array<i64: 2, 8, 32>}, {transform_indices = @transform_20, window_bounds = array<i64: 2, 8, 32>}]} {
    %c0 = arith.constant 0 : index
    %c0_0 = arith.constant 0 : index
    %c0_1 = arith.constant 0 : index
    %0 = vector.load %arg5[%c0, %c0_0, %c0_1] : memref<2x8x32xf32, #tpu.memory_space<vmem>>, vector<1x8x32xf32>
    %1 = vector.shape_cast %0 : vector<1x8x32xf32> to vector<8x32xf32>
    %c1 = arith.constant 1 : index
    %c0_2 = arith.constant 0 : index
    %c0_3 = arith.constant 0 : index
    %2 = vector.load %arg5[%c1, %c0_2, %c0_3] : memref<2x8x32xf32, #tpu.memory_space<vmem>>, vector<1x8x32xf32>
    %3 = vector.shape_cast %2 : vector<1x8x32xf32> to vector<8x32xf32>
    %c0_4 = arith.constant 0 : index
    %c0_5 = arith.constant 0 : index
    %c0_6 = arith.constant 0 : index
    %4 = vector.load %arg6[%c0_4, %c0_5, %c0_6] : memref<2x8x32xf32, #tpu.memory_space<vmem>>, vector<1x8x32xf32>
    %5 = vector.shape_cast %4 : vector<1x8x32xf32> to vector<8x32xf32>
    %c1_7 = arith.constant 1 : index
    %c0_8 = arith.constant 0 : index
    %c0_9 = arith.constant 0 : index
    %6 = vector.load %arg6[%c1_7, %c0_8, %c0_9] : memref<2x8x32xf32, #tpu.memory_space<vmem>>, vector<1x8x32xf32>
    %7 = vector.shape_cast %6 : vector<1x8x32xf32> to vector<8x32xf32>
    %8 = arith.truncf %3 : vector<8x32xf32> to vector<8x32xbf16>
    %c0_10 = arith.constant 0 : index
    %c0_11 = arith.constant 0 : index
    %9 = vector.load %arg7[%c0_10, %c0_11] : memref<32x128xbf16, #tpu.memory_space<vmem>>, vector<32x128xbf16>
    %cst = arith.constant dense<0.000000e+00> : vector<8x128xf32>
    %10 = tpu.matmul %8, %9, %cst {dimension_numbers = #tpu.dot_dimension_numbers<[1], [0], [0], [1], [0, 0, 1, 1], [], []>} : vector<8x32xbf16>, vector<32x128xbf16>, vector<8x128xf32> -> vector<8x128xf32>
    %c0_12 = arith.constant 0 : index
    %c0_13 = arith.constant 0 : index
    %11 = vector.load %arg2[%c0_12, %c0_13] : memref<8x32xf32, #tpu.memory_space<vmem>>, vector<8x32xf32>
    %12 = arith.truncf %11 : vector<8x32xf32> to vector<8x32xbf16>
    %c0_14 = arith.constant 0 : index
    %c0_15 = arith.constant 0 : index
    %13 = vector.load %arg8[%c0_14, %c0_15] : memref<32x128xbf16, #tpu.memory_space<vmem>>, vector<32x128xbf16>
    %cst_16 = arith.constant dense<0.000000e+00> : vector<8x128xf32>
    %14 = tpu.matmul %12, %13, %cst_16 {dimension_numbers = #tpu.dot_dimension_numbers<[1], [0], [0], [1], [0, 0, 1, 1], [], []>} : vector<8x32xbf16>, vector<32x128xbf16>, vector<8x128xf32> -> vector<8x128xf32>
    %15 = arith.addf %10, %14 : vector<8x128xf32>
    %c0_17 = arith.constant 0 : index
    %c0_18 = arith.constant 0 : index
    %16 = vector.load %arg1[%c0_17, %c0_18] : memref<8x32xf32, #tpu.memory_space<vmem>>, vector<8x32xf32>
    %17 = arith.truncf %16 : vector<8x32xf32> to vector<8x32xbf16>
    %c0_19 = arith.constant 0 : index
    %c0_20 = arith.constant 0 : index
    %18 = vector.load %arg9[%c0_19, %c0_20] : memref<32x128xbf16, #tpu.memory_space<vmem>>, vector<32x128xbf16>
    %cst_21 = arith.constant dense<0.000000e+00> : vector<8x128xf32>
    %19 = tpu.matmul %17, %18, %cst_21 {dimension_numbers = #tpu.dot_dimension_numbers<[1], [0], [0], [1], [0, 0, 1, 1], [], []>} : vector<8x32xbf16>, vector<32x128xbf16>, vector<8x128xf32> -> vector<8x128xf32>
    %20 = arith.addf %15, %19 : vector<8x128xf32>
    %21 = arith.truncf %1 : vector<8x32xf32> to vector<8x32xbf16>
    %c0_22 = arith.constant 0 : index
    %c0_23 = arith.constant 0 : index
    %22 = vector.load %arg10[%c0_22, %c0_23] : memref<32x128xbf16, #tpu.memory_space<vmem>>, vector<32x128xbf16>
    %cst_24 = arith.constant dense<0.000000e+00> : vector<8x128xf32>
    %23 = tpu.matmul %21, %22, %cst_24 {dimension_numbers = #tpu.dot_dimension_numbers<[1], [0], [0], [1], [0, 0, 1, 1], [], []>} : vector<8x32xbf16>, vector<32x128xbf16>, vector<8x128xf32> -> vector<8x128xf32>
    %24 = arith.addf %20, %23 : vector<8x128xf32>
    %c0_25 = arith.constant 0 : index
    %c0_26 = arith.constant 0 : index
    %25 = vector.load %arg11[%c0_25, %c0_26] : memref<1x128xf32, #tpu.memory_space<vmem>>, vector<1x128xf32>
    %26 = vector.broadcast %25 : vector<1x128xf32> to vector<8x128xf32>
    %27 = arith.addf %24, %26 : vector<8x128xf32>
    %28 = vector.extract_strided_slice %27 {offsets = [0, 0], sizes = [8, 64], strides = [1, 1]} : vector<8x128xf32> to vector<8x64xf32>
    %29 = arith.negf %28 : vector<8x64xf32>
    %30 = math.exp %29 : vector<8x64xf32>
    %cst_27 = arith.constant 1.000000e+00 : f32
    %31 = vector.broadcast %cst_27 : f32 to vector<8x64xf32>
    %32 = arith.addf %31, %30 : vector<8x64xf32>
    %33 = arith.divf %31, %32 : vector<8x64xf32>
    %34 = vector.extract_strided_slice %33 {offsets = [0, 0], sizes = [8, 32], strides = [1, 1]} : vector<8x64xf32> to vector<8x32xf32>
    %35 = vector.extract_strided_slice %33 {offsets = [0, 32], sizes = [8, 32], strides = [1, 1]} : vector<8x64xf32> to vector<8x32xf32>
    %36 = vector.extract_strided_slice %27 {offsets = [0, 64], sizes = [8, 32], strides = [1, 1]} : vector<8x128xf32> to vector<8x32xf32>
    %37 = math.tanh %36 : vector<8x32xf32>
    %38 = vector.extract_strided_slice %27 {offsets = [0, 96], sizes = [8, 32], strides = [1, 1]} : vector<8x128xf32> to vector<8x32xf32>
    %39 = math.tanh %38 : vector<8x32xf32>
    %cst_28 = arith.constant 0.000000e+00 : f32
    %40 = vector.broadcast %cst_28 : f32 to vector<8x32xf32>
    %41 = arith.mulf %39, %40 : vector<8x32xf32>
    %42 = vector.extract_strided_slice %27 {offsets = [0, 96], sizes = [8, 32], strides = [1, 1]} : vector<8x128xf32> to vector<8x32xf32>
    %43 = arith.negf %42 : vector<8x32xf32>
    %44 = math.exp %43 : vector<8x32xf32>
    %cst_29 = arith.constant 1.000000e+00 : f32
    %45 = vector.broadcast %cst_29 : f32 to vector<8x32xf32>
    %46 = arith.addf %45, %44 : vector<8x32xf32>
    %47 = arith.divf %45, %46 : vector<8x32xf32>
    %48 = arith.addf %41, %47 : vector<8x32xf32>
    %49 = arith.mulf %35, %5 : vector<8x32xf32>
    %50 = arith.mulf %34, %37 : vector<8x32xf32>
    %51 = arith.addf %49, %50 : vector<8x32xf32>
    %52 = math.tanh %51 : vector<8x32xf32>
    %53 = arith.mulf %48, %52 : vector<8x32xf32>
    %54 = arith.truncf %53 : vector<8x32xf32> to vector<8x32xbf16>
    %c0_30 = arith.constant 0 : index
    %c0_31 = arith.constant 0 : index
    %55 = vector.load %arg16[%c0_30, %c0_31] : memref<32x32xbf16, #tpu.memory_space<vmem>>, vector<32x32xbf16>
    %cst_32 = arith.constant dense<0.000000e+00> : vector<8x32xf32>
    %56 = tpu.matmul %54, %55, %cst_32 {dimension_numbers = #tpu.dot_dimension_numbers<[1], [0], [0], [1], [0, 0, 1, 1], [], []>} : vector<8x32xbf16>, vector<32x32xbf16>, vector<8x32xf32> -> vector<8x32xf32>
    %c0_33 = arith.constant 0 : index
    %c0_34 = arith.constant 0 : index
    %57 = vector.load %arg17[%c0_33, %c0_34] : memref<1x32xf32, #tpu.memory_space<vmem>>, vector<1x32xf32>
    %58 = vector.broadcast %57 : vector<1x32xf32> to vector<8x32xf32>
    %59 = arith.addf %56, %58 : vector<8x32xf32>
    %60 = vector.shape_cast %59 : vector<8x32xf32> to vector<8x1x32xf32>
    %c0_35 = arith.constant 0 : index
    %c0_36 = arith.constant 0 : index
    %61 = vector.load %arg18[%c0_35, %c0_36] : memref<1x32xf32, #tpu.memory_space<vmem>>, vector<1x32xf32>
    %c0_37 = arith.constant 0 : index
    %c0_38 = arith.constant 0 : index
    %c0_39 = arith.constant 0 : index
    %62 = vector.load %arg4[%c0_37, %c0_38, %c0_39] : memref<8x16x32xbf16, #tpu.memory_space<vmem>>, vector<8x8x32xbf16>
    %63 = arith.extf %62 : vector<8x8x32xbf16> to vector<8x8x32xf32>
    %64 = vector.broadcast %60 : vector<8x1x32xf32> to vector<8x8x32xf32>
    %65 = arith.addf %63, %64 : vector<8x8x32xf32>
    %66 = math.tanh %65 : vector<8x8x32xf32>
    %67 = vector.shape_cast %61 : vector<1x32xf32> to vector<1x1x32xf32>
    %68 = vector.broadcast %67 : vector<1x1x32xf32> to vector<8x8x32xf32>
    %69 = arith.mulf %66, %68 : vector<8x8x32xf32>
    %cst_40 = arith.constant dense<0.000000e+00> : vector<8x8xf32>
    %70 = vector.multi_reduction <add>, %69, %cst_40 [2] : vector<8x8x32xf32> to vector<8x8xf32>
    %c0_41 = arith.constant 0 : index
    %c8 = arith.constant 8 : index
    %c0_42 = arith.constant 0 : index
    %71 = vector.load %arg4[%c0_41, %c8, %c0_42] : memref<8x16x32xbf16, #tpu.memory_space<vmem>>, vector<8x8x32xbf16>
    %72 = arith.extf %71 : vector<8x8x32xbf16> to vector<8x8x32xf32>
    %73 = vector.broadcast %60 : vector<8x1x32xf32> to vector<8x8x32xf32>
    %74 = arith.addf %72, %73 : vector<8x8x32xf32>
    %75 = math.tanh %74 : vector<8x8x32xf32>
    %76 = vector.shape_cast %61 : vector<1x32xf32> to vector<1x1x32xf32>
    %77 = vector.broadcast %76 : vector<1x1x32xf32> to vector<8x8x32xf32>
    %78 = arith.mulf %75, %77 : vector<8x8x32xf32>
    %cst_43 = arith.constant dense<0.000000e+00> : vector<8x8xf32>
    %79 = vector.multi_reduction <add>, %78, %cst_43 [2] : vector<8x8x32xf32> to vector<8x8xf32>
    %80 = tpu.concatenate %70, %79 in 1 : vector<8x8xf32>, vector<8x8xf32> -> vector<8x16xf32>
    %c0_44 = arith.constant 0 : index
    %c0_45 = arith.constant 0 : index
    %81 = vector.load %arg19[%c0_44, %c0_45] : memref<1x1xf32, #tpu.memory_space<vmem>>, vector<1x1xf32>
    %82 = vector.broadcast %81 : vector<1x1xf32> to vector<8x16xf32>
    %83 = arith.addf %80, %82 : vector<8x16xf32>
    %cst_46 = arith.constant dense<0xFF800000> : vector<8xf32>
    %84 = vector.multi_reduction <maximumf>, %83, %cst_46 [1] : vector<8x16xf32> to vector<8xf32>
    %85 = vector.shape_cast %84 : vector<8xf32> to vector<8x1xf32>
    %86 = vector.broadcast %85 : vector<8x1xf32> to vector<8x16xf32>
    %87 = arith.subf %83, %86 : vector<8x16xf32>
    %88 = math.exp %87 : vector<8x16xf32>
    %cst_47 = arith.constant dense<0.000000e+00> : vector<8xf32>
    %89 = vector.multi_reduction <add>, %88, %cst_47 [1] : vector<8x16xf32> to vector<8xf32>
    %90 = vector.shape_cast %89 : vector<8xf32> to vector<8x1xf32>
    %91 = tpu.reciprocal %90 {approx = true} : vector<8x1xf32> -> vector<8x1xf32>
    %92 = vector.broadcast %91 : vector<8x1xf32> to vector<8x16xf32>
    %93 = arith.mulf %88, %92 : vector<8x16xf32>
    %cst_48 = arith.constant 0.000000e+00 : f32
    %94 = vector.broadcast %cst_48 : f32 to vector<8x32xf32>
    %95 = vector.extract_strided_slice %93 {offsets = [0, 0], sizes = [8, 8], strides = [1, 1]} : vector<8x16xf32> to vector<8x8xf32>
    %c0_49 = arith.constant 0 : index
    %c0_50 = arith.constant 0 : index
    %c0_51 = arith.constant 0 : index
    %96 = vector.load %arg3[%c0_49, %c0_50, %c0_51] : memref<8x16x32xbf16, #tpu.memory_space<vmem>>, vector<8x8x32xbf16>
    %97 = arith.extf %96 : vector<8x8x32xbf16> to vector<8x8x32xf32>
    %98 = vector.shape_cast %95 : vector<8x8xf32> to vector<8x8x1xf32>
    %99 = vector.broadcast %98 : vector<8x8x1xf32> to vector<8x8x32xf32>
    %100 = arith.mulf %99, %97 : vector<8x8x32xf32>
    %cst_52 = arith.constant dense<0.000000e+00> : vector<8x32xf32>
    %101 = vector.multi_reduction <add>, %100, %cst_52 [1] : vector<8x8x32xf32> to vector<8x32xf32>
    %102 = arith.addf %94, %101 : vector<8x32xf32>
    %103 = vector.extract_strided_slice %93 {offsets = [0, 8], sizes = [8, 8], strides = [1, 1]} : vector<8x16xf32> to vector<8x8xf32>
    %c0_53 = arith.constant 0 : index
    %c8_54 = arith.constant 8 : index
    %c0_55 = arith.constant 0 : index
    %104 = vector.load %arg3[%c0_53, %c8_54, %c0_55] : memref<8x16x32xbf16, #tpu.memory_space<vmem>>, vector<8x8x32xbf16>
    %105 = arith.extf %104 : vector<8x8x32xbf16> to vector<8x8x32xf32>
    %106 = vector.shape_cast %103 : vector<8x8xf32> to vector<8x8x1xf32>
    %107 = vector.broadcast %106 : vector<8x8x1xf32> to vector<8x8x32xf32>
    %108 = arith.mulf %107, %105 : vector<8x8x32xf32>
    %cst_56 = arith.constant dense<0.000000e+00> : vector<8x32xf32>
    %109 = vector.multi_reduction <add>, %108, %cst_56 [1] : vector<8x8x32xf32> to vector<8x32xf32>
    %110 = arith.addf %102, %109 : vector<8x32xf32>
    %111 = arith.truncf %110 : vector<8x32xf32> to vector<8x32xbf16>
    %c0_57 = arith.constant 0 : index
    %c0_58 = arith.constant 0 : index
    %112 = vector.load %arg12[%c0_57, %c0_58] : memref<32x128xbf16, #tpu.memory_space<vmem>>, vector<32x128xbf16>
    %cst_59 = arith.constant dense<0.000000e+00> : vector<8x128xf32>
    %113 = tpu.matmul %111, %112, %cst_59 {dimension_numbers = #tpu.dot_dimension_numbers<[1], [0], [0], [1], [0, 0, 1, 1], [], []>} : vector<8x32xbf16>, vector<32x128xbf16>, vector<8x128xf32> -> vector<8x128xf32>
    %c0_60 = arith.constant 0 : index
    %c0_61 = arith.constant 0 : index
    %114 = vector.load %arg13[%c0_60, %c0_61] : memref<32x128xbf16, #tpu.memory_space<vmem>>, vector<32x128xbf16>
    %cst_62 = arith.constant dense<0.000000e+00> : vector<8x128xf32>
    %115 = tpu.matmul %54, %114, %cst_62 {dimension_numbers = #tpu.dot_dimension_numbers<[1], [0], [0], [1], [0, 0, 1, 1], [], []>} : vector<8x32xbf16>, vector<32x128xbf16>, vector<8x128xf32> -> vector<8x128xf32>
    %116 = arith.addf %113, %115 : vector<8x128xf32>
    %117 = arith.truncf %3 : vector<8x32xf32> to vector<8x32xbf16>
    %c0_63 = arith.constant 0 : index
    %c0_64 = arith.constant 0 : index
    %118 = vector.load %arg14[%c0_63, %c0_64] : memref<32x128xbf16, #tpu.memory_space<vmem>>, vector<32x128xbf16>
    %cst_65 = arith.constant dense<0.000000e+00> : vector<8x128xf32>
    %119 = tpu.matmul %117, %118, %cst_65 {dimension_numbers = #tpu.dot_dimension_numbers<[1], [0], [0], [1], [0, 0, 1, 1], [], []>} : vector<8x32xbf16>, vector<32x128xbf16>, vector<8x128xf32> -> vector<8x128xf32>
    %120 = arith.addf %116, %119 : vector<8x128xf32>
    %c0_66 = arith.constant 0 : index
    %c0_67 = arith.constant 0 : index
    %121 = vector.load %arg15[%c0_66, %c0_67] : memref<1x128xf32, #tpu.memory_space<vmem>>, vector<1x128xf32>
    %122 = vector.broadcast %121 : vector<1x128xf32> to vector<8x128xf32>
    %123 = arith.addf %120, %122 : vector<8x128xf32>
    %124 = vector.extract_strided_slice %123 {offsets = [0, 0], sizes = [8, 64], strides = [1, 1]} : vector<8x128xf32> to vector<8x64xf32>
    %125 = arith.negf %124 : vector<8x64xf32>
    %126 = math.exp %125 : vector<8x64xf32>
    %cst_68 = arith.constant 1.000000e+00 : f32
    %127 = vector.broadcast %cst_68 : f32 to vector<8x64xf32>
    %128 = arith.addf %127, %126 : vector<8x64xf32>
    %129 = arith.divf %127, %128 : vector<8x64xf32>
    %130 = vector.extract_strided_slice %129 {offsets = [0, 0], sizes = [8, 32], strides = [1, 1]} : vector<8x64xf32> to vector<8x32xf32>
    %131 = vector.extract_strided_slice %129 {offsets = [0, 32], sizes = [8, 32], strides = [1, 1]} : vector<8x64xf32> to vector<8x32xf32>
    %132 = vector.extract_strided_slice %123 {offsets = [0, 64], sizes = [8, 32], strides = [1, 1]} : vector<8x128xf32> to vector<8x32xf32>
    %133 = math.tanh %132 : vector<8x32xf32>
    %134 = vector.extract_strided_slice %123 {offsets = [0, 96], sizes = [8, 32], strides = [1, 1]} : vector<8x128xf32> to vector<8x32xf32>
    %135 = math.tanh %134 : vector<8x32xf32>
    %cst_69 = arith.constant 0.000000e+00 : f32
    %136 = vector.broadcast %cst_69 : f32 to vector<8x32xf32>
    %137 = arith.mulf %135, %136 : vector<8x32xf32>
    %138 = vector.extract_strided_slice %123 {offsets = [0, 96], sizes = [8, 32], strides = [1, 1]} : vector<8x128xf32> to vector<8x32xf32>
    %139 = arith.negf %138 : vector<8x32xf32>
    %140 = math.exp %139 : vector<8x32xf32>
    %cst_70 = arith.constant 1.000000e+00 : f32
    %141 = vector.broadcast %cst_70 : f32 to vector<8x32xf32>
    %142 = arith.addf %141, %140 : vector<8x32xf32>
    %143 = arith.divf %141, %142 : vector<8x32xf32>
    %144 = arith.addf %137, %143 : vector<8x32xf32>
    %145 = arith.mulf %131, %7 : vector<8x32xf32>
    %146 = arith.mulf %130, %133 : vector<8x32xf32>
    %147 = arith.addf %145, %146 : vector<8x32xf32>
    %148 = math.tanh %147 : vector<8x32xf32>
    %149 = arith.mulf %144, %148 : vector<8x32xf32>
    %c0_71 = arith.constant 0 : index
    %c0_72 = arith.constant 0 : index
    %c0_73 = arith.constant 0 : index
    %150 = vector.load %arg20[%c0_71, %c0_72, %c0_73] : memref<2x8x32xf32, #tpu.memory_space<vmem>>, vector<1x8x32xf32>
    %151 = vector.shape_cast %150 : vector<1x8x32xf32> to vector<8x32xf32>
    %152 = vector.shape_cast %53 : vector<8x32xf32> to vector<1x8x32xf32>
    tpu.vector_store %arg20[%c0_71, %c0_72, %c0_73], %152 {strides = array<i32>} : memref<2x8x32xf32, #tpu.memory_space<vmem>>, vector<1x8x32xf32>,
    %c1_74 = arith.constant 1 : index
    %c0_75 = arith.constant 0 : index
    %c0_76 = arith.constant 0 : index
    %153 = vector.load %arg20[%c1_74, %c0_75, %c0_76] : memref<2x8x32xf32, #tpu.memory_space<vmem>>, vector<1x8x32xf32>
    %154 = vector.shape_cast %153 : vector<1x8x32xf32> to vector<8x32xf32>
    %155 = vector.shape_cast %149 : vector<8x32xf32> to vector<1x8x32xf32>
    tpu.vector_store %arg20[%c1_74, %c0_75, %c0_76], %155 {strides = array<i32>} : memref<2x8x32xf32, #tpu.memory_space<vmem>>, vector<1x8x32xf32>,
    %c0_77 = arith.constant 0 : index
    %c0_78 = arith.constant 0 : index
    %c0_79 = arith.constant 0 : index
    %156 = vector.load %arg21[%c0_77, %c0_78, %c0_79] : memref<2x8x32xf32, #tpu.memory_space<vmem>>, vector<1x8x32xf32>
    %157 = vector.shape_cast %156 : vector<1x8x32xf32> to vector<8x32xf32>
    %158 = vector.shape_cast %51 : vector<8x32xf32> to vector<1x8x32xf32>
    tpu.vector_store %arg21[%c0_77, %c0_78, %c0_79], %158 {strides = array<i32>} : memref<2x8x32xf32, #tpu.memory_space<vmem>>, vector<1x8x32xf32>,
    %c1_80 = arith.constant 1 : index
    %c0_81 = arith.constant 0 : index
    %c0_82 = arith.constant 0 : index
    %159 = vector.load %arg21[%c1_80, %c0_81, %c0_82] : memref<2x8x32xf32, #tpu.memory_space<vmem>>, vector<1x8x32xf32>
    %160 = vector.shape_cast %159 : vector<1x8x32xf32> to vector<8x32xf32>
    %161 = vector.shape_cast %147 : vector<8x32xf32> to vector<1x8x32xf32>
    tpu.vector_store %arg21[%c1_80, %c0_81, %c0_82], %161 {strides = array<i32>} : memref<2x8x32xf32, #tpu.memory_space<vmem>>, vector<1x8x32xf32>,
    return
  }
  func.func @transform_0(%arg0: i32) -> (i32, i32) {
    %c0_i32 = arith.constant 0 : i32
    %c0_i32_0 = arith.constant 0 : i32
    return %arg0, %c0_i32 : i32, i32
  }
  func.func @transform_1(%arg0: i32) -> (i32, i32) {
    %c0_i32 = arith.constant 0 : i32
    %c0_i32_0 = arith.constant 0 : i32
    return %arg0, %c0_i32 : i32, i32
  }
  func.func @transform_2(%arg0: i32) -> (i32, i32, i32) {
    %c0_i32 = arith.constant 0 : i32
    %c0_i32_0 = arith.constant 0 : i32
    %c0_i32_1 = arith.constant 0 : i32
    return %arg0, %c0_i32, %c0_i32_0 : i32, i32, i32
  }
  func.func @transform_3(%arg0: i32) -> (i32, i32, i32) {
    %c0_i32 = arith.constant 0 : i32
    %c0_i32_0 = arith.constant 0 : i32
    %c0_i32_1 = arith.constant 0 : i32
    return %arg0, %c0_i32, %c0_i32_0 : i32, i32, i32
  }
  func.func @transform_4(%arg0: i32) -> (i32, i32, i32) {
    %c0_i32 = arith.constant 0 : i32
    %c0_i32_0 = arith.constant 0 : i32
    %c0_i32_1 = arith.constant 0 : i32
    return %c0_i32, %arg0, %c0_i32_0 : i32, i32, i32
  }
  func.func @transform_5(%arg0: i32) -> (i32, i32, i32) {
    %c0_i32 = arith.constant 0 : i32
    %c0_i32_0 = arith.constant 0 : i32
    %c0_i32_1 = arith.constant 0 : i32
    return %c0_i32, %arg0, %c0_i32_0 : i32, i32, i32
  }
  func.func @transform_6(%arg0: i32) -> (i32, i32) {
    %c0_i32 = arith.constant 0 : i32
    %c0_i32_0 = arith.constant 0 : i32
    %c0_i32_1 = arith.constant 0 : i32
    return %c0_i32, %c0_i32_0 : i32, i32
  }
  func.func @transform_7(%arg0: i32) -> (i32, i32) {
    %c0_i32 = arith.constant 0 : i32
    %c0_i32_0 = arith.constant 0 : i32
    %c0_i32_1 = arith.constant 0 : i32
    return %c0_i32, %c0_i32_0 : i32, i32
  }
  func.func @transform_8(%arg0: i32) -> (i32, i32) {
    %c0_i32 = arith.constant 0 : i32
    %c0_i32_0 = arith.constant 0 : i32
    %c0_i32_1 = arith.constant 0 : i32
    return %c0_i32, %c0_i32_0 : i32, i32
  }
  func.func @transform_9(%arg0: i32) -> (i32, i32) {
    %c0_i32 = arith.constant 0 : i32
    %c0_i32_0 = arith.constant 0 : i32
    %c0_i32_1 = arith.constant 0 : i32
    return %c0_i32, %c0_i32_0 : i32, i32
  }
  func.func @transform_10(%arg0: i32) -> (i32, i32) {
    %c0_i32 = arith.constant 0 : i32
    %c0_i32_0 = arith.constant 0 : i32
    %c0_i32_1 = arith.constant 0 : i32
    return %c0_i32, %c0_i32_0 : i32, i32
  }
  func.func @transform_11(%arg0: i32) -> (i32, i32) {
    %c0_i32 = arith.constant 0 : i32
    %c0_i32_0 = arith.constant 0 : i32
    %c0_i32_1 = arith.constant 0 : i32
    return %c0_i32, %c0_i32_0 : i32, i32
  }
  func.func @transform_12(%arg0: i32) -> (i32, i32) {
    %c0_i32 = arith.constant 0 : i32
    %c0_i32_0 = arith.constant 0 : i32
    %c0_i32_1 = arith.constant 0 : i32
    return %c0_i32, %c0_i32_0 : i32, i32
  }
  func.func @transform_13(%arg0: i32) -> (i32, i32) {
    %c0_i32 = arith.constant 0 : i32
    %c0_i32_0 = arith.constant 0 : i32
    %c0_i32_1 = arith.constant 0 : i32
    return %c0_i32, %c0_i32_0 : i32, i32
  }
  func.func @transform_14(%arg0: i32) -> (i32, i32) {
    %c0_i32 = arith.constant 0 : i32
    %c0_i32_0 = arith.constant 0 : i32
    %c0_i32_1 = arith.constant 0 : i32
    return %c0_i32, %c0_i32_0 : i32, i32
  }
  func.func @transform_15(%arg0: i32) -> (i32, i32) {
    %c0_i32 = arith.constant 0 : i32
    %c0_i32_0 = arith.constant 0 : i32
    %c0_i32_1 = arith.constant 0 : i32
    return %c0_i32, %c0_i32_0 : i32, i32
  }
  func.func @transform_16(%arg0: i32) -> (i32, i32) {
    %c0_i32 = arith.constant 0 : i32
    %c0_i32_0 = arith.constant 0 : i32
    %c0_i32_1 = arith.constant 0 : i32
    return %c0_i32, %c0_i32_0 : i32, i32
  }
  func.func @transform_17(%arg0: i32) -> (i32, i32) {
    %c0_i32 = arith.constant 0 : i32
    %c0_i32_0 = arith.constant 0 : i32
    %c0_i32_1 = arith.constant 0 : i32
    return %c0_i32, %c0_i32_0 : i32, i32
  }
  func.func @transform_18(%arg0: i32) -> (i32, i32) {
    %c0_i32 = arith.constant 0 : i32
    %c0_i32_0 = arith.constant 0 : i32
    %c0_i32_1 = arith.constant 0 : i32
    return %c0_i32, %c0_i32_0 : i32, i32
  }
  func.func @transform_19(%arg0: i32) -> (i32, i32, i32) {
    %c0_i32 = arith.constant 0 : i32
    %c0_i32_0 = arith.constant 0 : i32
    %c0_i32_1 = arith.constant 0 : i32
    return %c0_i32, %arg0, %c0_i32_0 : i32, i32, i32
  }
  func.func @transform_20(%arg0: i32) -> (i32, i32, i32) {
    %c0_i32 = arith.constant 0 : i32
    %c0_i32_0 = arith.constant 0 : i32
    %c0_i32_1 = arith.constant 0 : i32
    return %c0_i32, %arg0, %c0_i32_0 : i32, i32, i32
  }
}

module attributes {stable_mosaic.version = 11 : i64} {
  func.func @topdown_core_kernel(%arg0: i32, %arg1: memref<8x32xf32, #tpu.memory_space<vmem>>, %arg2: memref<8x32xf32, #tpu.memory_space<vmem>>, %arg3: memref<8x16x32xbf16, #tpu.memory_space<vmem>>, %arg4: memref<8x16x32xbf16, #tpu.memory_space<vmem>>, %arg5: memref<2x8x32xf32, #tpu.memory_space<vmem>>, %arg6: memref<2x8x32xf32, #tpu.memory_space<vmem>>, %arg7: memref<32x128xbf16, #tpu.memory_space<vmem>>, %arg8: memref<32x128xbf16, #tpu.memory_space<vmem>>, %arg9: memref<32x128xbf16, #tpu.memory_space<vmem>>, %arg10: memref<32x128xbf16, #tpu.memory_space<vmem>>, %arg11: memref<1x128xf32, #tpu.memory_space<vmem>>, %arg12: memref<32x128xbf16, #tpu.memory_space<vmem>>, %arg13: memref<32x128xbf16, #tpu.memory_space<vmem>>, %arg14: memref<32x128xbf16, #tpu.memory_space<vmem>>, %arg15: memref<1x128xf32, #tpu.memory_space<vmem>>, %arg16: memref<32x32xbf16, #tpu.memory_space<vmem>>, %arg17: memref<1x32xf32, #tpu.memory_space<vmem>>, %arg18: memref<1x32xf32, #tpu.memory_space<vmem>>, %arg19: memref<1x1xf32, #tpu.memory_space<vmem>>, %arg20: memref<2x8x32xf32, #tpu.memory_space<vmem>>, %arg21: memref<2x8x32xf32, #tpu.memory_space<vmem>>) attributes {dimension_semantics = [#tpu.dimension_semantics<parallel>], iteration_bounds = array<i64: 1>, scalar_prefetch = 0 : i64, scratch_operands = 0 : i64, tpu.core_type = #tpu.core_type<tc>, window_params = [{transform_indices = @transform_0, window_bounds = array<i64: 8, 32>}, {transform_indices = @transform_1, window_bounds = array<i64: 8, 32>}, {transform_indices = @transform_2, window_bounds = array<i64: 8, 16, 32>}, {transform_indices = @transform_3, window_bounds = array<i64: 8, 16, 32>}, {transform_indices = @transform_4, window_bounds = array<i64: 2, 8, 32>}, {transform_indices = @transform_5, window_bounds = array<i64: 2, 8, 32>}, {pipeline_mode = #tpu.pipeline_mode<synchronous>, transform_indices = @transform_6, window_bounds = array<i64: 32, 128>}, {pipeline_mode = #tpu.pipeline_mode<synchronous>, transform_indices = @transform_7, window_bounds = array<i64: 32, 128>}, {pipeline_mode = #tpu.pipeline_mode<synchronous>, transform_indices = @transform_8, window_bounds = array<i64: 32, 128>}, {pipeline_mode = #tpu.pipeline_mode<synchronous>, transform_indices = @transform_9, window_bounds = array<i64: 32, 128>}, {pipeline_mode = #tpu.pipeline_mode<synchronous>, transform_indices = @transform_10, window_bounds = array<i64: 1, 128>}, {pipeline_mode = #tpu.pipeline_mode<synchronous>, transform_indices = @transform_11, window_bounds = array<i64: 32, 128>}, {pipeline_mode = #tpu.pipeline_mode<synchronous>, transform_indices = @transform_12, window_bounds = array<i64: 32, 128>}, {pipeline_mode = #tpu.pipeline_mode<synchronous>, transform_indices = @transform_13, window_bounds = array<i64: 32, 128>}, {pipeline_mode = #tpu.pipeline_mode<synchronous>, transform_indices = @transform_14, window_bounds = array<i64: 1, 128>}, {pipeline_mode = #tpu.pipeline_mode<synchronous>, transform_indices = @transform_15, window_bounds = array<i64: 32, 32>}, {pipeline_mode = #tpu.pipeline_mode<synchronous>, transform_indices = @transform_16, window_bounds = array<i64: 1, 32>}, {pipeline_mode = #tpu.pipeline_mode<synchronous>, transform_indices = @transform_17, window_bounds = array<i64: 1, 32>}, {pipeline_mode = #tpu.pipeline_mode<synchronous>, transform_indices = @transform_18, window_bounds = array<i64: 1, 1>}, {transform_indices = @transform_19, window_bounds = array<i64: 2, 8, 32>}, {transform_indices = @transform_20, window_bounds = array<i64: 2, 8, 32>}]} {
    %c0 = arith.constant 0 : index
    %c0_0 = arith.constant 0 : index
    %c0_1 = arith.constant 0 : index
    %0 = vector.load %arg5[%c0, %c0_0, %c0_1] : memref<2x8x32xf32, #tpu.memory_space<vmem>>, vector<1x8x32xf32>
    %1 = vector.shape_cast %0 : vector<1x8x32xf32> to vector<8x32xf32>
    %c1 = arith.constant 1 : index
    %c0_2 = arith.constant 0 : index
    %c0_3 = arith.constant 0 : index
    %2 = vector.load %arg5[%c1, %c0_2, %c0_3] : memref<2x8x32xf32, #tpu.memory_space<vmem>>, vector<1x8x32xf32>
    %3 = vector.shape_cast %2 : vector<1x8x32xf32> to vector<8x32xf32>
    %c0_4 = arith.constant 0 : index
    %c0_5 = arith.constant 0 : index
    %c0_6 = arith.constant 0 : index
    %4 = vector.load %arg6[%c0_4, %c0_5, %c0_6] : memref<2x8x32xf32, #tpu.memory_space<vmem>>, vector<1x8x32xf32>
    %5 = vector.shape_cast %4 : vector<1x8x32xf32> to vector<8x32xf32>
    %c1_7 = arith.constant 1 : index
    %c0_8 = arith.constant 0 : index
    %c0_9 = arith.constant 0 : index
    %6 = vector.load %arg6[%c1_7, %c0_8, %c0_9] : memref<2x8x32xf32, #tpu.memory_space<vmem>>, vector<1x8x32xf32>
    %7 = vector.shape_cast %6 : vector<1x8x32xf32> to vector<8x32xf32>
    %8 = arith.truncf %3 : vector<8x32xf32> to vector<8x32xbf16>
    %c0_10 = arith.constant 0 : index
    %c0_11 = arith.constant 0 : index
    %9 = vector.load %arg7[%c0_10, %c0_11] : memref<32x128xbf16, #tpu.memory_space<vmem>>, vector<32x128xbf16>
    %cst = arith.constant dense<0.000000e+00> : vector<8x128xf32>
    %10 = tpu.matmul %8, %9, %cst {dimension_numbers = #tpu.dot_dimension_numbers<[1], [0], [0], [1], [0, 0, 1, 1], [], []>} : vector<8x32xbf16>, vector<32x128xbf16>, vector<8x128xf32> -> vector<8x128xf32>
    %c0_12 = arith.constant 0 : index
    %c0_13 = arith.constant 0 : index
    %11 = vector.load %arg2[%c0_12, %c0_13] : memref<8x32xf32, #tpu.memory_space<vmem>>, vector<8x32xf32>
    %12 = arith.truncf %11 : vector<8x32xf32> to vector<8x32xbf16>
    %c0_14 = arith.constant 0 : index
    %c0_15 = arith.constant 0 : index
    %13 = vector.load %arg8[%c0_14, %c0_15] : memref<32x128xbf16, #tpu.memory_space<vmem>>, vector<32x128xbf16>
    %cst_16 = arith.constant dense<0.000000e+00> : vector<8x128xf32>
    %14 = tpu.matmul %12, %13, %cst_16 {dimension_numbers = #tpu.dot_dimension_numbers<[1], [0], [0], [1], [0, 0, 1, 1], [], []>} : vector<8x32xbf16>, vector<32x128xbf16>, vector<8x128xf32> -> vector<8x128xf32>
    %15 = arith.addf %10, %14 : vector<8x128xf32>
    %c0_17 = arith.constant 0 : index
    %c0_18 = arith.constant 0 : index
    %16 = vector.load %arg1[%c0_17, %c0_18] : memref<8x32xf32, #tpu.memory_space<vmem>>, vector<8x32xf32>
    %17 = arith.truncf %16 : vector<8x32xf32> to vector<8x32xbf16>
    %c0_19 = arith.constant 0 : index
    %c0_20 = arith.constant 0 : index
    %18 = vector.load %arg9[%c0_19, %c0_20] : memref<32x128xbf16, #tpu.memory_space<vmem>>, vector<32x128xbf16>
    %cst_21 = arith.constant dense<0.000000e+00> : vector<8x128xf32>
    %19 = tpu.matmul %17, %18, %cst_21 {dimension_numbers = #tpu.dot_dimension_numbers<[1], [0], [0], [1], [0, 0, 1, 1], [], []>} : vector<8x32xbf16>, vector<32x128xbf16>, vector<8x128xf32> -> vector<8x128xf32>
    %20 = arith.addf %15, %19 : vector<8x128xf32>
    %21 = arith.truncf %1 : vector<8x32xf32> to vector<8x32xbf16>
    %c0_22 = arith.constant 0 : index
    %c0_23 = arith.constant 0 : index
    %22 = vector.load %arg10[%c0_22, %c0_23] : memref<32x128xbf16, #tpu.memory_space<vmem>>, vector<32x128xbf16>
    %cst_24 = arith.constant dense<0.000000e+00> : vector<8x128xf32>
    %23 = tpu.matmul %21, %22, %cst_24 {dimension_numbers = #tpu.dot_dimension_numbers<[1], [0], [0], [1], [0, 0, 1, 1], [], []>} : vector<8x32xbf16>, vector<32x128xbf16>, vector<8x128xf32> -> vector<8x128xf32>
    %24 = arith.addf %20, %23 : vector<8x128xf32>
    %c0_25 = arith.constant 0 : index
    %c0_26 = arith.constant 0 : index
    %25 = vector.load %arg11[%c0_25, %c0_26] : memref<1x128xf32, #tpu.memory_space<vmem>>, vector<1x128xf32>
    %26 = vector.broadcast %25 : vector<1x128xf32> to vector<8x128xf32>
    %27 = arith.addf %24, %26 : vector<8x128xf32>
    %28 = vector.extract_strided_slice %27 {offsets = [0, 0], sizes = [8, 64], strides = [1, 1]} : vector<8x128xf32> to vector<8x64xf32>
    %29 = arith.negf %28 : vector<8x64xf32>
    %30 = math.exp %29 : vector<8x64xf32>
    %cst_27 = arith.constant 1.000000e+00 : f32
    %31 = vector.broadcast %cst_27 : f32 to vector<8x64xf32>
    %32 = arith.addf %31, %30 : vector<8x64xf32>
    %33 = arith.divf %31, %32 : vector<8x64xf32>
    %34 = vector.extract_strided_slice %33 {offsets = [0, 0], sizes = [8, 32], strides = [1, 1]} : vector<8x64xf32> to vector<8x32xf32>
    %35 = vector.extract_strided_slice %33 {offsets = [0, 32], sizes = [8, 32], strides = [1, 1]} : vector<8x64xf32> to vector<8x32xf32>
    %36 = vector.extract_strided_slice %27 {offsets = [0, 64], sizes = [8, 32], strides = [1, 1]} : vector<8x128xf32> to vector<8x32xf32>
    %37 = math.tanh %36 : vector<8x32xf32>
    %38 = vector.extract_strided_slice %27 {offsets = [0, 96], sizes = [8, 32], strides = [1, 1]} : vector<8x128xf32> to vector<8x32xf32>
    %39 = math.tanh %38 : vector<8x32xf32>
    %cst_28 = arith.constant 0.000000e+00 : f32
    %40 = vector.broadcast %cst_28 : f32 to vector<8x32xf32>
    %41 = arith.mulf %39, %40 : vector<8x32xf32>
    %42 = vector.extract_strided_slice %27 {offsets = [0, 96], sizes = [8, 32], strides = [1, 1]} : vector<8x128xf32> to vector<8x32xf32>
    %43 = arith.negf %42 : vector<8x32xf32>
    %44 = math.exp %43 : vector<8x32xf32>
    %cst_29 = arith.constant 1.000000e+00 : f32
    %45 = vector.broadcast %cst_29 : f32 to vector<8x32xf32>
    %46 = arith.addf %45, %44 : vector<8x32xf32>
    %47 = arith.divf %45, %46 : vector<8x32xf32>
    %48 = arith.addf %41, %47 : vector<8x32xf32>
    %49 = arith.mulf %35, %5 : vector<8x32xf32>
    %50 = arith.mulf %34, %37 : vector<8x32xf32>
    %51 = arith.addf %49, %50 : vector<8x32xf32>
    %52 = math.tanh %51 : vector<8x32xf32>
    %53 = arith.mulf %48, %52 : vector<8x32xf32>
    %54 = arith.truncf %53 : vector<8x32xf32> to vector<8x32xbf16>
    %c0_30 = arith.constant 0 : index
    %c0_31 = arith.constant 0 : index
    %55 = vector.load %arg16[%c0_30, %c0_31] : memref<32x32xbf16, #tpu.memory_space<vmem>>, vector<32x32xbf16>
    %cst_32 = arith.constant dense<0.000000e+00> : vector<8x32xf32>
    %56 = tpu.matmul %54, %55, %cst_32 {dimension_numbers = #tpu.dot_dimension_numbers<[1], [0], [0], [1], [0, 0, 1, 1], [], []>} : vector<8x32xbf16>, vector<32x32xbf16>, vector<8x32xf32> -> vector<8x32xf32>
    %c0_33 = arith.constant 0 : index
    %c0_34 = arith.constant 0 : index
    %57 = vector.load %arg17[%c0_33, %c0_34] : memref<1x32xf32, #tpu.memory_space<vmem>>, vector<1x32xf32>
    %58 = vector.broadcast %57 : vector<1x32xf32> to vector<8x32xf32>
    %59 = arith.addf %56, %58 : vector<8x32xf32>
    %60 = vector.shape_cast %59 : vector<8x32xf32> to vector<8x1x32xf32>
    %c0_35 = arith.constant 0 : index
    %c0_36 = arith.constant 0 : index
    %61 = vector.load %arg18[%c0_35, %c0_36] : memref<1x32xf32, #tpu.memory_space<vmem>>, vector<1x32xf32>
    %c0_37 = arith.constant 0 : index
    %c0_38 = arith.constant 0 : index
    %c0_39 = arith.constant 0 : index
    %62 = vector.load %arg4[%c0_37, %c0_38, %c0_39] : memref<8x16x32xbf16, #tpu.memory_space<vmem>>, vector<8x8x32xbf16>
    %63 = arith.extf %62 : vector<8x8x32xbf16> to vector<8x8x32xf32>
    %64 = vector.broadcast %60 : vector<8x1x32xf32> to vector<8x8x32xf32>
    %65 = arith.addf %63, %64 : vector<8x8x32xf32>
    %66 = math.tanh %65 : vector<8x8x32xf32>
    %67 = vector.shape_cast %61 : vector<1x32xf32> to vector<1x1x32xf32>
    %68 = vector.broadcast %67 : vector<1x1x32xf32> to vector<8x8x32xf32>
    %69 = arith.mulf %66, %68 : vector<8x8x32xf32>
    %cst_40 = arith.constant dense<0.000000e+00> : vector<8x8xf32>
    %70 = vector.multi_reduction <add>, %69, %cst_40 [2] : vector<8x8x32xf32> to vector<8x8xf32>
    %c0_41 = arith.constant 0 : index
    %c8 = arith.constant 8 : index
    %c0_42 = arith.constant 0 : index
    %71 = vector.load %arg4[%c0_41, %c8, %c0_42] : memref<8x16x32xbf16, #tpu.memory_space<vmem>>, vector<8x8x32xbf16>
    %72 = arith.extf %71 : vector<8x8x32xbf16> to vector<8x8x32xf32>
    %73 = vector.broadcast %60 : vector<8x1x32xf32> to vector<8x8x32xf32>
    %74 = arith.addf %72, %73 : vector<8x8x32xf32>
    %75 = math.tanh %74 : vector<8x8x32xf32>
    %76 = vector.shape_cast %61 : vector<1x32xf32> to vector<1x1x32xf32>
    %77 = vector.broadcast %76 : vector<1x1x32xf32> to vector<8x8x32xf32>
    %78 = arith.mulf %75, %77 : vector<8x8x32xf32>
    %cst_43 = arith.constant dense<0.000000e+00> : vector<8x8xf32>
    %79 = vector.multi_reduction <add>, %78, %cst_43 [2] : vector<8x8x32xf32> to vector<8x8xf32>
    %80 = tpu.concatenate %70, %79 in 1 : vector<8x8xf32>, vector<8x8xf32> -> vector<8x16xf32>
    %c0_44 = arith.constant 0 : index
    %c0_45 = arith.constant 0 : index
    %81 = vector.load %arg19[%c0_44, %c0_45] : memref<1x1xf32, #tpu.memory_space<vmem>>, vector<1x1xf32>
    %82 = vector.broadcast %81 : vector<1x1xf32> to vector<8x16xf32>
    %83 = arith.addf %80, %82 : vector<8x16xf32>
    %cst_46 = arith.constant dense<0xFF800000> : vector<8xf32>
    %84 = vector.multi_reduction <maximumf>, %83, %cst_46 [1] : vector<8x16xf32> to vector<8xf32>
    %85 = vector.shape_cast %84 : vector<8xf32> to vector<8x1xf32>
    %86 = vector.broadcast %85 : vector<8x1xf32> to vector<8x16xf32>
    %87 = arith.subf %83, %86 : vector<8x16xf32>
    %88 = math.exp %87 : vector<8x16xf32>
    %cst_47 = arith.constant dense<0.000000e+00> : vector<8xf32>
    %89 = vector.multi_reduction <add>, %88, %cst_47 [1] : vector<8x16xf32> to vector<8xf32>
    %90 = vector.shape_cast %89 : vector<8xf32> to vector<8x1xf32>
    %91 = tpu.reciprocal %90 {approx = true} : vector<8x1xf32> -> vector<8x1xf32>
    %92 = vector.broadcast %91 : vector<8x1xf32> to vector<8x16xf32>
    %93 = arith.mulf %88, %92 : vector<8x16xf32>
    %cst_48 = arith.constant 0.000000e+00 : f32
    %94 = vector.broadcast %cst_48 : f32 to vector<8x32xf32>
    %95 = vector.extract_strided_slice %93 {offsets = [0, 0], sizes = [8, 8], strides = [1, 1]} : vector<8x16xf32> to vector<8x8xf32>
    %c0_49 = arith.constant 0 : index
    %c0_50 = arith.constant 0 : index
    %c0_51 = arith.constant 0 : index
    %96 = vector.load %arg3[%c0_49, %c0_50, %c0_51] : memref<8x16x32xbf16, #tpu.memory_space<vmem>>, vector<8x8x32xbf16>
    %97 = arith.extf %96 : vector<8x8x32xbf16> to vector<8x8x32xf32>
    %98 = vector.shape_cast %95 : vector<8x8xf32> to vector<8x8x1xf32>
    %99 = vector.broadcast %98 : vector<8x8x1xf32> to vector<8x8x32xf32>
    %100 = arith.mulf %99, %97 : vector<8x8x32xf32>
    %cst_52 = arith.constant dense<0.000000e+00> : vector<8x32xf32>
    %101 = vector.multi_reduction <add>, %100, %cst_52 [1] : vector<8x8x32xf32> to vector<8x32xf32>
    %102 = arith.addf %94, %101 : vector<8x32xf32>
    %103 = vector.extract_strided_slice %93 {offsets = [0, 8], sizes = [8, 8], strides = [1, 1]} : vector<8x16xf32> to vector<8x8xf32>
    %c0_53 = arith.constant 0 : index
    %c8_54 = arith.constant 8 : index
    %c0_55 = arith.constant 0 : index
    %104 = vector.load %arg3[%c0_53, %c8_54, %c0_55] : memref<8x16x32xbf16, #tpu.memory_space<vmem>>, vector<8x8x32xbf16>
    %105 = arith.extf %104 : vector<8x8x32xbf16> to vector<8x8x32xf32>
    %106 = vector.shape_cast %103 : vector<8x8xf32> to vector<8x8x1xf32>
    %107 = vector.broadcast %106 : vector<8x8x1xf32> to vector<8x8x32xf32>
    %108 = arith.mulf %107, %105 : vector<8x8x32xf32>
    %cst_56 = arith.constant dense<0.000000e+00> : vector<8x32xf32>
    %109 = vector.multi_reduction <add>, %108, %cst_56 [1] : vector<8x8x32xf32> to vector<8x32xf32>
    %110 = arith.addf %102, %109 : vector<8x32xf32>
    %111 = arith.truncf %110 : vector<8x32xf32> to vector<8x32xbf16>
    %c0_57 = arith.constant 0 : index
    %c0_58 = arith.constant 0 : index
    %112 = vector.load %arg12[%c0_57, %c0_58] : memref<32x128xbf16, #tpu.memory_space<vmem>>, vector<32x128xbf16>
    %cst_59 = arith.constant dense<0.000000e+00> : vector<8x128xf32>
    %113 = tpu.matmul %111, %112, %cst_59 {dimension_numbers = #tpu.dot_dimension_numbers<[1], [0], [0], [1], [0, 0, 1, 1], [], []>} : vector<8x32xbf16>, vector<32x128xbf16>, vector<8x128xf32> -> vector<8x128xf32>
    %c0_60 = arith.constant 0 : index
    %c0_61 = arith.constant 0 : index
    %114 = vector.load %arg13[%c0_60, %c0_61] : memref<32x128xbf16, #tpu.memory_space<vmem>>, vector<32x128xbf16>
    %cst_62 = arith.constant dense<0.000000e+00> : vector<8x128xf32>
    %115 = tpu.matmul %54, %114, %cst_62 {dimension_numbers = #tpu.dot_dimension_numbers<[1], [0], [0], [1], [0, 0, 1, 1], [], []>} : vector<8x32xbf16>, vector<32x128xbf16>, vector<8x128xf32> -> vector<8x128xf32>
    %116 = arith.addf %113, %115 : vector<8x128xf32>
    %117 = arith.truncf %3 : vector<8x32xf32> to vector<8x32xbf16>
    %c0_63 = arith.constant 0 : index
    %c0_64 = arith.constant 0 : index
    %118 = vector.load %arg14[%c0_63, %c0_64] : memref<32x128xbf16, #tpu.memory_space<vmem>>, vector<32x128xbf16>
    %cst_65 = arith.constant dense<0.000000e+00> : vector<8x128xf32>
    %119 = tpu.matmul %117, %118, %cst_65 {dimension_numbers = #tpu.dot_dimension_numbers<[1], [0], [0], [1], [0, 0, 1, 1], [], []>} : vector<8x32xbf16>, vector<32x128xbf16>, vector<8x128xf32> -> vector<8x128xf32>
    %120 = arith.addf %116, %119 : vector<8x128xf32>
    %c0_66 = arith.constant 0 : index
    %c0_67 = arith.constant 0 : index
    %121 = vector.load %arg15[%c0_66, %c0_67] : memref<1x128xf32, #tpu.memory_space<vmem>>, vector<1x128xf32>
    %122 = vector.broadcast %121 : vector<1x128xf32> to vector<8x128xf32>
    %123 = arith.addf %120, %122 : vector<8x128xf32>
    %124 = vector.extract_strided_slice %123 {offsets = [0, 0], sizes = [8, 64], strides = [1, 1]} : vector<8x128xf32> to vector<8x64xf32>
    %125 = arith.negf %124 : vector<8x64xf32>
    %126 = math.exp %125 : vector<8x64xf32>
    %cst_68 = arith.constant 1.000000e+00 : f32
    %127 = vector.broadcast %cst_68 : f32 to vector<8x64xf32>
    %128 = arith.addf %127, %126 : vector<8x64xf32>
    %129 = arith.divf %127, %128 : vector<8x64xf32>
    %130 = vector.extract_strided_slice %129 {offsets = [0, 0], sizes = [8, 32], strides = [1, 1]} : vector<8x64xf32> to vector<8x32xf32>
    %131 = vector.extract_strided_slice %129 {offsets = [0, 32], sizes = [8, 32], strides = [1, 1]} : vector<8x64xf32> to vector<8x32xf32>
    %132 = vector.extract_strided_slice %123 {offsets = [0, 64], sizes = [8, 32], strides = [1, 1]} : vector<8x128xf32> to vector<8x32xf32>
    %133 = math.tanh %132 : vector<8x32xf32>
    %134 = vector.extract_strided_slice %123 {offsets = [0, 96], sizes = [8, 32], strides = [1, 1]} : vector<8x128xf32> to vector<8x32xf32>
    %135 = math.tanh %134 : vector<8x32xf32>
    %cst_69 = arith.constant 0.000000e+00 : f32
    %136 = vector.broadcast %cst_69 : f32 to vector<8x32xf32>
    %137 = arith.mulf %135, %136 : vector<8x32xf32>
    %138 = vector.extract_strided_slice %123 {offsets = [0, 96], sizes = [8, 32], strides = [1, 1]} : vector<8x128xf32> to vector<8x32xf32>
    %139 = arith.negf %138 : vector<8x32xf32>
    %140 = math.exp %139 : vector<8x32xf32>
    %cst_70 = arith.constant 1.000000e+00 : f32
    %141 = vector.broadcast %cst_70 : f32 to vector<8x32xf32>
    %142 = arith.addf %141, %140 : vector<8x32xf32>
    %143 = arith.divf %141, %142 : vector<8x32xf32>
    %144 = arith.addf %137, %143 : vector<8x32xf32>
    %145 = arith.mulf %131, %7 : vector<8x32xf32>
    %146 = arith.mulf %130, %133 : vector<8x32xf32>
    %147 = arith.addf %145, %146 : vector<8x32xf32>
    %148 = math.tanh %147 : vector<8x32xf32>
    %149 = arith.mulf %144, %148 : vector<8x32xf32>
    %c0_71 = arith.constant 0 : index
    %c0_72 = arith.constant 0 : index
    %c0_73 = arith.constant 0 : index
    %150 = vector.load %arg20[%c0_71, %c0_72, %c0_73] : memref<2x8x32xf32, #tpu.memory_space<vmem>>, vector<1x8x32xf32>
    %151 = vector.shape_cast %150 : vector<1x8x32xf32> to vector<8x32xf32>
    %152 = vector.shape_cast %53 : vector<8x32xf32> to vector<1x8x32xf32>
    tpu.vector_store %arg20[%c0_71, %c0_72, %c0_73], %152 {strides = array<i32>} : memref<2x8x32xf32, #tpu.memory_space<vmem>>, vector<1x8x32xf32>,
    %c1_74 = arith.constant 1 : index
    %c0_75 = arith.constant 0 : index
    %c0_76 = arith.constant 0 : index
    %153 = vector.load %arg20[%c1_74, %c0_75, %c0_76] : memref<2x8x32xf32, #tpu.memory_space<vmem>>, vector<1x8x32xf32>
    %154 = vector.shape_cast %153 : vector<1x8x32xf32> to vector<8x32xf32>
    %155 = vector.shape_cast %149 : vector<8x32xf32> to vector<1x8x32xf32>
    tpu.vector_store %arg20[%c1_74, %c0_75, %c0_76], %155 {strides = array<i32>} : memref<2x8x32xf32, #tpu.memory_space<vmem>>, vector<1x8x32xf32>,
    %c0_77 = arith.constant 0 : index
    %c0_78 = arith.constant 0 : index
    %c0_79 = arith.constant 0 : index
    %156 = vector.load %arg21[%c0_77, %c0_78, %c0_79] : memref<2x8x32xf32, #tpu.memory_space<vmem>>, vector<1x8x32xf32>
    %157 = vector.shape_cast %156 : vector<1x8x32xf32> to vector<8x32xf32>
    %158 = vector.shape_cast %51 : vector<8x32xf32> to vector<1x8x32xf32>
    tpu.vector_store %arg21[%c0_77, %c0_78, %c0_79], %158 {strides = array<i32>} : memref<2x8x32xf32, #tpu.memory_space<vmem>>, vector<1x8x32xf32>,
    %c1_80 = arith.constant 1 : index
    %c0_81 = arith.constant 0 : index
    %c0_82 = arith.constant 0 : index
    %159 = vector.load %arg21[%c1_80, %c0_81, %c0_82] : memref<2x8x32xf32, #tpu.memory_space<vmem>>, vector<1x8x32xf32>
    %160 = vector.shape_cast %159 : vector<1x8x32xf32> to vector<8x32xf32>
    %161 = vector.shape_cast %147 : vector<8x32xf32> to vector<1x8x32xf32>
    tpu.vector_store %arg21[%c1_80, %c0_81, %c0_82], %161 {strides = array<i32>} : memref<2x8x32xf32, #tpu.memory_space<vmem>>, vector<1x8x32xf32>,
    return
  }
  func.func @transform_0(%arg0: i32) -> (i32, i32) {
    %c0_i32 = arith.constant 0 : i32
    %c0_i32_0 = arith.constant 0 : i32
    return %arg0, %c0_i32 : i32, i32
  }
  func.func @transform_1(%arg0: i32) -> (i32, i32) {
    %c0_i32 = arith.constant 0 : i32
    %c0_i32_0 = arith.constant 0 : i32
    return %arg0, %c0_i32 : i32, i32
  }
  func.func @transform_2(%arg0: i32) -> (i32, i32, i32) {
    %c0_i32 = arith.constant 0 : i32
    %c0_i32_0 = arith.constant 0 : i32
    %c0_i32_1 = arith.constant 0 : i32
    return %arg0, %c0_i32, %c0_i32_0 : i32, i32, i32
  }
  func.func @transform_3(%arg0: i32) -> (i32, i32, i32) {
    %c0_i32 = arith.constant 0 : i32
    %c0_i32_0 = arith.constant 0 : i32
    %c0_i32_1 = arith.constant 0 : i32
    return %arg0, %c0_i32, %c0_i32_0 : i32, i32, i32
  }
  func.func @transform_4(%arg0: i32) -> (i32, i32, i32) {
    %c0_i32 = arith.constant 0 : i32
    %c0_i32_0 = arith.constant 0 : i32
    %c0_i32_1 = arith.constant 0 : i32
    return %c0_i32, %arg0, %c0_i32_0 : i32, i32, i32
  }
  func.func @transform_5(%arg0: i32) -> (i32, i32, i32) {
    %c0_i32 = arith.constant 0 : i32
    %c0_i32_0 = arith.constant 0 : i32
    %c0_i32_1 = arith.constant 0 : i32
    return %c0_i32, %arg0, %c0_i32_0 : i32, i32, i32
  }
  func.func @transform_6(%arg0: i32) -> (i32, i32) {
    %c0_i32 = arith.constant 0 : i32
    %c0_i32_0 = arith.constant 0 : i32
    %c0_i32_1 = arith.constant 0 : i32
    return %c0_i32, %c0_i32_0 : i32, i32
  }
  func.func @transform_7(%arg0: i32) -> (i32, i32) {
    %c0_i32 = arith.constant 0 : i32
    %c0_i32_0 = arith.constant 0 : i32
    %c0_i32_1 = arith.constant 0 : i32
    return %c0_i32, %c0_i32_0 : i32, i32
  }
  func.func @transform_8(%arg0: i32) -> (i32, i32) {
    %c0_i32 = arith.constant 0 : i32
    %c0_i32_0 = arith.constant 0 : i32
    %c0_i32_1 = arith.constant 0 : i32
    return %c0_i32, %c0_i32_0 : i32, i32
  }
  func.func @transform_9(%arg0: i32) -> (i32, i32) {
    %c0_i32 = arith.constant 0 : i32
    %c0_i32_0 = arith.constant 0 : i32
    %c0_i32_1 = arith.constant 0 : i32
    return %c0_i32, %c0_i32_0 : i32, i32
  }
  func.func @transform_10(%arg0: i32) -> (i32, i32) {
    %c0_i32 = arith.constant 0 : i32
    %c0_i32_0 = arith.constant 0 : i32
    %c0_i32_1 = arith.constant 0 : i32
    return %c0_i32, %c0_i32_0 : i32, i32
  }
  func.func @transform_11(%arg0: i32) -> (i32, i32) {
    %c0_i32 = arith.constant 0 : i32
    %c0_i32_0 = arith.constant 0 : i32
    %c0_i32_1 = arith.constant 0 : i32
    return %c0_i32, %c0_i32_0 : i32, i32
  }
  func.func @transform_12(%arg0: i32) -> (i32, i32) {
    %c0_i32 = arith.constant 0 : i32
    %c0_i32_0 = arith.constant 0 : i32
    %c0_i32_1 = arith.constant 0 : i32
    return %c0_i32, %c0_i32_0 : i32, i32
  }
  func.func @transform_13(%arg0: i32) -> (i32, i32) {
    %c0_i32 = arith.constant 0 : i32
    %c0_i32_0 = arith.constant 0 : i32
    %c0_i32_1 = arith.constant 0 : i32
    return %c0_i32, %c0_i32_0 : i32, i32
  }
  func.func @transform_14(%arg0: i32) -> (i32, i32) {
    %c0_i32 = arith.constant 0 : i32
    %c0_i32_0 = arith.constant 0 : i32
    %c0_i32_1 = arith.constant 0 : i32
    return %c0_i32, %c0_i32_0 : i32, i32
  }
  func.func @transform_15(%arg0: i32) -> (i32, i32) {
    %c0_i32 = arith.constant 0 : i32
    %c0_i32_0 = arith.constant 0 : i32
    %c0_i32_1 = arith.constant 0 : i32
    return %c0_i32, %c0_i32_0 : i32, i32
  }
  func.func @transform_16(%arg0: i32) -> (i32, i32) {
    %c0_i32 = arith.constant 0 : i32
    %c0_i32_0 = arith.constant 0 : i32
    %c0_i32_1 = arith.constant 0 : i32
    return %c0_i32, %c0_i32_0 : i32, i32
  }
  func.func @transform_17(%arg0: i32) -> (i32, i32) {
    %c0_i32 = arith.constant 0 : i32
    %c0_i32_0 = arith.constant 0 : i32
    %c0_i32_1 = arith.constant 0 : i32
    return %c0_i32, %c0_i32_0 : i32, i32
  }
  func.func @transform_18(%arg0: i32) -> (i32, i32) {
    %c0_i32 = arith.constant 0 : i32
    %c0_i32_0 = arith.constant 0 : i32
    %c0_i32_1 = arith.constant 0 : i32
    return %c0_i32, %c0_i32_0 : i32, i32
  }
  func.func @transform_19(%arg0: i32) -> (i32, i32, i32) {
    %c0_i32 = arith.constant 0 : i32
    %c0_i32_0 = arith.constant 0 : i32
    %c0_i32_1 = arith.constant 0 : i32
    return %c0_i32, %arg0, %c0_i32_0 : i32, i32, i32
  }
  func.func @transform_20(%arg0: i32) -> (i32, i32, i32) {
    %c0_i32 = arith.constant 0 : i32
    %c0_i32_0 = arith.constant 0 : i32
    %c0_i32_1 = arith.constant 0 : i32
    return %c0_i32, %arg0, %c0_i32_0 : i32, i32, i32
  }
}

</mosaic_0001>

<bundles_post_ra>
// kernel: tpu_custom_call.1
= control target key start
LH: loop header
LB: loop body
LE: loop exit
PB: predicated region body
PF: predicated region fallthrough
CT: control target
= control target key end

     0   :  { %s2259_s0 = inlined_call_operand.hbm [shape: f32[8,32], index: 0, kind: input, shape index: {}]   ;;  %s2260_s1 = inlined_call_operand.hbm [shape: f32[8,32], index: 1, kind: input, shape index: {}]   ;;  %s2261_s2 = inlined_call_operand.hbm [shape: bf16[8,16,32], index: 2, kind: input, shape index: {}]   ;;  %s2262_s3 = inlined_call_operand.hbm [shape: bf16[8,16,32], index: 3, kind: input, shape index: {}]   ;;  %s2263_s4 = inlined_call_operand.hbm [shape: f32[2,8,32], index: 4, kind: input, shape index: {}]   ;;  %s2264_s5 = inlined_call_operand.hbm [shape: f32[2,8,32], index: 5, kind: input, shape index: {}]   ;;  %s2265_s6 = inlined_call_operand.hbm [shape: bf16[32,128], index: 6, kind: input, shape index: {}]   ;;  %s2266_s7 = inlined_call_operand.hbm [shape: bf16[32,128], index: 7, kind: input, shape index: {}]   ;;  %s2267_s8 = inlined_call_operand.hbm [shape: bf16[32,128], index: 8, kind: input, shape index: {}]   ;;  %s2268_s9 = inlined_call_operand.hbm [shape: bf16[32,128], index: 9, kind: input, shape index: {}]   ;;  %s2269_s10 = inlined_call_operand.hbm [shape: f32[1,128], index: 10, kind: input, shape index: {}]   ;;  %s2270_s11 = inlined_call_operand.hbm [shape: bf16[32,128], index: 11, kind: input, shape index: {}]   ;;  %s2271_s12 = inlined_call_operand.hbm [shape: bf16[32,128], index: 12, kind: input, shape index: {}]   ;;  %s2272_s13 = inlined_call_operand.hbm [shape: bf16[32,128], index: 13, kind: input, shape index: {}]   ;;  %s2273_s14 = inlined_call_operand.hbm [shape: f32[1,128], index: 14, kind: input, shape index: {}]   ;;  %s2274_s15 = inlined_call_operand.vmem [shape: bf16[32,32], index: 15, kind: input, shape index: {}]   ;;  %s2275_s16 = inlined_call_operand.vmem [shape: f32[1,32], index: 16, kind: input, shape index: {}]   ;;  %s2276_s17 = inlined_call_operand.vmem [shape: f32[1,32], index: 17, kind: input, shape index: {}]   ;;  %s2277_s18 = inlined_call_operand.<no memory space> [shape: f32[1,1], index: 18, kind: input, shape index: {}]   ;;  %s2278_s19 = inlined_call_operand.hbm [shape: f32[2,8,32], index: 19, kind: output, shape index: {0}]   ;;  %s2279_s20 = inlined_call_operand.hbm [shape: f32[2,8,32], index: 20, kind: output, shape index: {1}]  }
   0x1   :  { %2280 = sst [smem:[#allocation40_spill]] %s2259_s0  ;;  %v26_v0 = vstv %s2277_s18 }
   0x2   :  { %2281 = sst [smem:[#allocation41_spill]] %s2260_s1  ;;  %27 = vst [vmem:[#allocation2] sm:$0x1] %v26_v0 }
   0x3   :  { %2282 = sst [smem:[#allocation42_spill]] %s2261_s2 }
   0x4   :  { %2283 = sst [smem:[#allocation43_spill]] %s2262_s3 }
   0x5   :  { %2284 = sst [smem:[#allocation44_spill]] %s2263_s4 }
   0x6   :  { %28 = vsyncpa [#allocation4], 0 }
   0x7   :  { %29 = vsyncpa [#allocation7], 0 }
   0x8   :  { %30 = vsyncpa [#allocation10], 0 }
   0x9   :  { %31 = vsyncpa [#allocation13], 0 }
   0xa   :  { %32 = vsyncpa [#allocation16], 0 }
   0xb   :  { %33 = vsyncpa [#allocation19], 0 }
   0xc   :  { %34 = vsyncpa [#allocation22], 0 }
   0xd   :  { %35 = vsyncpa [#allocation25], 0 }
   0xe   :  { %36 = vsyncpa [#allocation5], 0  ;;  %s2285_s2 = sld [smem:[#allocation41_spill]] }
  0x14   :  { %s54_s25 = sshll.u32 %s2285_s2, 4  ;;  %s55_s25 = int_to_ptr.hbm [resolvable:$true] %s54_s25 }
  0x15   :  { %37 = vsyncpa [#allocation29], 0  ;;  %s1886_s3 = smov [#allocation6]   ;;  %s2286_s28 = sld [smem:[#allocation43_spill]] }
  0x16   :  { %s56_s26 = sshll.u32 %s1886_s3, 4  ;;  %s1887_s29 = smov [#allocation9]   ;;  %s57_s26 = int_to_ptr.vmem [resolvable:$true] %s56_s26 }
  0x17   :  { %59 = dma.hbm_to_vmem [thread:$0]  %s55_s25, 128, %s57_s26, [#allocation7]  }
  0x18   :  { %s79_s30 = sshll.u32 %s1887_s29, 4  ;;  %s1888_s0 = smov 64   ;;  %s80_s30 = int_to_ptr.vmem [resolvable:$true] %s79_s30 }
  0x19   :  { %s1889_s21 = smov 4   ;;  %s103_s23 = sshll.u32 %s2264_s5, 4  ;;  %s104_s23 = int_to_ptr.hbm [resolvable:$true] %s103_s23 }
  0x1a   :  { %s1890_s24 = smov [#allocation12]   ;;  %s129_s26 = sshll.u32 %s2266_s7, 4  ;;  %s130_s26 = int_to_ptr.hbm [resolvable:$true] %s129_s26 }
  0x1b   :  { %s77_s4 = sshll.u32 %s2286_s28, 4  ;;  %s105_s2 = sshll.u32 %s1890_s24, 4  ;;  %s78_s4 = int_to_ptr.hbm [resolvable:$true] %s77_s4  ;;  %s106_s2 = int_to_ptr.vmem [resolvable:$true] %s105_s2 }
  0x1c   :  { %85 = dma.hbm_to_vmem [thread:$0]  %s78_s4, 1024, %s80_s30, [#allocation10], %s1888_s0, %s1888_s0, %s1889_s21  }
  0x1d   :  { %s1891_s18 = smov 128   ;;  %s1892_s27 = smov 8  }
  0x1e   :  { %111 = dma.hbm_to_vmem [thread:$0]  %s104_s23, 256, %s106_s2, [#allocation13], %s1891_s18, %s1891_s18, %s1892_s27  }
  0x1f   :  { %s1893_s28 = smov [#allocation15]   ;;  %s155_s5 = sshll.u32 %s2268_s9, 4  ;;  %s156_s5 = int_to_ptr.hbm [resolvable:$true] %s155_s5 }
  0x20   :  { %s131_s4 = sshll.u32 %s1893_s28, 4  ;;  %s179_s22 = sshll.u32 %s2270_s11, 4  ;;  %s132_s4 = int_to_ptr.vmem [resolvable:$true] %s131_s4  ;;  %s180_s22 = int_to_ptr.hbm [resolvable:$true] %s179_s22 }
  0x21   :  { %137 = dma.hbm_to_vmem [thread:$0]  %s130_s26, 256, %s132_s4, [#allocation16], %s1888_s0, %s1888_s0, %s1889_s21  }
  0x22   :  { %s1894_s24 = smov [#allocation18]   ;;  %s1895_s23 = smov [#allocation21]  }
  0x23   :  { %s157_s25 = sshll.u32 %s1894_s24, 4  ;;  %s181_s9 = sshll.u32 %s1895_s23, 4  ;;  %s158_s25 = int_to_ptr.vmem [resolvable:$true] %s157_s25  ;;  %s182_s9 = int_to_ptr.vmem [resolvable:$true] %s181_s9 }
  0x24   :  { %163 = dma.hbm_to_vmem [thread:$0]  %s156_s5, 256, %s158_s25, [#allocation19], %s1888_s0, %s1888_s0, %s1889_s21  }
  0x25   :  { %s205_s28 = sshll.u32 %s2272_s13, 4  ;;  %s2287_s4 = sld [smem:[#allocation40_spill]]  ;;  %s206_s28 = int_to_ptr.hbm [resolvable:$true] %s205_s28 }
  0x26   :  { %187 = dma.hbm_to_vmem [thread:$0]  %s180_s22, 256, %s182_s9, [#allocation22], %s1888_s0, %s1888_s0, %s1889_s21  }
  0x27   :  { %s1896_s30 = smov [#allocation24]   ;;  %s1897_s5 = smov [#allocation3]  }
  0x28   :  { %s207_s7 = sshll.u32 %s1896_s30, 4  ;;  %s45_s13 = sshll.u32 %s1897_s5, 4  ;;  %s208_s7 = int_to_ptr.vmem [resolvable:$true] %s207_s7  ;;  %s46_s13 = int_to_ptr.vmem [resolvable:$true] %s45_s13 }
  0x29   :  { %213 = dma.hbm_to_vmem [thread:$0]  %s206_s28, 256, %s208_s7, [#allocation25], %s1888_s0, %s1888_s0, %s1889_s21  }
  0x2a   :  { %s2288_s25 = sld [smem:[#allocation42_spill]]  ;;  %s1898_s11 = smov [#allocation8]  }
  0x2b   :  { %s43_s29 = sshll.u32 %s2287_s4, 4  ;;  %s2289_s2 = sld [smem:[#allocation44_spill]]  ;;  %s44_s29 = int_to_ptr.hbm [resolvable:$true] %s43_s29 }
  0x2c   :  { %48 = dma.hbm_to_vmem [thread:$0]  %s44_s29, 128, %s46_s13, [#allocation4]  }
  0x2d   :  { %s66_s26 = sshll.u32 %s1898_s11, 4  ;;  %s1899_s28 = smov [#allocation11]   ;;  %s67_s26 = int_to_ptr.vmem [resolvable:$true] %s66_s26 }
  0x2e   :  { %s92_s4 = sshll.u32 %s1899_s28, 4  ;;  %s116_s5 = sshll.u32 %s2265_s6, 4  ;;  %s93_s4 = int_to_ptr.vmem [resolvable:$true] %s92_s4  ;;  %s117_s5 = int_to_ptr.hbm [resolvable:$true] %s116_s5 }
  0x2f   :  { %s142_s1 = sshll.u32 %s2267_s8, 4  ;;  %s1900_s24 = smov [#allocation14]   ;;  %s143_s1 = int_to_ptr.hbm [resolvable:$true] %s142_s1 }
  0x30   :  { %s64_s23 = sshll.u32 %s2288_s25, 4  ;;  %s118_s25 = sshll.u32 %s1900_s24, 4  ;;  %s65_s23 = int_to_ptr.hbm [resolvable:$true] %s64_s23  ;;  %s119_s25 = int_to_ptr.vmem [resolvable:$true] %s118_s25 }
  0x31   :  { %s90_s3 = sshll.u32 %s2289_s2, 4  ;;  %s169_s2 = sshll.u32 %s2269_s10, 4  ;;  %s91_s3 = int_to_ptr.hbm [resolvable:$true] %s90_s3  ;;  %s170_s2 = int_to_ptr.hbm [resolvable:$true] %s169_s2 }
  0x32   :  { %72 = dma.hbm_to_vmem [thread:$0]  %s65_s23, 1024, %s67_s26, [#allocation7], %s1888_s0, %s1888_s0, %s1889_s21  }
  0x33   :  { %98 = dma.hbm_to_vmem [thread:$0]  %s91_s3, 256, %s93_s4, [#allocation10], %s1891_s18, %s1891_s18, %s1892_s27  }
  0x34   :  { %124 = dma.hbm_to_vmem [thread:$0]  %s117_s5, 256, %s119_s25, [#allocation13], %s1888_s0, %s1888_s0, %s1889_s21  }
  0x35   :  { %s1901_s23 = smov [#allocation17]   ;;  %s192_s11 = sshll.u32 %s2271_s12, 4  ;;  %s193_s11 = int_to_ptr.hbm [resolvable:$true] %s192_s11 }
  0x36   :  { %s144_s6 = sshll.u32 %s1901_s23, 4  ;;  %s1902_s26 = smov [#allocation20]   ;;  %s145_s6 = int_to_ptr.vmem [resolvable:$true] %s144_s6 }
  0x37   :  { %150 = dma.hbm_to_vmem [thread:$0]  %s143_s1, 256, %s145_s6, [#allocation16], %s1888_s0, %s1888_s0, %s1889_s21  }
  0x38   :  { %s171_s28 = sshll.u32 %s1902_s26, 4  ;;  %s1903_s4 = smov [#allocation23]   ;;  %s172_s28 = int_to_ptr.vmem [resolvable:$true] %s171_s28 }
  0x39   :  { %174 = dma.hbm_to_vmem [thread:$0]  %s170_s2, 16, %s172_s28, [#allocation19]  }
  0x3a   :  { %s194_s30 = sshll.u32 %s1903_s4, 4  ;;  %s219_s10 = sshll.u32 %s2273_s14, 4  ;;  %s195_s30 = int_to_ptr.vmem [resolvable:$true] %s194_s30  ;;  %s220_s10 = int_to_ptr.hbm [resolvable:$true] %s219_s10 }
  0x3b   :  { %200 = dma.hbm_to_vmem [thread:$0]  %s193_s11, 256, %s195_s30, [#allocation22], %s1888_s0, %s1888_s0, %s1889_s21  }
  0x3c   :  { %s1904_s29 = smov [#allocation26]  }
  0x3d   :  { %s221_s13 = sshll.u32 %s1904_s29, 4  ;;  %s222_s13 = int_to_ptr.vmem [resolvable:$true] %s221_s13 }
  0x3e   :  { %224 = dma.hbm_to_vmem [thread:$0]  %s220_s10, 16, %s222_s13, [#allocation25]  }
  0x3f   :  { %1866 = dma.done.wait [#allocation4], 128  }
  0x40   :  { %1867 = vsyncadd [#allocation4], 4294967168 }
  0x41   :  { %1868 = dma.done.wait [#allocation7], 1152  }
  0x42   :  { %1869 = vsyncadd [#allocation7], 4294966144 }
  0x43   :  { %1870 = dma.done.wait [#allocation10], 1280  }
  0x44   :  { %1871 = vsyncadd [#allocation10], 4294966016 }
  0x45   :  { %1872 = dma.done.wait [#allocation13], 512  }
  0x46   :  { %1873 = vsyncadd [#allocation13], 4294966784 }
  0x47   :  { %1874 = dma.done.wait [#allocation16], 512  }
  0x48   :  { %1875 = vsyncadd [#allocation16], 4294966784 }
  0x49   :  { %1876 = dma.done.wait [#allocation19], 272  }
  0x4a   :  { %1877 = vsyncadd [#allocation19], 4294967024 }
  0x4b   :  { %1878 = dma.done.wait [#allocation22], 512  }
  0x4c   :  { %1879 = vsyncadd [#allocation22], 4294966784 }
  0x4d   :  { %1880 = dma.done.wait [#allocation25], 272  }
  0x4e   :  { %1881 = vsyncadd [#allocation25], 4294967024  ;;  %v1355_v1 = vld [vmem:[#allocation15 + $0x8] sm:$0xff]  ;;  %v1353_v2 = vld [vmem:[#allocation14 + $0x8] sm:$0xff]  ;;  %vm323_vm0 = vcmask 261120   ;;  %s1905_s12 = smov 32  }
  0x4f   :  { %v1357_v3 = vld [vmem:[#allocation17 + $0x8] sm:$0xff]  ;;  %v1359_v4 = vld [vmem:[#allocation18 + $0x8] sm:$0xff]  ;;  %v1354_v5 = vld [vmem:[#allocation15] sm:$0xff]  ;;  %333 = vmatpush.bf16.msra.mxu0 %v1355_v1  ;;  %361 = vmatpush.bf16.msra.mxu1 %v1353_v2  ;;  %vm699_vm5 = vcmask 1041409   ;;  %vm701_vm6 = vcmask 1042434   ;;  %vm703_vm7 = vcmask 1043459  }
  0x50   :  { %v1352_v6 = vld [vmem:[#allocation14] sm:$0xff]  ;;  %v1358_v8 = vld [vmem:[#allocation18] sm:$0xff]  ;;  %v305_v9 = vld [vmem:[#allocation6] sm:$0xff]  ;;  %395 = vmatpush.bf16.msra.mxu2 %v1357_v3  ;;  %429 = vmatpush.bf16.msra.mxu3 %v1359_v4  ;;  %vm705_vm8 = vcmask 1044484   ;;  %vm707_vm9 = vcmask 1045509   ;;  %vm709_vm10 = vcmask 1046534  }
  0x51   :  { %v1356_v7 = vld [vmem:[#allocation17] sm:$0xff]  ;;  %v296_v10 = vld [vmem:[#allocation11 + $0x8] sm:$0xff]  ;;  %v368_v11 = vld [vmem:[#allocation3] sm:$0xff]  ;;  %v306_v13 = vpack.c.bf16 %v305_v9, %v305_v9  ;;  %vm711_vm11 = vcmask 1047559   ;;  %vm739_vm12 = vcmask 64512   ;;  %vm749_vm13 = vcmask 130048  }
  0x52   :  { %v294_v12 = vld [vmem:[#allocation11] sm:$0xff]  ;;  %v2096_v14 = vpack.c.bf16 %v296_v10, %v296_v10  ;;  %v369_v15 = vpack.c.bf16 %v368_v11, %v368_v11  ;;  %v297_v31 = vld [vmem:[#allocation12] sm:$0xff]  ;;  %v1402_v62 = vld [vmem:[%s2275_s16] ss:$0 sm:$0xff]  ;;  %s1908_s6 = smov [#allocation28]   ;;  %s1253_s8 = sshll.u32 %s2279_s20, 4  ;;  %s1254_s8 = int_to_ptr.hbm [resolvable:$true] %s1253_s8 }
  0x53   :  { %334 = vmatpush.bf16.msra.mxu0 %v1354_v5  ;;  %362 = vmatpush.bf16.msra.mxu1 %v1352_v6  ;;  %v403_v16 = vpack.c.bf16 %v294_v12, %v294_v12  ;;  %v1401_v23 = vld [vmem:[#allocation20] ss:$0 sm:$0xff]  ;;  %v1361_v52 = vld [vmem:[%s2274_s15 + $0x8] sm:$0xff]  ;;  %v1360_v54 = vld [vmem:[%s2274_s15] sm:$0xff]  ;;  %s1251_s22 = sshll.u32 %s1908_s6, 4  ;;  %s1240_s28 = sshll.u32 %s2278_s19, 4  ;;  %s1252_s22 = int_to_ptr.vmem [resolvable:$true] %s1251_s22  ;;  %s1241_s28 = int_to_ptr.hbm [resolvable:$true] %s1240_s28 }
  0x54   :  { %396 = vmatpush.bf16.msra.mxu2 %v1356_v7  ;;  %430 = vmatpush.bf16.msra.mxu3 %v1358_v8  ;;  %v1365_v53 = vld [vmem:[#allocation23 + $0x8] sm:$0xff]  ;;  %v1364_v55 = vld [vmem:[#allocation23] sm:$0xff]  ;;  %v617_v63 = vld [vmem:[#allocation9 + $0x4] sm:$0xff]  }
  0x55   :  { %v534_v0 = vld [vmem:[#allocation9] sm:$0xf]  ;;  %v2126_v1 = vld [vmem:[#allocation9 + $0x18] sm:$0xff]   ;;  %v625_v5 = vunpack.c.l.bf16 %v617_v63  ;;  %v618_v7 = vld [vmem:[#allocation9 + $0xc] sm:$0xff]   ;;  %v543_v9 = vunpack.c.h.bf16 %v617_v63 }
  0x56   :  { %1286 = vmatmul.msk.bf16.vlgmr.msra.gmra.mxu0 %vm323_vm0, %v306_v13  ;;  %1295 = vmatmul.msk.bf16.vlgmr.msra.gmra.mxu1 %vm323_vm0, %v2096_v14  ;;  %v542_v6 = vunpack.c.l.bf16 %v534_v0  ;;  %v619_v8 = vld [vmem:[#allocation9 + $0x14] sm:$0xf]  ;;  %v545_v10 = vunpack.c.l.bf16 %v2126_v1 }
  0x57   :  { %1304 = vmatmul.msk.bf16.vlgmr.msra.gmra.mxu2 %vm323_vm0, %v369_v15  ;;  %1313 = vmatmul.msk.bf16.vlgmr.msra.gmra.mxu3 %vm323_vm0, %v403_v16  ;;  %v626_v16 = vunpack.c.l.bf16 %v618_v7 }
  0x58   :  { %518 = vmatpush.bf16.msrb.mxu0 %v1361_v52  ;;  %1075 = vmatpush.bf16.msrb.mxu1 %v1365_v53 }
  0x5c   :  { %519 = vmatpush.bf16.msrb.mxu0 %v1360_v54  ;;  %1076 = vmatpush.bf16.msrb.mxu1 %v1364_v55  ;;  %v622_v55 = vld [vmem:[#allocation9 + $0x2c] sm:$0xf] }
  0x5d   :  { %v630_v0 = vunpack.c.l.bf16 %v622_v55 }
  0xd3   :  { %v336_v17 = vpop.f32.mrf.mxu0  ;;  %v364_v18 = vpop.f32.mrf.mxu1 }
  0xd4   :  { %v365_v19 = vadd.f32 %v364_v18, %v336_v17  ;;  %v627_v17 = vunpack.c.l.bf16 %v619_v8 }
  0xda   :  { %v398_v20 = vpop.f32.mrf.mxu2  ;;  %v432_v21 = vpop.f32.mrf.mxu3 }
  0xdb   :  { %v402_v22 = vadd.f32 %v398_v20, %v365_v19  ;;  %v338_v24 = vpop.f32.mrf.mxu0  ;;  %v366_v25 = vpop.f32.mrf.mxu1 }
  0xdd   :  { %v436_v26 = vadd.f32 %v432_v21, %v402_v22 }
  0xdf   :  { %v441_v27 = vadd.f32 %v1401_v23, %v436_v26 }
  0xe1   :  { %1406 = vtanh.f32 %v441_v27  ;;  %v1314_v32 = vmul.f32 -1.442695, %v441_v27 }
  0xe2   :  { %v400_v28 = vpop.f32.mrf.mxu2  ;;  %v434_v29 = vpop.f32.mrf.mxu3 }
  0xe3   :  { %1408 = vpow2.f32 %v1314_v32  ;;  %v2138_v29 = vld [vmem:[#allocation9 + $0x24] sm:$0xff]   ;;  %v538_v32 = vld [vmem:[#allocation9 + $0x20] sm:$0xf] }
  0xe7   :  { %v1407_v30 = vpop.eup %1406 }
  0xe8   :  { %470 = vrot.lane.b32.xlu0 %v1407_v30, %s1888_s0  ;;  %v462_v56 = vmul.f32 0.0, %v1407_v30 }
  0xe9   :  { %v1409_v33 = vpop.eup %1408 }
  0xea   :  { %v445_v34 = vadd.f32 1.0, %v1409_v33 }
  0xec   :  { %1410 = vrcp.f32 %v445_v34  ;;  %v457_v40 = vand.u32 2147483648, %v445_v34  ;;  %vm451_vm2 = vweird.f32 %v445_v34  ;;  %v455_v41 = vand.u32 2147483647, %v445_v34 }
  0xee   :  { %v458_v43 = vor.u32 1.1754944e-38, %v457_v40  ;;  %vm456_vm4 = vcmp.eq.f32.partialorder %v455_v41, 8.507059e+37 }
  0xf0   :  { %465 = vrot.lane.b32.xlu0 %v297_v31, %s1905_s12  ;;  %v2143_v31 = vld [vmem:[%s2276_s17] ss:$0 sm:$0xff]  ;;  %s1907_s17 = smov 96  }
  0xf2   :  { %v1411_v35 = vpop.eup %1410 }
  0xf3   :  { %v447_v36 = vmul.f32 %v1411_v35, %v445_v34  ;;  %vm452_vm1 = vweird.f32 %v1411_v35  ;;  %v629_v34 = vunpack.c.l.bf16 %v2138_v29 }
  0xf4   :  { %vm453_vm3 = vmor %vm451_vm2, %vm452_vm1 }
  0xf5   :  { %v448_v37 = vsub.f32 1.0, %v447_v36 }
  0xf7   :  { %v449_v38 = vmul.f32 %v1411_v35, %v448_v37  ;;  %v546_v37 = vunpack.c.l.bf16 %v538_v32 }
  0xf9   :  { %v450_v39 = vadd.f32 %v1411_v35, %v449_v38 }
  0xfb   :  { %v454_v42 = vsel %vm453_vm3, %v1411_v35, %v450_v39  ;;  %v544_v35 = vunpack.c.h.bf16 %v618_v7 }
  0xfc   :  { %v459_v45 = vsel %vm456_vm4, %v458_v43, %v454_v42 }
  0xfd   :  { %v463_v57 = vadd.f32 %v462_v56, %v459_v45 }
 0x15a   :  { %v471_v44 = vpop.permute.xlu0 %470 }
 0x15b   :  { %v473_v46 = vmul.f32 %v471_v44, %v459_v45 }
 0x15d   :  { %475 = vrot.lane.b32.xlu1 %v473_v46, %s1905_s12 }
 0x162   :  { %v466_v47 = vpop.permute.xlu0 %465 }
 0x163   :  { %v468_v48 = vmul.f32 %v466_v47, %v459_v45  ;;  %v2151_v47 = vld [vmem:[#allocation9 + $0x30] sm:$0xff]  }
 0x1cf   :  { %v476_v49 = vpop.permute.xlu1 %475 }
 0x1d0   :  { %v2106_v50 = vadd.f32 %v476_v49, %v468_v48 }
 0x1d2   :  { %1412 = vtanh.f32 %v2106_v50 }
 0x1d8   :  { %v1413_v51 = vpop.eup %1412 }
 0x1d9   :  { %481 = vrot.lane.b32.xlu1 %v1413_v51, %s1888_s0 }
 0x24b   :  { %v482_v58 = vpop.permute.xlu1 %481 }
 0x24c   :  { %v2116_v59 = vmul.f32 %v482_v58, %v463_v57  ;;  %v548_v57 = vunpack.c.l.bf16 %v2151_v47 }
 0x24e   :  { %v485_v60 = vpack.c.bf16 %v2116_v59, %v2116_v59 }
 0x250   :  { %495 = vrot.lane.b32.xlu2 %v485_v60, %s1905_s12 }
 0x2aa   :  { %v496_v61 = vpop.permute.xlu2 %495 }
 0x2ab   :  { %1323 = vmatmul.msk.bf16.vlgmr.msrb.gmra.mxu0 %vm323_vm0, %v496_v61  ;;  %1332 = vmatmul.msk.bf16.vlgmr.msrb.gmra.mxu1 %vm323_vm0, %v496_v61  ;;  %v628_v61 = vunpack.c.h.bf16 %v2126_v1 }
 0x328   :  { %v521_v2 = vpop.f32.mrf.mxu0  ;;  %v2128_v3 = vpop.f32.mrf.mxu1 }
 0x329   :  { %v2130_v4 = vadd.f32 %v1402_v62, %v521_v2 }
 0x32b   :  { %v550_v11 = vperm.slane %v2130_v4, 0  ;;  %v526_v12 = vrot.slane %v2130_v4, 1  ;;  %v528_v13 = vrot.slane %v2130_v4, 3  ;;  %v527_v15 = vrot.slane %v2130_v4, 2 }
 0x32c   :  { %v529_v25 = vrot.slane %v2130_v4, 4  ;;  %v531_v43 = vrot.slane %v2130_v4, 6  ;;  %v530_v52 = vrot.slane %v2130_v4, 5 }
 0x32d   :  { %v633_v18 = vadd.f32 %v625_v5, %v550_v11  ;;  %v566_v19 = vadd.f32 %v550_v11, %v542_v6  ;;  %v551_v20 = vperm.slane %v526_v12, 0  ;;  %v553_v21 = vperm.slane %v528_v13, 0 }
 0x32e   :  { %v552_v22 = vperm.slane %v527_v15, 0  ;;  %v554_v33 = vperm.slane %v529_v25, 0  ;;  %v556_v58 = vperm.slane %v531_v43, 0  ;;  %v555_v63 = vperm.slane %v530_v52, 0 }
 0x32f   :  { %1414 = vtanh.f32 %v633_v18  ;;  %v567_v23 = vadd.f32 %v551_v20, %v543_v9  ;;  %v569_v24 = vadd.f32 %v553_v21, %v545_v10  ;;  %v634_v28 = vadd.f32 %v626_v16, %v551_v20  ;;  %v624_v9 = vld [vmem:[#allocation9 + $0x38] sm:$0xff]  }
 0x330   :  { %v523_v26 = vpop.f32.mrf.mxu0  ;;  %v1080_v27 = vpop.f32.mrf.mxu1  ;;  %1416 = vtanh.f32 %v566_v19  ;;  %v635_v30 = vadd.f32 %v627_v17, %v552_v22  ;;  %v637_v42 = vadd.f32 %v629_v34, %v554_v33  ;;  %v568_v46 = vadd.f32 %v552_v22, %v544_v35 }
 0x331   :  { %1418 = vtanh.f32 %v567_v23  ;;  %v570_v51 = vadd.f32 %v554_v33, %v546_v37  ;;  %v572_v5 = vadd.f32 %v556_v58, %v548_v57  ;;  %v532_v6 = vrot.slane %v2130_v4, 7 }
 0x332   :  { %1420 = vtanh.f32 %v569_v24  ;;  %v636_v8 = vadd.f32 %v628_v61, %v553_v21  ;;  %v638_v12 = vadd.f32 %v630_v0, %v555_v63  ;;  %v632_v17 = vunpack.c.h.bf16 %v624_v9 }
 0x333   :  { %1422 = vtanh.f32 %v634_v28  ;;  %v557_v16 = vperm.slane %v532_v6, 0  ;;  %v1906_v18 = vmov 0   ;;  %v547_v19 = vunpack.c.h.bf16 %v2138_v29 }
 0x334   :  { %1424 = vtanh.f32 %v635_v30  ;;  %1392 = vset.pattern.permute.xlu2 %v1906_v18  ;;  %v549_v21 = vunpack.c.l.bf16 %v624_v9  ;;  %v631_v34 = vunpack.c.h.bf16 %v2151_v47 }
 0x335   :  { %v1415_v36 = vpop.eup %1414  ;;  %1426 = vtanh.f32 %v637_v42  ;;  %v640_v23 = vadd.f32 %v632_v17, %v557_v16  ;;  %v571_v25 = vadd.f32 %v555_v63, %v547_v19  ;;  %v689_v63 = vlaneseq }
 0x336   :  { %v1417_v38 = vpop.eup %1416  ;;  %v649_v39 = vmul.f32 %v1415_v36, %v2143_v31  ;;  %1428 = vtanh.f32 %v568_v46  ;;  %v573_v28 = vadd.f32 %v557_v16, %v549_v21 }
 0x337   :  { %v1419_v40 = vpop.eup %1418  ;;  %v585_v41 = vmul.f32 %v1417_v38, %v2143_v31  ;;  %1430 = vtanh.f32 %v570_v51  ;;  %v639_v38 = vadd.f32 %v631_v34, %v556_v58 }
 0x338   :  { %v657_v44 = vsel %vm323_vm0, %v649_v39, 0.0  ;;  %v586_v45 = vmul.f32 %v1419_v40, %v2143_v31  ;;  %v1421_v48 = vpop.eup %1420  ;;  %1432 = vtanh.f32 %v572_v5  ;;  %v690_v5 = vand.u32 127, %v689_v63 }
 0x339   :  { %658 = vadd.xlane.f32.xlu1 %v657_v44  ;;  %v593_v49 = vsel %vm323_vm0, %v585_v41, 0.0  ;;  %v1423_v53 = vpop.eup %1422  ;;  %v588_v60 = vmul.f32 %v1421_v48, %v2143_v31  ;;  %1434 = vtanh.f32 %v636_v8 }
 0x33a   :  { %594 = vadd.xlane.f32.xlu2 %v593_v49  ;;  %v596_v54 = vsel %vm323_vm0, %v586_v45, 0.0  ;;  %v1425_v56 = vpop.eup %1424  ;;  %v650_v62 = vmul.f32 %v1423_v53, %v2143_v31  ;;  %1436 = vtanh.f32 %v638_v12 }
 0x33b   :  { %597 = vadd.xlane.f32.xlu0 %v596_v54  ;;  %v651_v2 = vmul.f32 %v1425_v56, %v2143_v31  ;;  %v602_v7 = vsel %vm323_vm0, %v588_v60, 0.0  ;;  %v1427_v10 = vpop.eup %1426  ;;  %1438 = vtanh.f32 %v640_v23  ;;  %v1404_v54 = vld [vmem:[#allocation2] ss:$0 sm:$0xff] }
 0x33c   :  { %v660_v11 = vsel %vm323_vm0, %v650_v62, 0.0  ;;  %v1429_v1 = vpop.eup %1428  ;;  %v653_v4 = vmul.f32 %v1427_v10, %v2143_v31  ;;  %1440 = vtanh.f32 %v571_v25 }
 0x33d   :  { %v663_v13 = vsel %vm323_vm0, %v651_v2, 0.0  ;;  %v1431_v15 = vpop.eup %1430  ;;  %v587_v20 = vmul.f32 %v1429_v1, %v2143_v31  ;;  %1442 = vtanh.f32 %v573_v28 }
 0x33e   :  { %v589_v22 = vmul.f32 %v1431_v15, %v2143_v31  ;;  %v669_v24 = vsel %vm323_vm0, %v653_v4, 0.0  ;;  %v1433_v26 = vpop.eup %1432  ;;  %1444 = vtanh.f32 %v639_v38 }
 0x33f   :  { %v599_v27 = vsel %vm323_vm0, %v587_v20, 0.0  ;;  %v1435_v30 = vpop.eup %1434  ;;  %v591_v33 = vmul.f32 %v1433_v26, %v2143_v31 }
 0x340   :  { %v605_v32 = vsel %vm323_vm0, %v589_v22, 0.0  ;;  %v1437_v29 = vpop.eup %1436  ;;  %v652_v35 = vmul.f32 %v1435_v30, %v2143_v31 }
 0x341   :  { %603 = vadd.xlane.f32.xlu1 %v602_v7  ;;  %v654_v36 = vmul.f32 %v1437_v29, %v2143_v31  ;;  %v611_v37 = vsel %vm323_vm0, %v591_v33, 0.0  ;;  %v1439_v39 = vpop.eup %1438  ;;  %v722_v7 = vadd.s32 4294967288, %v690_v5 }
 0x342   :  { %661 = vadd.xlane.f32.xlu2 %v660_v11  ;;  %v666_v40 = vsel %vm323_vm0, %v652_v35, 0.0  ;;  %v1441_v41 = vpop.eup %1440  ;;  %v656_v44 = vmul.f32 %v1439_v39, %v2143_v31 }
 0x343   :  { %664 = vadd.xlane.f32.xlu0 %v663_v13  ;;  %v672_v42 = vsel %vm323_vm0, %v654_v36, 0.0  ;;  %v1443_v43 = vpop.eup %1442  ;;  %v590_v45 = vmul.f32 %v1441_v41, %v2143_v31 }
 0x344   :  { %v592_v46 = vmul.f32 %v1443_v43, %v2143_v31  ;;  %v678_v47 = vsel %vm323_vm0, %v656_v44, 0.0  ;;  %v1445_v49 = vpop.eup %1444 }
 0x345   :  { %v608_v48 = vsel %vm323_vm0, %v590_v45, 0.0  ;;  %v655_v52 = vmul.f32 %v1445_v49, %v2143_v31 }
 0x346   :  { %v614_v51 = vsel %vm323_vm0, %v592_v46, 0.0 }
 0x347   :  { %v675_v53 = vsel %vm323_vm0, %v655_v52, 0.0 }
 0x349   :  { %670 = vadd.xlane.f32.xlu1 %v669_v24 }
 0x34a   :  { %600 = vadd.xlane.f32.xlu2 %v599_v27 }
 0x34b   :  { %606 = vadd.xlane.f32.xlu0 %v605_v32 }
 0x351   :  { %612 = vadd.xlane.f32.xlu1 %v611_v37 }
 0x352   :  { %667 = vadd.xlane.f32.xlu2 %v666_v40 }
 0x353   :  { %673 = vadd.xlane.f32.xlu0 %v672_v42 }
 0x359   :  { %679 = vadd.xlane.f32.xlu1 %v678_v47 }
 0x35a   :  { %609 = vadd.xlane.f32.xlu2 %v608_v48 }
 0x35b   :  { %615 = vadd.xlane.f32.xlu0 %v614_v51 }
 0x362   :  { %676 = vadd.xlane.f32.xlu2 %v675_v53  ;;  %v779_v53 = vshrl.u32 %v689_v63, 7 }
 0x364   :  { %1394 = vset.pattern.permute.xlu1 %v779_v53  ;;  %1393 = vset.pattern.permute.xlu0 %v779_v53 }
 0x37a   :  { %745 = vperm.xlu2 %1392, %v1404_v54   ;;  %v923_v54 = vadd.s32 8, %v779_v53 }
 0x382   :  { %1395 = vset.pattern.permute.xlu2 %v923_v54 }
 0x3ac   :  { %v659_v55 = vpop.xlane.xlu1 %658 }
 0x3ad   :  { %v595_v56 = vpop.xlane.xlu2 %594  ;;  %v723_v10 = vperm.slane %v659_v55, %v722_v7 }
 0x3ae   :  { %v598_v57 = vpop.xlane.xlu0 %597  ;;  %v691_v1 = vperm.slane %v595_v56, %v690_v5 }
 0x3af   :  { %v692_v31 = vperm.slane %v598_v57, %v690_v5 }
 0x3b1   :  { %v700_v18 = vsel %vm699_vm5, %v692_v31, %v691_v1 }
 0x3b4   :  { %v604_v60 = vpop.xlane.xlu1 %603 }
 0x3b5   :  { %v662_v58 = vpop.xlane.xlu2 %661  ;;  %v694_v19 = vperm.slane %v604_v60, %v690_v5 }
 0x3b6   :  { %v665_v61 = vpop.xlane.xlu0 %664  ;;  %v724_v8 = vperm.slane %v662_v58, %v722_v7 }
 0x3b7   :  { %v725_v13 = vperm.slane %v665_v61, %v722_v7 }
 0x3b8   :  { %v731_v15 = vsel %vm699_vm5, %v724_v8, %v723_v10  ;;  %v905_v10 = vld [vmem:[#allocation8 + $0x4] sm:$0xff]  }
 0x3b9   :  { %v732_v20 = vsel %vm701_vm6, %v725_v13, %v731_v15  ;;  %v913_v1 = vunpack.c.l.bf16 %v905_v10 }
 0x3bc   :  { %v671_v0 = vpop.xlane.xlu1 %670 }
 0x3bd   :  { %v601_v62 = vpop.xlane.xlu2 %600  ;;  %v727_v23 = vperm.slane %v671_v0, %v722_v7 }
 0x3be   :  { %v607_v2 = vpop.xlane.xlu0 %606  ;;  %v693_v11 = vperm.slane %v601_v62, %v690_v5 }
 0x3bf   :  { %v695_v21 = vperm.slane %v607_v2, %v690_v5 }
 0x3c0   :  { %v702_v4 = vsel %vm701_vm6, %v693_v11, %v700_v18  ;;  %v907_v18 = vld [vmem:[#allocation8 + $0x14] sm:$0xff]  }
 0x3c1   :  { %v704_v24 = vsel %vm703_vm7, %v694_v19, %v702_v4  ;;  %v770_v4 = vunpack.c.h.bf16 %v905_v10  ;;  %v912_v10 = vld [vmem:[#allocation8 + $0x3c] sm:$0xf] }
 0x3c2   :  { %v706_v30 = vsel %vm705_vm8, %v695_v21, %v704_v24 }
 0x3c4   :  { %v613_v9 = vpop.xlane.xlu1 %612 }
 0x3c5   :  { %v668_v6 = vpop.xlane.xlu2 %667  ;;  %v697_v35 = vperm.slane %v613_v9, %v690_v5 }
 0x3c6   :  { %v674_v12 = vpop.xlane.xlu0 %673  ;;  %v726_v16 = vperm.slane %v668_v6, %v722_v7  ;;  %v299_v6 = vld [vmem:[#allocation12 + $0x8] sm:$0xff] }
 0x3c7   :  { %v728_v26 = vperm.slane %v674_v12, %v722_v7 }
 0x3c8   :  { %v733_v22 = vsel %vm703_vm7, %v726_v16, %v732_v20  ;;  %v761_v16 = vld [vmem:[#allocation8] sm:$0xf] }
 0x3c9   :  { %v734_v27 = vsel %vm705_vm8, %v727_v23, %v733_v22  ;;  %v769_v19 = vunpack.c.l.bf16 %v761_v16  ;;  %v915_v22 = vunpack.c.l.bf16 %v907_v18  ;;  %v908_v23 = vld [vmem:[#allocation8 + $0x1c] sm:$0xff]  }
 0x3ca   :  { %v735_v36 = vsel %vm707_vm9, %v728_v26, %v734_v27  ;;  %v772_v27 = vunpack.c.h.bf16 %v907_v18 }
 0x3cc   :  { %v680_v28 = vpop.xlane.xlu1 %679 }
 0x3cd   :  { %v610_v17 = vpop.xlane.xlu2 %609  ;;  %v730_v37 = vperm.slane %v680_v28, %v722_v7 }
 0x3ce   :  { %v696_v25 = vperm.slane %v610_v17, %v690_v5  ;;  %v616_v32 = vpop.xlane.xlu0 %615  ;;  %v906_v17 = vld [vmem:[#allocation8 + $0xc] sm:$0xff]  }
 0x3cf   :  { %v698_v38 = vperm.slane %v616_v32, %v690_v5  ;;  %v914_v21 = vunpack.c.l.bf16 %v906_v17  ;;  %v771_v24 = vunpack.c.h.bf16 %v906_v17 }
 0x3d0   :  { %v708_v33 = vsel %vm707_vm9, %v696_v25, %v706_v30 }
 0x3d1   :  { %v710_v40 = vsel %vm709_vm10, %v697_v35, %v708_v33  ;;  %v916_v35 = vunpack.c.l.bf16 %v908_v23 }
 0x3d2   :  { %v712_v42 = vsel %vm711_vm11, %v698_v38, %v710_v40 }
 0x3d5   :  { %v677_v29 = vpop.xlane.xlu2 %676 }
 0x3d6   :  { %v729_v34 = vperm.slane %v677_v29, %v722_v7  ;;  %v909_v29 = vld [vmem:[#allocation8 + $0x24] sm:$0xf] }
 0x3d7   :  { %v917_v40 = vunpack.c.l.bf16 %v909_v29  ;;  %v767_v29 = vld [vmem:[#allocation8 + $0x30] sm:$0xf] }
 0x3d8   :  { %v736_v39 = vsel %vm709_vm10, %v729_v34, %v735_v36 }
 0x3d9   :  { %v737_v41 = vsel %vm711_vm11, %v730_v37, %v736_v39  ;;  %v773_v37 = vunpack.c.h.bf16 %v908_v23  ;;  %v766_v39 = vld [vmem:[#allocation8 + $0x28] sm:$0xff]  }
 0x3da   :  { %v740_v44 = vsel %vm739_vm12, %v712_v42, %v737_v41  ;;  %v2205_v41 = vld [vmem:[#allocation8 + $0x34] sm:$0xff]  }
 0x3dd   :  { %v746_v43 = vpop.permute.xlu2 %745 }
 0x3de   :  { %v748_v45 = vadd.f32 %v746_v43, %v740_v44 }
 0x3e0   :  { %v750_v46 = vsel %vm749_vm13, %v748_v45, -inf }
 0x3e1   :  { %751 = vmax.xlane.f32.xlu0 %v750_v46 }
 0x454   :  { %v752_v47 = vpop.xlane.xlu0 %751 }
 0x455   :  { %v753_v48 = vsub.f32 %v748_v45, %v752_v47 }
 0x457   :  { %v754_v49 = vmul.f32 1.442695, %v753_v48  ;;  %v918_v48 = vunpack.c.h.bf16 %v766_v39 }
 0x459   :  { %1446 = vpow2.f32 %v754_v49 }
 0x45f   :  { %v1447_v51 = vpop.eup %1446 }
 0x460   :  { %v756_v52 = vsel %vm749_vm13, %v1447_v51, 0.0 }
 0x461   :  { %757 = vadd.xlane.f32.xlu1 %v756_v52 }
 0x4d4   :  { %v758_v55 = vpop.xlane.xlu1 %757 }
 0x4d5   :  { %1448 = vrcp.f32 %v758_v55  ;;  %v919_v55 = vunpack.c.l.bf16 %v2205_v41 }
 0x4db   :  { %v1449_v56 = vpop.eup %1448 }
 0x4dc   :  { %v760_v57 = vmul.f32 %v1449_v56, %v1447_v51 }
 0x4de   :  { %v784_v58 = vperm.slane %v760_v57, 1  ;;  %v777_v60 = vperm.slane %v760_v57, 0  ;;  %v791_v61 = vperm.slane %v760_v57, 2  ;;  %v805_v62 = vperm.slane %v760_v57, 4 }
 0x4df   :  { %v798_v0 = vperm.slane %v760_v57, 3  ;;  %v812_v63 = vperm.slane %v760_v57, 5  ;;  %v819_v2 = vperm.slane %v760_v57, 6  ;;  %v826_v5 = vperm.slane %v760_v57, 7 }
 0x4e0   :  { %789 = vperm.xlu1 %1394, %v784_v58   ;;  %925 = vperm.xlu2 %1395, %v777_v60  }
 0x4e1   :  { %782 = vperm.xlu0 %1393, %v777_v60  }
 0x4e8   :  { %796 = vperm.xlu1 %1394, %v791_v61   ;;  %931 = vperm.xlu2 %1395, %v784_v58  }
 0x4e9   :  { %810 = vperm.xlu0 %1393, %v805_v62  }
 0x4f0   :  { %803 = vperm.xlu1 %1394, %v798_v0   ;;  %937 = vperm.xlu2 %1395, %v791_v61  }
 0x4f1   :  { %1398 = vset.pattern.permute.xlu0 %v923_v54 }
 0x4f8   :  { %1396 = vset.pattern.permute.xlu1 %v923_v54  ;;  %943 = vperm.xlu2 %1395, %v798_v0  }
 0x4f9   :  { %955 = vperm.xlu0 %1398, %v812_v63  }
 0x500   :  { %949 = vperm.xlu1 %1396, %v805_v62   ;;  %1397 = vset.pattern.permute.xlu2 %v779_v53 }
 0x508   :  { %1399 = vset.pattern.permute.xlu1 %v779_v53  ;;  %817 = vperm.xlu2 %1397, %v812_v63   ;;  %v774_v53 = vunpack.c.l.bf16 %v766_v39 }
 0x510   :  { %824 = vperm.xlu1 %1399, %v819_v2   ;;  %1400 = vset.pattern.permute.xlu2 %v923_v54 }
 0x518   :  { %831 = vperm.xlu1 %1399, %v826_v5   ;;  %961 = vperm.xlu2 %1400, %v819_v2  }
 0x520   :  { %1192 = vrot.lane.b32.xlu1 %v299_v6, %s1905_s12  ;;  %967 = vperm.xlu2 %1400, %v826_v5  }
 0x528   :  { %1213 = vrot.lane.b32.xlu1 %v2116_v59, %s1905_s12 }
 0x53a   :  { %v926_v7 = vpop.permute.xlu2 %925 }
 0x53b   :  { %v969_v15 = vmul.f32 %v926_v7, %v913_v1 }
 0x53d   :  { %v977_v20 = vsel %vm323_vm0, %v969_v15, 0.0 }
 0x53e   :  { %v978_v28 = vrot.slane %v977_v20, 4 }
 0x540   :  { %v979_v42 = vadd.f32 %v978_v28, %v977_v20 }
 0x542   :  { %v932_v8 = vpop.permute.xlu2 %931  ;;  %v980_v62 = vrot.slane %v979_v42, 2 }
 0x543   :  { %v970_v33 = vmul.f32 %v932_v8, %v914_v21 }
 0x544   :  { %v981_v20 = vadd.f32 %v980_v62, %v979_v42  ;;  %v1363_v42 = vld [vmem:[#allocation21 + $0x8] sm:$0xff] }
 0x545   :  { %v984_v45 = vsel %vm323_vm0, %v970_v33, 0.0  ;;  %1127 = vmatpush.bf16.msrb.mxu2 %v1363_v42 }
 0x546   :  { %v985_v0 = vrot.slane %v984_v45, 4 }
 0x548   :  { %v986_v15 = vadd.f32 %v985_v0, %v984_v45 }
 0x54a   :  { %v938_v9 = vpop.permute.xlu2 %937 }
 0x54b   :  { %v971_v34 = vmul.f32 %v938_v9, %v915_v22 }
 0x54d   :  { %v991_v46 = vsel %vm323_vm0, %v971_v34, 0.0 }
 0x54e   :  { %v992_v7 = vrot.slane %v991_v46, 4 }
 0x550   :  { %v993_v21 = vadd.f32 %v992_v7, %v991_v46 }
 0x552   :  { %v790_v31 = vpop.permute.xlu1 %789  ;;  %v944_v13 = vpop.permute.xlu2 %943 }
 0x553   :  { %v783_v11 = vpop.permute.xlu0 %782  ;;  %v834_v30 = vmul.f32 %v790_v31, %v770_v4  ;;  %v972_v47 = vmul.f32 %v944_v13, %v916_v35 }
 0x554   :  { %v833_v32 = vmul.f32 %v783_v11, %v769_v19  ;;  %v920_v19 = vunpack.c.l.bf16 %v912_v10 }
 0x555   :  { %v848_v43 = vsel %vm323_vm0, %v834_v30, 0.0  ;;  %v998_v63 = vsel %vm323_vm0, %v972_v47, 0.0  ;;  %v775_v47 = vunpack.c.l.bf16 %v767_v29 }
 0x556   :  { %v841_v44 = vsel %vm323_vm0, %v833_v32, 0.0  ;;  %v849_v57 = vrot.slane %v848_v43, 4  ;;  %v999_v16 = vrot.slane %v998_v63, 4 }
 0x557   :  { %v842_v58 = vrot.slane %v841_v44, 4 }
 0x558   :  { %v850_v11 = vadd.f32 %v849_v57, %v848_v43  ;;  %v1000_v30 = vadd.f32 %v999_v16, %v998_v63  ;;  %v1367_v43 = vld [vmem:[#allocation24 + $0x8] sm:$0xff] }
 0x559   :  { %1156 = vmatpush.bf16.msrb.mxu3 %v1367_v43 }
 0x55a   :  { %v797_v12 = vpop.permute.xlu1 %796 }
 0x55b   :  { %v811_v59 = vpop.permute.xlu0 %810  ;;  %v835_v36 = vmul.f32 %v797_v12, %v771_v24  ;;  %v843_v12 = vadd.f32 %v842_v58, %v841_v44  ;;  %v851_v24 = vrot.slane %v850_v11, 2 }
 0x55c   :  { %v837_v52 = vmul.f32 %v811_v59, %v773_v37  ;;  %v982_v37 = vrot.slane %v981_v20, 1 }
 0x55d   :  { %v855_v51 = vsel %vm323_vm0, %v835_v36, 0.0  ;;  %v852_v44 = vadd.f32 %v851_v24, %v850_v11 }
 0x55e   :  { %v856_v2 = vrot.slane %v855_v51, 4  ;;  %v869_v8 = vsel %vm323_vm0, %v837_v52, 0.0  ;;  %v1366_v52 = vld [vmem:[#allocation24] sm:$0xff]  ;;  %v983_v58 = vadd.f32 %v982_v37, %v981_v20  ;;  %v776_v20 = vunpack.c.h.bf16 %v2205_v41 }
 0x55f   :  { %v870_v18 = vrot.slane %v869_v8, 4  ;;  %v853_v63 = vrot.slane %v852_v44, 1  ;;  %1157 = vmatpush.bf16.msrb.mxu3 %v1366_v52 }
 0x560   :  { %v857_v17 = vadd.f32 %v856_v2, %v855_v51 }
 0x561   :  { %v871_v34 = vadd.f32 %v870_v18, %v869_v8  ;;  %v854_v18 = vadd.f32 %v853_v63, %v852_v44 }
 0x562   :  { %v804_v25 = vpop.permute.xlu1 %803  ;;  %v818_v26 = vpop.permute.xlu2 %817  ;;  %v858_v33 = vrot.slane %v857_v17, 2  ;;  %1350 = vmatmul.msk.bf16.vlgmr.msrb.gmra.mxu3 %vm323_vm0, %v2096_v14 }
 0x563   :  { %v836_v38 = vmul.f32 %v804_v25, %v772_v27  ;;  %v838_v1 = vmul.f32 %v818_v26, %v774_v53  ;;  %v844_v25 = vrot.slane %v843_v12, 2  ;;  %v987_v26 = vrot.slane %v986_v15, 2  ;;  %v1362_v53 = vld [vmem:[#allocation21] sm:$0xff] }
 0x564   :  { %1128 = vmatpush.bf16.msrb.mxu2 %v1362_v53 }
 0x565   :  { %v862_v60 = vsel %vm323_vm0, %v836_v38, 0.0  ;;  %v876_v27 = vsel %vm323_vm0, %v838_v1, 0.0  ;;  %v994_v38 = vrot.slane %v993_v21, 2  ;;  %v845_v45 = vadd.f32 %v844_v25, %v843_v12 }
 0x566   :  { %v863_v31 = vrot.slane %v862_v60, 4 }
 0x567   :  { %v846_v2 = vrot.slane %v845_v45, 1 }
 0x568   :  { %v864_v22 = vadd.f32 %v863_v31, %v862_v60  ;;  %v995_v60 = vadd.f32 %v994_v38, %v993_v21 }
 0x56a   :  { %v865_v39 = vrot.slane %v864_v22, 2 }
 0x56b   :  { %v956_v49 = vpop.permute.xlu0 %955 }
 0x56c   :  { %v974_v5 = vmul.f32 %v956_v49, %v918_v48  ;;  %v988_v48 = vadd.f32 %v987_v26, %v986_v15  ;;  %v1001_v49 = vrot.slane %v1000_v30, 2 }
 0x56e   :  { %v1012_v4 = vsel %vm323_vm0, %v974_v5, 0.0  ;;  %v989_v7 = vrot.slane %v988_v48, 1  ;;  %v1002_v8 = vadd.f32 %v1001_v49, %v1000_v30 }
 0x56f   :  { %v1013_v32 = vrot.slane %v1012_v4, 4 }
 0x570   :  { %v1003_v21 = vrot.slane %v1002_v8, 1  ;;  %v990_v24 = vadd.f32 %v989_v7, %v988_v48 }
 0x571   :  { %v1014_v51 = vadd.f32 %v1013_v32, %v1012_v4  ;;  %v847_v4 = vadd.f32 %v846_v2, %v845_v45 }
 0x572   :  { %v950_v54 = vpop.permute.xlu1 %949  ;;  %v962_v56 = vpop.permute.xlu2 %961  ;;  %v1004_v37 = vadd.f32 %v1003_v21, %v1002_v8 }
 0x573   :  { %v973_v61 = vmul.f32 %v950_v54, %v917_v40  ;;  %v975_v9 = vmul.f32 %v962_v56, %v919_v55  ;;  %v877_v40 = vrot.slane %v876_v27, 4  ;;  %v859_v54 = vadd.f32 %v858_v33, %v857_v17 }
 0x574   :  { %v872_v55 = vrot.slane %v871_v34, 2  ;;  %v1015_v31 = vrot.slane %v1014_v51, 2 }
 0x575   :  { %v1005_v6 = vsel %vm323_vm0, %v973_v61, 0.0  ;;  %v1019_v59 = vsel %vm323_vm0, %v975_v9, 0.0  ;;  %v866_v61 = vadd.f32 %v865_v39, %v864_v22  ;;  %v878_v62 = vadd.f32 %v877_v40, %v876_v27 }
 0x576   :  { %v1006_v13 = vrot.slane %v1005_v6, 4  ;;  %v1020_v35 = vrot.slane %v1019_v59, 4  ;;  %v860_v10 = vrot.slane %v859_v54, 1  ;;  %v873_v11 = vadd.f32 %v872_v55, %v871_v34 }
 0x577   :  { %v867_v15 = vrot.slane %v866_v61, 1  ;;  %v879_v16 = vrot.slane %v878_v62, 2  ;;  %v1016_v22 = vadd.f32 %v1015_v31, %v1014_v51  ;;  %v1034_v34 = vadd.f32 %v990_v24, %v854_v18 }
 0x578   :  { %v1007_v28 = vadd.f32 %v1006_v13, %v1005_v6  ;;  %v1021_v56 = vadd.f32 %v1020_v35, %v1019_v59  ;;  %v996_v13 = vrot.slane %v995_v60, 1  ;;  %v861_v25 = vadd.f32 %v860_v10, %v859_v54 }
 0x579   :  { %v874_v27 = vrot.slane %v873_v11, 1  ;;  %v868_v30 = vadd.f32 %v867_v15, %v866_v61  ;;  %v880_v32 = vadd.f32 %v879_v16, %v878_v62  ;;  %v1033_v35 = vadd.f32 %v983_v58, %v847_v4 }
 0x57a   :  { %v968_v23 = vpop.permute.xlu2 %967  ;;  %v1008_v46 = vrot.slane %v1007_v28, 2  ;;  %v1022_v12 = vrot.slane %v1021_v56, 2  ;;  %v997_v26 = vadd.f32 %v996_v13, %v995_v60  ;;  %v1017_v38 = vrot.slane %v1016_v22, 1 }
 0x57b   :  { %v976_v36 = vmul.f32 %v968_v23, %v920_v19  ;;  %v875_v42 = vadd.f32 %v874_v27, %v873_v11  ;;  %v1036_v45 = vadd.f32 %v1004_v37, %v868_v30  ;;  %v1042_v49 = vpack.c.bf16 %v1034_v34, %v1034_v34  ;;  %v1405_v34 = vld [vmem:[#allocation26] ss:$0 sm:$0xff] }
 0x57c   :  { %v1009_v5 = vadd.f32 %v1008_v46, %v1007_v28  ;;  %v1023_v28 = vadd.f32 %v1022_v12, %v1021_v56  ;;  %v1035_v40 = vadd.f32 %v997_v26, %v861_v25  ;;  %v881_v46 = vrot.slane %v880_v32, 1 }
 0x57d   :  { %v1026_v57 = vsel %vm323_vm0, %v976_v36, 0.0  ;;  %v1041_v51 = vpack.c.bf16 %v1033_v35, %v1033_v35  ;;  %v1018_v53 = vadd.f32 %v1017_v38, %v1016_v22  ;;  %v1044_v60 = vpack.c.bf16 %v1036_v45, %v1036_v45 }
 0x57e   :  { %v1027_v9 = vrot.slane %v1026_v57, 4  ;;  %v1010_v19 = vrot.slane %v1009_v5, 1  ;;  %v1024_v43 = vrot.slane %v1023_v28, 1  ;;  %v882_v61 = vadd.f32 %v881_v46, %v880_v32 }
 0x57f   :  { %v1091_v63 = vunpack.c.l.b16 %v1042_v49  ;;  %v1093_v10 = vunpack.c.l.b16 %v1044_v60 }
 0x580   :  { %v1028_v59 = vadd.f32 %v1027_v9, %v1026_v57  ;;  %v1011_v36 = vadd.f32 %v1010_v19, %v1009_v5  ;;  %v1043_v57 = vpack.c.bf16 %v1035_v40, %v1035_v40  ;;  %v1025_v58 = vadd.f32 %v1024_v43, %v1023_v28 }
 0x581   :  { %v1038_v7 = vadd.f32 %v1018_v53, %v882_v61 }
 0x582   :  { %v825_v0 = vpop.permute.xlu1 %824  ;;  %v1029_v14 = vrot.slane %v1028_v59, 2  ;;  %v1037_v52 = vadd.f32 %v1011_v36, %v875_v42  ;;  %v1092_v9 = vunpack.c.l.b16 %v1043_v57 }
 0x583   :  { %v839_v6 = vmul.f32 %v825_v0, %v775_v47  ;;  %v1046_v15 = vpack.c.bf16 %v1038_v7, %v1038_v7 }
 0x584   :  { %v1030_v54 = vadd.f32 %v1029_v14, %v1028_v59  ;;  %v1045_v2 = vpack.c.bf16 %v1037_v52, %v1037_v52 }
 0x585   :  { %v883_v1 = vsel %vm323_vm0, %v839_v6, 0.0  ;;  %v1090_v6 = vunpack.c.l.b16 %v1041_v51  ;;  %v1095_v59 = vunpack.c.l.b16 %v1046_v15 }
 0x586   :  { %v884_v17 = vrot.slane %v883_v1, 4  ;;  %v1031_v8 = vrot.slane %v1030_v54, 1  ;;  %v1094_v12 = vunpack.c.l.b16 %v1045_v2 }
 0x587   :  { %v1098_v13 = vsel %vm699_vm5, %v1091_v63, %v1090_v6 }
 0x588   :  { %v885_v23 = vadd.f32 %v884_v17, %v883_v1  ;;  %v1032_v16 = vadd.f32 %v1031_v8, %v1030_v54  ;;  %v1099_v18 = vsel %vm701_vm6, %v1092_v9, %v1098_v13 }
 0x589   :  { %v1100_v4 = vsel %vm703_vm7, %v1093_v10, %v1099_v18 }
 0x58a   :  { %v886_v29 = vrot.slane %v885_v23, 2  ;;  %v832_v33 = vpop.permute.xlu1 %831  ;;  %v1101_v22 = vsel %vm705_vm8, %v1094_v12, %v1100_v4 }
 0x58b   :  { %v840_v41 = vmul.f32 %v832_v33, %v776_v20  ;;  %v1102_v25 = vsel %vm707_vm9, %v1095_v59, %v1101_v22 }
 0x58c   :  { %v887_v39 = vadd.f32 %v886_v29, %v885_v23 }
 0x58d   :  { %v890_v44 = vsel %vm323_vm0, %v840_v41, 0.0 }
 0x58e   :  { %v888_v47 = vrot.slane %v887_v39, 1  ;;  %v891_v48 = vrot.slane %v890_v44, 4 }
 0x590   :  { %v889_v55 = vadd.f32 %v888_v47, %v887_v39  ;;  %v892_v56 = vadd.f32 %v891_v48, %v890_v44 }
 0x592   :  { %v893_v62 = vrot.slane %v892_v56, 2  ;;  %v2226_v0 = vpop.permute.xlu1 %1192  ;;  %v1039_v5 = vadd.f32 %v1025_v58, %v889_v55 }
 0x594   :  { %v894_v31 = vadd.f32 %v893_v62, %v892_v56  ;;  %v1047_v1 = vpack.c.bf16 %v1039_v5, %v1039_v5 }
 0x596   :  { %v895_v11 = vrot.slane %v894_v31, 1  ;;  %v1096_v21 = vunpack.c.l.b16 %v1047_v1 }
 0x598   :  { %v896_v17 = vadd.f32 %v895_v11, %v894_v31  ;;  %v1103_v27 = vsel %vm709_vm10, %v1096_v21, %v1102_v25 }
 0x59a   :  { %v1040_v19 = vadd.f32 %v1032_v16, %v896_v17  ;;  %v1214_v20 = vpop.permute.xlu1 %1213 }
 0x59b   :  { %1216 = vst.msk [vmem:[#allocation27] sm:$0xff] %vm323_vm0, %v1214_v20 }
 0x59c   :  { %v1048_v23 = vpack.c.bf16 %v1040_v19, %v1040_v19 }
 0x59e   :  { %v1097_v24 = vunpack.c.l.b16 %v1048_v23 }
 0x5a0   :  { %v1104_v28 = vsel %vm711_vm11, %v1097_v24, %v1103_v27 }
 0x5a1   :  { %v1105_v26 = vpack.c.b16 %v1104_v28, %v1104_v28 }
 0x5a3   :  { %1341 = vmatmul.msk.bf16.vlgmr.msrb.gmra.mxu2 %vm323_vm0, %v1105_v26 }
 0x5e5   :  { %v1159_v30 = vpop.f32.mrf.mxu3 }
 0x5ed   :  { %v1161_v32 = vpop.f32.mrf.mxu3 }
 0x626   :  { %v1130_v29 = vpop.f32.mrf.mxu2 }
 0x627   :  { %v1131_v33 = vadd.f32 %v1130_v29, %v2128_v3 }
 0x629   :  { %v1163_v35 = vadd.f32 %v1159_v30, %v1131_v33 }
 0x62b   :  { %v1168_v36 = vadd.f32 %v1405_v34, %v1163_v35 }
 0x62d   :  { %1450 = vtanh.f32 %v1168_v36  ;;  %v1351_v38 = vmul.f32 -1.442695, %v1168_v36 }
 0x62e   :  { %v1132_v41 = vpop.f32.mrf.mxu2 }
 0x62f   :  { %1452 = vpow2.f32 %v1351_v38 }
 0x633   :  { %v1451_v37 = vpop.eup %1450 }
 0x634   :  { %1197 = vrot.lane.b32.xlu0 %v1451_v37, %s1888_s0  ;;  %v1189_v58 = vmul.f32 0.0, %v1451_v37 }
 0x635   :  { %v1453_v14 = vpop.eup %1452 }
 0x636   :  { %v1172_v39 = vadd.f32 1.0, %v1453_v14 }
 0x638   :  { %1454 = vrcp.f32 %v1172_v39  ;;  %v1184_v3 = vand.u32 2147483648, %v1172_v39  ;;  %vm1178_vm15 = vweird.f32 %v1172_v39  ;;  %v1182_v46 = vand.u32 2147483647, %v1172_v39 }
 0x63a   :  { %v1185_v48 = vor.u32 1.1754944e-38, %v1184_v3  ;;  %vm1183_vm2 = vcmp.eq.f32.partialorder %v1182_v46, 8.507059e+37 }
 0x63e   :  { %v1455_v40 = vpop.eup %1454 }
 0x63f   :  { %v1174_v42 = vmul.f32 %v1455_v40, %v1172_v39  ;;  %vm1179_vm14 = vweird.f32 %v1455_v40 }
 0x640   :  { %vm1180_vm1 = vmor %vm1178_vm15, %vm1179_vm14 }
 0x641   :  { %v1175_v43 = vsub.f32 1.0, %v1174_v42 }
 0x643   :  { %v1176_v44 = vmul.f32 %v1455_v40, %v1175_v43 }
 0x645   :  { %v1177_v45 = vadd.f32 %v1455_v40, %v1176_v44 }
 0x647   :  { %v1181_v47 = vsel %vm1180_vm1, %v1455_v40, %v1177_v45 }
 0x648   :  { %v1186_v51 = vsel %vm1183_vm2, %v1185_v48, %v1181_v47 }
 0x649   :  { %v1195_v53 = vmul.f32 %v2226_v0, %v1186_v51  ;;  %v1190_v60 = vadd.f32 %v1189_v58, %v1186_v51 }
 0x6a6   :  { %v1198_v49 = vpop.permute.xlu0 %1197 }
 0x6a7   :  { %v1200_v52 = vmul.f32 %v1198_v49, %v1186_v51 }
 0x6a9   :  { %1202 = vrot.lane.b32.xlu2 %v1200_v52, %s1905_s12 }
 0x703   :  { %v1203_v54 = vpop.permute.xlu2 %1202 }
 0x704   :  { %v1205_v55 = vadd.f32 %v1203_v54, %v1195_v53 }
 0x706   :  { %1456 = vtanh.f32 %v1205_v55  ;;  %1229 = vrot.lane.b32.xlu1 %v1205_v55, %s1907_s17 }
 0x70c   :  { %v1457_v56 = vpop.eup %1456 }
 0x70d   :  { %1208 = vrot.lane.b32.xlu0 %v1457_v56, %s1888_s0  ;;  %s1909_s0 = smov [#allocation27]  }
 0x70e   :  { %s1238_s3 = sshll.u32 %s1909_s0, 4  ;;  %s1239_s3 = int_to_ptr.vmem [resolvable:$true] %s1238_s3 }
 0x715   :  { %1224 = vrot.lane.b32.xlu0 %v2106_v50, %s1907_s17 }
 0x778   :  { %v1230_v57 = vpop.permute.xlu1 %1229 }
 0x779   :  { %1233 = vst.msk [vmem:[#allocation28 + $0x8] sm:$0xff] %vm323_vm0, %v1230_v57 }
 0x77f   :  { %v1209_v61 = vpop.permute.xlu0 %1208 }
 0x780   :  { %v1211_v62 = vmul.f32 %v1209_v61, %v1190_v60 }
 0x782   :  { %1218 = vrot.lane.b32.xlu2 %v1211_v62, %s1905_s12 }
 0x787   :  { %v1225_v0 = vpop.permute.xlu0 %1224 }
 0x788   :  { %1227 = vst.msk [vmem:[#allocation28] sm:$0xff] %vm323_vm0, %v1225_v0 }
 0x789   :  { %1259 = dma.vmem_to_hbm [thread:$0]  %s1252_s22, 256, %s1254_s8, [#allocation29], %s1891_s18, %s1891_s18, %s1892_s27  }
 0x7dc   :  { %v1219_v50 = vpop.permute.xlu2 %1218 }
 0x7dd   :  { %1222 = vst.msk [vmem:[#allocation27 + $0x8] sm:$0xff] %vm323_vm0, %v1219_v50 }
 0x7de   :  { %1246 = dma.vmem_to_hbm [thread:$0]  %s1239_s3, 256, %s1241_s28, [#allocation5], %s1891_s18, %s1891_s18, %s1892_s27  }
 0x7df   :  { %1882 = dma.done.wait [#allocation5], 256  }
 0x7e0   :  { %1883 = vsyncadd [#allocation5], 4294967040 }
 0x7e1   :  { %1884 = dma.done.wait [#allocation29], 256  }
 0x7e2   :  { %1885 = vsyncadd [#allocation29], 4294967040 }
 0x7e3   :  { %1268 = vsyncpa [#allocation4], 1 }
 0x7e4   :  { %1269 = vsyncpa [#allocation7], 1 }
 0x7e5   :  { %1270 = vsyncpa [#allocation10], 1 }
 0x7e6   :  { %1271 = vsyncpa [#allocation13], 1 }
 0x7e7   :  { %1272 = vsyncpa [#allocation16], 1 }
 0x7e8   :  { %1273 = vsyncpa [#allocation19], 1 }
 0x7e9   :  { %1274 = vsyncpa [#allocation22], 1 }
 0x7ea   :  { %1275 = vsyncpa [#allocation25], 1 }
 0x7eb   :  { %1276 = vsyncpa [#allocation5], 1 }
 0x7ec   :  { %1277 = vsyncpa [#allocation29], 1 }

// kernel: tpu_custom_call.1
= control target key start
LH: loop header
LB: loop body
LE: loop exit
PB: predicated region body
PF: predicated region fallthrough
CT: control target
= control target key end

     0   :  { %s2259_s0 = inlined_call_operand.hbm [shape: f32[8,32], index: 0, kind: input, shape index: {}]   ;;  %s2260_s1 = inlined_call_operand.hbm [shape: f32[8,32], index: 1, kind: input, shape index: {}]   ;;  %s2261_s2 = inlined_call_operand.hbm [shape: bf16[8,16,32], index: 2, kind: input, shape index: {}]   ;;  %s2262_s3 = inlined_call_operand.hbm [shape: bf16[8,16,32], index: 3, kind: input, shape index: {}]   ;;  %s2263_s4 = inlined_call_operand.hbm [shape: f32[2,8,32], index: 4, kind: input, shape index: {}]   ;;  %s2264_s5 = inlined_call_operand.hbm [shape: f32[2,8,32], index: 5, kind: input, shape index: {}]   ;;  %s2265_s6 = inlined_call_operand.hbm [shape: bf16[32,128], index: 6, kind: input, shape index: {}]   ;;  %s2266_s7 = inlined_call_operand.hbm [shape: bf16[32,128], index: 7, kind: input, shape index: {}]   ;;  %s2267_s8 = inlined_call_operand.hbm [shape: bf16[32,128], index: 8, kind: input, shape index: {}]   ;;  %s2268_s9 = inlined_call_operand.hbm [shape: bf16[32,128], index: 9, kind: input, shape index: {}]   ;;  %s2269_s10 = inlined_call_operand.hbm [shape: f32[1,128], index: 10, kind: input, shape index: {}]   ;;  %s2270_s11 = inlined_call_operand.hbm [shape: bf16[32,128], index: 11, kind: input, shape index: {}]   ;;  %s2271_s12 = inlined_call_operand.hbm [shape: bf16[32,128], index: 12, kind: input, shape index: {}]   ;;  %s2272_s13 = inlined_call_operand.hbm [shape: bf16[32,128], index: 13, kind: input, shape index: {}]   ;;  %s2273_s14 = inlined_call_operand.hbm [shape: f32[1,128], index: 14, kind: input, shape index: {}]   ;;  %s2274_s15 = inlined_call_operand.vmem [shape: bf16[32,32], index: 15, kind: input, shape index: {}]   ;;  %s2275_s16 = inlined_call_operand.vmem [shape: f32[1,32], index: 16, kind: input, shape index: {}]   ;;  %s2276_s17 = inlined_call_operand.vmem [shape: f32[1,32], index: 17, kind: input, shape index: {}]   ;;  %s2277_s18 = inlined_call_operand.<no memory space> [shape: f32[1,1], index: 18, kind: input, shape index: {}]   ;;  %s2278_s19 = inlined_call_operand.hbm [shape: f32[2,8,32], index: 19, kind: output, shape index: {0}]   ;;  %s2279_s20 = inlined_call_operand.hbm [shape: f32[2,8,32], index: 20, kind: output, shape index: {1}]  }
   0x1   :  { %2280 = sst [smem:[#allocation40_spill]] %s2259_s0  ;;  %v26_v0 = vstv %s2277_s18 }
   0x2   :  { %2281 = sst [smem:[#allocation41_spill]] %s2260_s1  ;;  %27 = vst [vmem:[#allocation2] sm:$0x1] %v26_v0 }
   0x3   :  { %2282 = sst [smem:[#allocation42_spill]] %s2261_s2 }
   0x4   :  { %2283 = sst [smem:[#allocation43_spill]] %s2262_s3 }
   0x5   :  { %2284 = sst [smem:[#allocation44_spill]] %s2263_s4 }
   0x6   :  { %28 = vsyncpa [#allocation4], 0 }
   0x7   :  { %29 = vsyncpa [#allocation7], 0 }
   0x8   :  { %30 = vsyncpa [#allocation10], 0 }
   0x9   :  { %31 = vsyncpa [#allocation13], 0 }
   0xa   :  { %32 = vsyncpa [#allocation16], 0 }
   0xb   :  { %33 = vsyncpa [#allocation19], 0 }
   0xc   :  { %34 = vsyncpa [#allocation22], 0 }
   0xd   :  { %35 = vsyncpa [#allocation25], 0 }
   0xe   :  { %36 = vsyncpa [#allocation5], 0  ;;  %s2285_s2 = sld [smem:[#allocation41_spill]] }
  0x14   :  { %s54_s25 = sshll.u32 %s2285_s2, 4  ;;  %s55_s25 = int_to_ptr.hbm [resolvable:$true] %s54_s25 }
  0x15   :  { %37 = vsyncpa [#allocation29], 0  ;;  %s1886_s3 = smov [#allocation6]   ;;  %s2286_s28 = sld [smem:[#allocation43_spill]] }
  0x16   :  { %s56_s26 = sshll.u32 %s1886_s3, 4  ;;  %s1887_s29 = smov [#allocation9]   ;;  %s57_s26 = int_to_ptr.vmem [resolvable:$true] %s56_s26 }
  0x17   :  { %59 = dma.hbm_to_vmem [thread:$0]  %s55_s25, 128, %s57_s26, [#allocation7]  }
  0x18   :  { %s79_s30 = sshll.u32 %s1887_s29, 4  ;;  %s1888_s0 = smov 64   ;;  %s80_s30 = int_to_ptr.vmem [resolvable:$true] %s79_s30 }
  0x19   :  { %s1889_s21 = smov 4   ;;  %s103_s23 = sshll.u32 %s2264_s5, 4  ;;  %s104_s23 = int_to_ptr.hbm [resolvable:$true] %s103_s23 }
  0x1a   :  { %s1890_s24 = smov [#allocation12]   ;;  %s129_s26 = sshll.u32 %s2266_s7, 4  ;;  %s130_s26 = int_to_ptr.hbm [resolvable:$true] %s129_s26 }
  0x1b   :  { %s77_s4 = sshll.u32 %s2286_s28, 4  ;;  %s105_s2 = sshll.u32 %s1890_s24, 4  ;;  %s78_s4 = int_to_ptr.hbm [resolvable:$true] %s77_s4  ;;  %s106_s2 = int_to_ptr.vmem [resolvable:$true] %s105_s2 }
  0x1c   :  { %85 = dma.hbm_to_vmem [thread:$0]  %s78_s4, 1024, %s80_s30, [#allocation10], %s1888_s0, %s1888_s0, %s1889_s21  }
  0x1d   :  { %s1891_s18 = smov 128   ;;  %s1892_s27 = smov 8  }
  0x1e   :  { %111 = dma.hbm_to_vmem [thread:$0]  %s104_s23, 256, %s106_s2, [#allocation13], %s1891_s18, %s1891_s18, %s1892_s27  }
  0x1f   :  { %s1893_s28 = smov [#allocation15]   ;;  %s155_s5 = sshll.u32 %s2268_s9, 4  ;;  %s156_s5 = int_to_ptr.hbm [resolvable:$true] %s155_s5 }
  0x20   :  { %s131_s4 = sshll.u32 %s1893_s28, 4  ;;  %s179_s22 = sshll.u32 %s2270_s11, 4  ;;  %s132_s4 = int_to_ptr.vmem [resolvable:$true] %s131_s4  ;;  %s180_s22 = int_to_ptr.hbm [resolvable:$true] %s179_s22 }
  0x21   :  { %137 = dma.hbm_to_vmem [thread:$0]  %s130_s26, 256, %s132_s4, [#allocation16], %s1888_s0, %s1888_s0, %s1889_s21  }
  0x22   :  { %s1894_s24 = smov [#allocation18]   ;;  %s1895_s23 = smov [#allocation21]  }
  0x23   :  { %s157_s25 = sshll.u32 %s1894_s24, 4  ;;  %s181_s9 = sshll.u32 %s1895_s23, 4  ;;  %s158_s25 = int_to_ptr.vmem [resolvable:$true] %s157_s25  ;;  %s182_s9 = int_to_ptr.vmem [resolvable:$true] %s181_s9 }
  0x24   :  { %163 = dma.hbm_to_vmem [thread:$0]  %s156_s5, 256, %s158_s25, [#allocation19], %s1888_s0, %s1888_s0, %s1889_s21  }
  0x25   :  { %s205_s28 = sshll.u32 %s2272_s13, 4  ;;  %s2287_s4 = sld [smem:[#allocation40_spill]]  ;;  %s206_s28 = int_to_ptr.hbm [resolvable:$true] %s205_s28 }
  0x26   :  { %187 = dma.hbm_to_vmem [thread:$0]  %s180_s22, 256, %s182_s9, [#allocation22], %s1888_s0, %s1888_s0, %s1889_s21  }
  0x27   :  { %s1896_s30 = smov [#allocation24]   ;;  %s1897_s5 = smov [#allocation3]  }
  0x28   :  { %s207_s7 = sshll.u32 %s1896_s30, 4  ;;  %s45_s13 = sshll.u32 %s1897_s5, 4  ;;  %s208_s7 = int_to_ptr.vmem [resolvable:$true] %s207_s7  ;;  %s46_s13 = int_to_ptr.vmem [resolvable:$true] %s45_s13 }
  0x29   :  { %213 = dma.hbm_to_vmem [thread:$0]  %s206_s28, 256, %s208_s7, [#allocation25], %s1888_s0, %s1888_s0, %s1889_s21  }
  0x2a   :  { %s2288_s25 = sld [smem:[#allocation42_spill]]  ;;  %s1898_s11 = smov [#allocation8]  }
  0x2b   :  { %s43_s29 = sshll.u32 %s2287_s4, 4  ;;  %s2289_s2 = sld [smem:[#allocation44_spill]]  ;;  %s44_s29 = int_to_ptr.hbm [resolvable:$true] %s43_s29 }
  0x2c   :  { %48 = dma.hbm_to_vmem [thread:$0]  %s44_s29, 128, %s46_s13, [#allocation4]  }
  0x2d   :  { %s66_s26 = sshll.u32 %s1898_s11, 4  ;;  %s1899_s28 = smov [#allocation11]   ;;  %s67_s26 = int_to_ptr.vmem [resolvable:$true] %s66_s26 }
  0x2e   :  { %s92_s4 = sshll.u32 %s1899_s28, 4  ;;  %s116_s5 = sshll.u32 %s2265_s6, 4  ;;  %s93_s4 = int_to_ptr.vmem [resolvable:$true] %s92_s4  ;;  %s117_s5 = int_to_ptr.hbm [resolvable:$true] %s116_s5 }
  0x2f   :  { %s142_s1 = sshll.u32 %s2267_s8, 4  ;;  %s1900_s24 = smov [#allocation14]   ;;  %s143_s1 = int_to_ptr.hbm [resolvable:$true] %s142_s1 }
  0x30   :  { %s64_s23 = sshll.u32 %s2288_s25, 4  ;;  %s118_s25 = sshll.u32 %s1900_s24, 4  ;;  %s65_s23 = int_to_ptr.hbm [resolvable:$true] %s64_s23  ;;  %s119_s25 = int_to_ptr.vmem [resolvable:$true] %s118_s25 }
  0x31   :  { %s90_s3 = sshll.u32 %s2289_s2, 4  ;;  %s169_s2 = sshll.u32 %s2269_s10, 4  ;;  %s91_s3 = int_to_ptr.hbm [resolvable:$true] %s90_s3  ;;  %s170_s2 = int_to_ptr.hbm [resolvable:$true] %s169_s2 }
  0x32   :  { %72 = dma.hbm_to_vmem [thread:$0]  %s65_s23, 1024, %s67_s26, [#allocation7], %s1888_s0, %s1888_s0, %s1889_s21  }
  0x33   :  { %98 = dma.hbm_to_vmem [thread:$0]  %s91_s3, 256, %s93_s4, [#allocation10], %s1891_s18, %s1891_s18, %s1892_s27  }
  0x34   :  { %124 = dma.hbm_to_vmem [thread:$0]  %s117_s5, 256, %s119_s25, [#allocation13], %s1888_s0, %s1888_s0, %s1889_s21  }
  0x35   :  { %s1901_s23 = smov [#allocation17]   ;;  %s192_s11 = sshll.u32 %s2271_s12, 4  ;;  %s193_s11 = int_to_ptr.hbm [resolvable:$true] %s192_s11 }
  0x36   :  { %s144_s6 = sshll.u32 %s1901_s23, 4  ;;  %s1902_s26 = smov [#allocation20]   ;;  %s145_s6 = int_to_ptr.vmem [resolvable:$true] %s144_s6 }
  0x37   :  { %150 = dma.hbm_to_vmem [thread:$0]  %s143_s1, 256, %s145_s6, [#allocation16], %s1888_s0, %s1888_s0, %s1889_s21  }
  0x38   :  { %s171_s28 = sshll.u32 %s1902_s26, 4  ;;  %s1903_s4 = smov [#allocation23]   ;;  %s172_s28 = int_to_ptr.vmem [resolvable:$true] %s171_s28 }
  0x39   :  { %174 = dma.hbm_to_vmem [thread:$0]  %s170_s2, 16, %s172_s28, [#allocation19]  }
  0x3a   :  { %s194_s30 = sshll.u32 %s1903_s4, 4  ;;  %s219_s10 = sshll.u32 %s2273_s14, 4  ;;  %s195_s30 = int_to_ptr.vmem [resolvable:$true] %s194_s30  ;;  %s220_s10 = int_to_ptr.hbm [resolvable:$true] %s219_s10 }
  0x3b   :  { %200 = dma.hbm_to_vmem [thread:$0]  %s193_s11, 256, %s195_s30, [#allocation22], %s1888_s0, %s1888_s0, %s1889_s21  }
  0x3c   :  { %s1904_s29 = smov [#allocation26]  }
  0x3d   :  { %s221_s13 = sshll.u32 %s1904_s29, 4  ;;  %s222_s13 = int_to_ptr.vmem [resolvable:$true] %s221_s13 }
  0x3e   :  { %224 = dma.hbm_to_vmem [thread:$0]  %s220_s10, 16, %s222_s13, [#allocation25]  }
  0x3f   :  { %1866 = dma.done.wait [#allocation4], 128  }
  0x40   :  { %1867 = vsyncadd [#allocation4], 4294967168 }
  0x41   :  { %1868 = dma.done.wait [#allocation7], 1152  }
  0x42   :  { %1869 = vsyncadd [#allocation7], 4294966144 }
  0x43   :  { %1870 = dma.done.wait [#allocation10], 1280  }
  0x44   :  { %1871 = vsyncadd [#allocation10], 4294966016 }
  0x45   :  { %1872 = dma.done.wait [#allocation13], 512  }
  0x46   :  { %1873 = vsyncadd [#allocation13], 4294966784 }
  0x47   :  { %1874 = dma.done.wait [#allocation16], 512  }
  0x48   :  { %1875 = vsyncadd [#allocation16], 4294966784 }
  0x49   :  { %1876 = dma.done.wait [#allocation19], 272  }
  0x4a   :  { %1877 = vsyncadd [#allocation19], 4294967024 }
  0x4b   :  { %1878 = dma.done.wait [#allocation22], 512  }
  0x4c   :  { %1879 = vsyncadd [#allocation22], 4294966784 }
  0x4d   :  { %1880 = dma.done.wait [#allocation25], 272  }
  0x4e   :  { %1881 = vsyncadd [#allocation25], 4294967024  ;;  %v1355_v1 = vld [vmem:[#allocation15 + $0x8] sm:$0xff]  ;;  %v1353_v2 = vld [vmem:[#allocation14 + $0x8] sm:$0xff]  ;;  %vm323_vm0 = vcmask 261120   ;;  %s1905_s12 = smov 32  }
  0x4f   :  { %v1357_v3 = vld [vmem:[#allocation17 + $0x8] sm:$0xff]  ;;  %v1359_v4 = vld [vmem:[#allocation18 + $0x8] sm:$0xff]  ;;  %v1354_v5 = vld [vmem:[#allocation15] sm:$0xff]  ;;  %333 = vmatpush.bf16.msra.mxu0 %v1355_v1  ;;  %361 = vmatpush.bf16.msra.mxu1 %v1353_v2  ;;  %vm699_vm5 = vcmask 1041409   ;;  %vm701_vm6 = vcmask 1042434   ;;  %vm703_vm7 = vcmask 1043459  }
  0x50   :  { %v1352_v6 = vld [vmem:[#allocation14] sm:$0xff]  ;;  %v1358_v8 = vld [vmem:[#allocation18] sm:$0xff]  ;;  %v305_v9 = vld [vmem:[#allocation6] sm:$0xff]  ;;  %395 = vmatpush.bf16.msra.mxu2 %v1357_v3  ;;  %429 = vmatpush.bf16.msra.mxu3 %v1359_v4  ;;  %vm705_vm8 = vcmask 1044484   ;;  %vm707_vm9 = vcmask 1045509   ;;  %vm709_vm10 = vcmask 1046534  }
  0x51   :  { %v1356_v7 = vld [vmem:[#allocation17] sm:$0xff]  ;;  %v296_v10 = vld [vmem:[#allocation11 + $0x8] sm:$0xff]  ;;  %v368_v11 = vld [vmem:[#allocation3] sm:$0xff]  ;;  %v306_v13 = vpack.c.bf16 %v305_v9, %v305_v9  ;;  %vm711_vm11 = vcmask 1047559   ;;  %vm739_vm12 = vcmask 64512   ;;  %vm749_vm13 = vcmask 130048  }
  0x52   :  { %v294_v12 = vld [vmem:[#allocation11] sm:$0xff]  ;;  %v2096_v14 = vpack.c.bf16 %v296_v10, %v296_v10  ;;  %v369_v15 = vpack.c.bf16 %v368_v11, %v368_v11  ;;  %v297_v31 = vld [vmem:[#allocation12] sm:$0xff]  ;;  %v1402_v62 = vld [vmem:[%s2275_s16] ss:$0 sm:$0xff]  ;;  %s1908_s6 = smov [#allocation28]   ;;  %s1253_s8 = sshll.u32 %s2279_s20, 4  ;;  %s1254_s8 = int_to_ptr.hbm [resolvable:$true] %s1253_s8 }
  0x53   :  { %334 = vmatpush.bf16.msra.mxu0 %v1354_v5  ;;  %362 = vmatpush.bf16.msra.mxu1 %v1352_v6  ;;  %v403_v16 = vpack.c.bf16 %v294_v12, %v294_v12  ;;  %v1401_v23 = vld [vmem:[#allocation20] ss:$0 sm:$0xff]  ;;  %v1361_v52 = vld [vmem:[%s2274_s15 + $0x8] sm:$0xff]  ;;  %v1360_v54 = vld [vmem:[%s2274_s15] sm:$0xff]  ;;  %s1251_s22 = sshll.u32 %s1908_s6, 4  ;;  %s1240_s28 = sshll.u32 %s2278_s19, 4  ;;  %s1252_s22 = int_to_ptr.vmem [resolvable:$true] %s1251_s22  ;;  %s1241_s28 = int_to_ptr.hbm [resolvable:$true] %s1240_s28 }
  0x54   :  { %396 = vmatpush.bf16.msra.mxu2 %v1356_v7  ;;  %430 = vmatpush.bf16.msra.mxu3 %v1358_v8  ;;  %v1365_v53 = vld [vmem:[#allocation23 + $0x8] sm:$0xff]  ;;  %v1364_v55 = vld [vmem:[#allocation23] sm:$0xff]  ;;  %v617_v63 = vld [vmem:[#allocation9 + $0x4] sm:$0xff]  }
  0x55   :  { %v534_v0 = vld [vmem:[#allocation9] sm:$0xf]  ;;  %v2126_v1 = vld [vmem:[#allocation9 + $0x18] sm:$0xff]   ;;  %v625_v5 = vunpack.c.l.bf16 %v617_v63  ;;  %v618_v7 = vld [vmem:[#allocation9 + $0xc] sm:$0xff]   ;;  %v543_v9 = vunpack.c.h.bf16 %v617_v63 }
  0x56   :  { %1286 = vmatmul.msk.bf16.vlgmr.msra.gmra.mxu0 %vm323_vm0, %v306_v13  ;;  %1295 = vmatmul.msk.bf16.vlgmr.msra.gmra.mxu1 %vm323_vm0, %v2096_v14  ;;  %v542_v6 = vunpack.c.l.bf16 %v534_v0  ;;  %v619_v8 = vld [vmem:[#allocation9 + $0x14] sm:$0xf]  ;;  %v545_v10 = vunpack.c.l.bf16 %v2126_v1 }
  0x57   :  { %1304 = vmatmul.msk.bf16.vlgmr.msra.gmra.mxu2 %vm323_vm0, %v369_v15  ;;  %1313 = vmatmul.msk.bf16.vlgmr.msra.gmra.mxu3 %vm323_vm0, %v403_v16  ;;  %v626_v16 = vunpack.c.l.bf16 %v618_v7 }
  0x58   :  { %518 = vmatpush.bf16.msrb.mxu0 %v1361_v52  ;;  %1075 = vmatpush.bf16.msrb.mxu1 %v1365_v53 }
  0x5c   :  { %519 = vmatpush.bf16.msrb.mxu0 %v1360_v54  ;;  %1076 = vmatpush.bf16.msrb.mxu1 %v1364_v55  ;;  %v622_v55 = vld [vmem:[#allocation9 + $0x2c] sm:$0xf] }
  0x5d   :  { %v630_v0 = vunpack.c.l.bf16 %v622_v55 }
  0xd3   :  { %v336_v17 = vpop.f32.mrf.mxu0  ;;  %v364_v18 = vpop.f32.mrf.mxu1 }
  0xd4   :  { %v365_v19 = vadd.f32 %v364_v18, %v336_v17  ;;  %v627_v17 = vunpack.c.l.bf16 %v619_v8 }
  0xda   :  { %v398_v20 = vpop.f32.mrf.mxu2  ;;  %v432_v21 = vpop.f32.mrf.mxu3 }
  0xdb   :  { %v402_v22 = vadd.f32 %v398_v20, %v365_v19  ;;  %v338_v24 = vpop.f32.mrf.mxu0  ;;  %v366_v25 = vpop.f32.mrf.mxu1 }
  0xdd   :  { %v436_v26 = vadd.f32 %v432_v21, %v402_v22 }
  0xdf   :  { %v441_v27 = vadd.f32 %v1401_v23, %v436_v26 }
  0xe1   :  { %1406 = vtanh.f32 %v441_v27  ;;  %v1314_v32 = vmul.f32 -1.442695, %v441_v27 }
  0xe2   :  { %v400_v28 = vpop.f32.mrf.mxu2  ;;  %v434_v29 = vpop.f32.mrf.mxu3 }
  0xe3   :  { %1408 = vpow2.f32 %v1314_v32  ;;  %v2138_v29 = vld [vmem:[#allocation9 + $0x24] sm:$0xff]   ;;  %v538_v32 = vld [vmem:[#allocation9 + $0x20] sm:$0xf] }
  0xe7   :  { %v1407_v30 = vpop.eup %1406 }
  0xe8   :  { %470 = vrot.lane.b32.xlu0 %v1407_v30, %s1888_s0  ;;  %v462_v56 = vmul.f32 0.0, %v1407_v30 }
  0xe9   :  { %v1409_v33 = vpop.eup %1408 }
  0xea   :  { %v445_v34 = vadd.f32 1.0, %v1409_v33 }
  0xec   :  { %1410 = vrcp.f32 %v445_v34  ;;  %v457_v40 = vand.u32 2147483648, %v445_v34  ;;  %vm451_vm2 = vweird.f32 %v445_v34  ;;  %v455_v41 = vand.u32 2147483647, %v445_v34 }
  0xee   :  { %v458_v43 = vor.u32 1.1754944e-38, %v457_v40  ;;  %vm456_vm4 = vcmp.eq.f32.partialorder %v455_v41, 8.507059e+37 }
  0xf0   :  { %465 = vrot.lane.b32.xlu0 %v297_v31, %s1905_s12  ;;  %v2143_v31 = vld [vmem:[%s2276_s17] ss:$0 sm:$0xff]  ;;  %s1907_s17 = smov 96  }
  0xf2   :  { %v1411_v35 = vpop.eup %1410 }
  0xf3   :  { %v447_v36 = vmul.f32 %v1411_v35, %v445_v34  ;;  %vm452_vm1 = vweird.f32 %v1411_v35  ;;  %v629_v34 = vunpack.c.l.bf16 %v2138_v29 }
  0xf4   :  { %vm453_vm3 = vmor %vm451_vm2, %vm452_vm1 }
  0xf5   :  { %v448_v37 = vsub.f32 1.0, %v447_v36 }
  0xf7   :  { %v449_v38 = vmul.f32 %v1411_v35, %v448_v37  ;;  %v546_v37 = vunpack.c.l.bf16 %v538_v32 }
  0xf9   :  { %v450_v39 = vadd.f32 %v1411_v35, %v449_v38 }
  0xfb   :  { %v454_v42 = vsel %vm453_vm3, %v1411_v35, %v450_v39  ;;  %v544_v35 = vunpack.c.h.bf16 %v618_v7 }
  0xfc   :  { %v459_v45 = vsel %vm456_vm4, %v458_v43, %v454_v42 }
  0xfd   :  { %v463_v57 = vadd.f32 %v462_v56, %v459_v45 }
 0x15a   :  { %v471_v44 = vpop.permute.xlu0 %470 }
 0x15b   :  { %v473_v46 = vmul.f32 %v471_v44, %v459_v45 }
 0x15d   :  { %475 = vrot.lane.b32.xlu1 %v473_v46, %s1905_s12 }
 0x162   :  { %v466_v47 = vpop.permute.xlu0 %465 }
 0x163   :  { %v468_v48 = vmul.f32 %v466_v47, %v459_v45  ;;  %v2151_v47 = vld [vmem:[#allocation9 + $0x30] sm:$0xff]  }
 0x1cf   :  { %v476_v49 = vpop.permute.xlu1 %475 }
 0x1d0   :  { %v2106_v50 = vadd.f32 %v476_v49, %v468_v48 }
 0x1d2   :  { %1412 = vtanh.f32 %v2106_v50 }
 0x1d8   :  { %v1413_v51 = vpop.eup %1412 }
 0x1d9   :  { %481 = vrot.lane.b32.xlu1 %v1413_v51, %s1888_s0 }
 0x24b   :  { %v482_v58 = vpop.permute.xlu1 %481 }
 0x24c   :  { %v2116_v59 = vmul.f32 %v482_v58, %v463_v57  ;;  %v548_v57 = vunpack.c.l.bf16 %v2151_v47 }
 0x24e   :  { %v485_v60 = vpack.c.bf16 %v2116_v59, %v2116_v59 }
 0x250   :  { %495 = vrot.lane.b32.xlu2 %v485_v60, %s1905_s12 }
 0x2aa   :  { %v496_v61 = vpop.permute.xlu2 %495 }
 0x2ab   :  { %1323 = vmatmul.msk.bf16.vlgmr.msrb.gmra.mxu0 %vm323_vm0, %v496_v61  ;;  %1332 = vmatmul.msk.bf16.vlgmr.msrb.gmra.mxu1 %vm323_vm0, %v496_v61  ;;  %v628_v61 = vunpack.c.h.bf16 %v2126_v1 }
 0x328   :  { %v521_v2 = vpop.f32.mrf.mxu0  ;;  %v2128_v3 = vpop.f32.mrf.mxu1 }
 0x329   :  { %v2130_v4 = vadd.f32 %v1402_v62, %v521_v2 }
 0x32b   :  { %v550_v11 = vperm.slane %v2130_v4, 0  ;;  %v526_v12 = vrot.slane %v2130_v4, 1  ;;  %v528_v13 = vrot.slane %v2130_v4, 3  ;;  %v527_v15 = vrot.slane %v2130_v4, 2 }
 0x32c   :  { %v529_v25 = vrot.slane %v2130_v4, 4  ;;  %v531_v43 = vrot.slane %v2130_v4, 6  ;;  %v530_v52 = vrot.slane %v2130_v4, 5 }
 0x32d   :  { %v633_v18 = vadd.f32 %v625_v5, %v550_v11  ;;  %v566_v19 = vadd.f32 %v550_v11, %v542_v6  ;;  %v551_v20 = vperm.slane %v526_v12, 0  ;;  %v553_v21 = vperm.slane %v528_v13, 0 }
 0x32e   :  { %v552_v22 = vperm.slane %v527_v15, 0  ;;  %v554_v33 = vperm.slane %v529_v25, 0  ;;  %v556_v58 = vperm.slane %v531_v43, 0  ;;  %v555_v63 = vperm.slane %v530_v52, 0 }
 0x32f   :  { %1414 = vtanh.f32 %v633_v18  ;;  %v567_v23 = vadd.f32 %v551_v20, %v543_v9  ;;  %v569_v24 = vadd.f32 %v553_v21, %v545_v10  ;;  %v634_v28 = vadd.f32 %v626_v16, %v551_v20  ;;  %v624_v9 = vld [vmem:[#allocation9 + $0x38] sm:$0xff]  }
 0x330   :  { %v523_v26 = vpop.f32.mrf.mxu0  ;;  %v1080_v27 = vpop.f32.mrf.mxu1  ;;  %1416 = vtanh.f32 %v566_v19  ;;  %v635_v30 = vadd.f32 %v627_v17, %v552_v22  ;;  %v637_v42 = vadd.f32 %v629_v34, %v554_v33  ;;  %v568_v46 = vadd.f32 %v552_v22, %v544_v35 }
 0x331   :  { %1418 = vtanh.f32 %v567_v23  ;;  %v570_v51 = vadd.f32 %v554_v33, %v546_v37  ;;  %v572_v5 = vadd.f32 %v556_v58, %v548_v57  ;;  %v532_v6 = vrot.slane %v2130_v4, 7 }
 0x332   :  { %1420 = vtanh.f32 %v569_v24  ;;  %v636_v8 = vadd.f32 %v628_v61, %v553_v21  ;;  %v638_v12 = vadd.f32 %v630_v0, %v555_v63  ;;  %v632_v17 = vunpack.c.h.bf16 %v624_v9 }
 0x333   :  { %1422 = vtanh.f32 %v634_v28  ;;  %v557_v16 = vperm.slane %v532_v6, 0  ;;  %v1906_v18 = vmov 0   ;;  %v547_v19 = vunpack.c.h.bf16 %v2138_v29 }
 0x334   :  { %1424 = vtanh.f32 %v635_v30  ;;  %1392 = vset.pattern.permute.xlu2 %v1906_v18  ;;  %v549_v21 = vunpack.c.l.bf16 %v624_v9  ;;  %v631_v34 = vunpack.c.h.bf16 %v2151_v47 }
 0x335   :  { %v1415_v36 = vpop.eup %1414  ;;  %1426 = vtanh.f32 %v637_v42  ;;  %v640_v23 = vadd.f32 %v632_v17, %v557_v16  ;;  %v571_v25 = vadd.f32 %v555_v63, %v547_v19  ;;  %v689_v63 = vlaneseq }
 0x336   :  { %v1417_v38 = vpop.eup %1416  ;;  %v649_v39 = vmul.f32 %v1415_v36, %v2143_v31  ;;  %1428 = vtanh.f32 %v568_v46  ;;  %v573_v28 = vadd.f32 %v557_v16, %v549_v21 }
 0x337   :  { %v1419_v40 = vpop.eup %1418  ;;  %v585_v41 = vmul.f32 %v1417_v38, %v2143_v31  ;;  %1430 = vtanh.f32 %v570_v51  ;;  %v639_v38 = vadd.f32 %v631_v34, %v556_v58 }
 0x338   :  { %v657_v44 = vsel %vm323_vm0, %v649_v39, 0.0  ;;  %v586_v45 = vmul.f32 %v1419_v40, %v2143_v31  ;;  %v1421_v48 = vpop.eup %1420  ;;  %1432 = vtanh.f32 %v572_v5  ;;  %v690_v5 = vand.u32 127, %v689_v63 }
 0x339   :  { %658 = vadd.xlane.f32.xlu1 %v657_v44  ;;  %v593_v49 = vsel %vm323_vm0, %v585_v41, 0.0  ;;  %v1423_v53 = vpop.eup %1422  ;;  %v588_v60 = vmul.f32 %v1421_v48, %v2143_v31  ;;  %1434 = vtanh.f32 %v636_v8 }
 0x33a   :  { %594 = vadd.xlane.f32.xlu2 %v593_v49  ;;  %v596_v54 = vsel %vm323_vm0, %v586_v45, 0.0  ;;  %v1425_v56 = vpop.eup %1424  ;;  %v650_v62 = vmul.f32 %v1423_v53, %v2143_v31  ;;  %1436 = vtanh.f32 %v638_v12 }
 0x33b   :  { %597 = vadd.xlane.f32.xlu0 %v596_v54  ;;  %v651_v2 = vmul.f32 %v1425_v56, %v2143_v31  ;;  %v602_v7 = vsel %vm323_vm0, %v588_v60, 0.0  ;;  %v1427_v10 = vpop.eup %1426  ;;  %1438 = vtanh.f32 %v640_v23  ;;  %v1404_v54 = vld [vmem:[#allocation2] ss:$0 sm:$0xff] }
 0x33c   :  { %v660_v11 = vsel %vm323_vm0, %v650_v62, 0.0  ;;  %v1429_v1 = vpop.eup %1428  ;;  %v653_v4 = vmul.f32 %v1427_v10, %v2143_v31  ;;  %1440 = vtanh.f32 %v571_v25 }
 0x33d   :  { %v663_v13 = vsel %vm323_vm0, %v651_v2, 0.0  ;;  %v1431_v15 = vpop.eup %1430  ;;  %v587_v20 = vmul.f32 %v1429_v1, %v2143_v31  ;;  %1442 = vtanh.f32 %v573_v28 }
 0x33e   :  { %v589_v22 = vmul.f32 %v1431_v15, %v2143_v31  ;;  %v669_v24 = vsel %vm323_vm0, %v653_v4, 0.0  ;;  %v1433_v26 = vpop.eup %1432  ;;  %1444 = vtanh.f32 %v639_v38 }
 0x33f   :  { %v599_v27 = vsel %vm323_vm0, %v587_v20, 0.0  ;;  %v1435_v30 = vpop.eup %1434  ;;  %v591_v33 = vmul.f32 %v1433_v26, %v2143_v31 }
 0x340   :  { %v605_v32 = vsel %vm323_vm0, %v589_v22, 0.0  ;;  %v1437_v29 = vpop.eup %1436  ;;  %v652_v35 = vmul.f32 %v1435_v30, %v2143_v31 }
 0x341   :  { %603 = vadd.xlane.f32.xlu1 %v602_v7  ;;  %v654_v36 = vmul.f32 %v1437_v29, %v2143_v31  ;;  %v611_v37 = vsel %vm323_vm0, %v591_v33, 0.0  ;;  %v1439_v39 = vpop.eup %1438  ;;  %v722_v7 = vadd.s32 4294967288, %v690_v5 }
 0x342   :  { %661 = vadd.xlane.f32.xlu2 %v660_v11  ;;  %v666_v40 = vsel %vm323_vm0, %v652_v35, 0.0  ;;  %v1441_v41 = vpop.eup %1440  ;;  %v656_v44 = vmul.f32 %v1439_v39, %v2143_v31 }
 0x343   :  { %664 = vadd.xlane.f32.xlu0 %v663_v13  ;;  %v672_v42 = vsel %vm323_vm0, %v654_v36, 0.0  ;;  %v1443_v43 = vpop.eup %1442  ;;  %v590_v45 = vmul.f32 %v1441_v41, %v2143_v31 }
 0x344   :  { %v592_v46 = vmul.f32 %v1443_v43, %v2143_v31  ;;  %v678_v47 = vsel %vm323_vm0, %v656_v44, 0.0  ;;  %v1445_v49 = vpop.eup %1444 }
 0x345   :  { %v608_v48 = vsel %vm323_vm0, %v590_v45, 0.0  ;;  %v655_v52 = vmul.f32 %v1445_v49, %v2143_v31 }
 0x346   :  { %v614_v51 = vsel %vm323_vm0, %v592_v46, 0.0 }
 0x347   :  { %v675_v53 = vsel %vm323_vm0, %v655_v52, 0.0 }
 0x349   :  { %670 = vadd.xlane.f32.xlu1 %v669_v24 }
 0x34a   :  { %600 = vadd.xlane.f32.xlu2 %v599_v27 }
 0x34b   :  { %606 = vadd.xlane.f32.xlu0 %v605_v32 }
 0x351   :  { %612 = vadd.xlane.f32.xlu1 %v611_v37 }
 0x352   :  { %667 = vadd.xlane.f32.xlu2 %v666_v40 }
 0x353   :  { %673 = vadd.xlane.f32.xlu0 %v672_v42 }
 0x359   :  { %679 = vadd.xlane.f32.xlu1 %v678_v47 }
 0x35a   :  { %609 = vadd.xlane.f32.xlu2 %v608_v48 }
 0x35b   :  { %615 = vadd.xlane.f32.xlu0 %v614_v51 }
 0x362   :  { %676 = vadd.xlane.f32.xlu2 %v675_v53  ;;  %v779_v53 = vshrl.u32 %v689_v63, 7 }
 0x364   :  { %1394 = vset.pattern.permute.xlu1 %v779_v53  ;;  %1393 = vset.pattern.permute.xlu0 %v779_v53 }
 0x37a   :  { %745 = vperm.xlu2 %1392, %v1404_v54   ;;  %v923_v54 = vadd.s32 8, %v779_v53 }
 0x382   :  { %1395 = vset.pattern.permute.xlu2 %v923_v54 }
 0x3ac   :  { %v659_v55 = vpop.xlane.xlu1 %658 }
 0x3ad   :  { %v595_v56 = vpop.xlane.xlu2 %594  ;;  %v723_v10 = vperm.slane %v659_v55, %v722_v7 }
 0x3ae   :  { %v598_v57 = vpop.xlane.xlu0 %597  ;;  %v691_v1 = vperm.slane %v595_v56, %v690_v5 }
 0x3af   :  { %v692_v31 = vperm.slane %v598_v57, %v690_v5 }
 0x3b1   :  { %v700_v18 = vsel %vm699_vm5, %v692_v31, %v691_v1 }
 0x3b4   :  { %v604_v60 = vpop.xlane.xlu1 %603 }
 0x3b5   :  { %v662_v58 = vpop.xlane.xlu2 %661  ;;  %v694_v19 = vperm.slane %v604_v60, %v690_v5 }
 0x3b6   :  { %v665_v61 = vpop.xlane.xlu0 %664  ;;  %v724_v8 = vperm.slane %v662_v58, %v722_v7 }
 0x3b7   :  { %v725_v13 = vperm.slane %v665_v61, %v722_v7 }
 0x3b8   :  { %v731_v15 = vsel %vm699_vm5, %v724_v8, %v723_v10  ;;  %v905_v10 = vld [vmem:[#allocation8 + $0x4] sm:$0xff]  }
 0x3b9   :  { %v732_v20 = vsel %vm701_vm6, %v725_v13, %v731_v15  ;;  %v913_v1 = vunpack.c.l.bf16 %v905_v10 }
 0x3bc   :  { %v671_v0 = vpop.xlane.xlu1 %670 }
 0x3bd   :  { %v601_v62 = vpop.xlane.xlu2 %600  ;;  %v727_v23 = vperm.slane %v671_v0, %v722_v7 }
 0x3be   :  { %v607_v2 = vpop.xlane.xlu0 %606  ;;  %v693_v11 = vperm.slane %v601_v62, %v690_v5 }
 0x3bf   :  { %v695_v21 = vperm.slane %v607_v2, %v690_v5 }
 0x3c0   :  { %v702_v4 = vsel %vm701_vm6, %v693_v11, %v700_v18  ;;  %v907_v18 = vld [vmem:[#allocation8 + $0x14] sm:$0xff]  }
 0x3c1   :  { %v704_v24 = vsel %vm703_vm7, %v694_v19, %v702_v4  ;;  %v770_v4 = vunpack.c.h.bf16 %v905_v10  ;;  %v912_v10 = vld [vmem:[#allocation8 + $0x3c] sm:$0xf] }
 0x3c2   :  { %v706_v30 = vsel %vm705_vm8, %v695_v21, %v704_v24 }
 0x3c4   :  { %v613_v9 = vpop.xlane.xlu1 %612 }
 0x3c5   :  { %v668_v6 = vpop.xlane.xlu2 %667  ;;  %v697_v35 = vperm.slane %v613_v9, %v690_v5 }
 0x3c6   :  { %v674_v12 = vpop.xlane.xlu0 %673  ;;  %v726_v16 = vperm.slane %v668_v6, %v722_v7  ;;  %v299_v6 = vld [vmem:[#allocation12 + $0x8] sm:$0xff] }
 0x3c7   :  { %v728_v26 = vperm.slane %v674_v12, %v722_v7 }
 0x3c8   :  { %v733_v22 = vsel %vm703_vm7, %v726_v16, %v732_v20  ;;  %v761_v16 = vld [vmem:[#allocation8] sm:$0xf] }
 0x3c9   :  { %v734_v27 = vsel %vm705_vm8, %v727_v23, %v733_v22  ;;  %v769_v19 = vunpack.c.l.bf16 %v761_v16  ;;  %v915_v22 = vunpack.c.l.bf16 %v907_v18  ;;  %v908_v23 = vld [vmem:[#allocation8 + $0x1c] sm:$0xff]  }
 0x3ca   :  { %v735_v36 = vsel %vm707_vm9, %v728_v26, %v734_v27  ;;  %v772_v27 = vunpack.c.h.bf16 %v907_v18 }
 0x3cc   :  { %v680_v28 = vpop.xlane.xlu1 %679 }
 0x3cd   :  { %v610_v17 = vpop.xlane.xlu2 %609  ;;  %v730_v37 = vperm.slane %v680_v28, %v722_v7 }
 0x3ce   :  { %v696_v25 = vperm.slane %v610_v17, %v690_v5  ;;  %v616_v32 = vpop.xlane.xlu0 %615  ;;  %v906_v17 = vld [vmem:[#allocation8 + $0xc] sm:$0xff]  }
 0x3cf   :  { %v698_v38 = vperm.slane %v616_v32, %v690_v5  ;;  %v914_v21 = vunpack.c.l.bf16 %v906_v17  ;;  %v771_v24 = vunpack.c.h.bf16 %v906_v17 }
 0x3d0   :  { %v708_v33 = vsel %vm707_vm9, %v696_v25, %v706_v30 }
 0x3d1   :  { %v710_v40 = vsel %vm709_vm10, %v697_v35, %v708_v33  ;;  %v916_v35 = vunpack.c.l.bf16 %v908_v23 }
 0x3d2   :  { %v712_v42 = vsel %vm711_vm11, %v698_v38, %v710_v40 }
 0x3d5   :  { %v677_v29 = vpop.xlane.xlu2 %676 }
 0x3d6   :  { %v729_v34 = vperm.slane %v677_v29, %v722_v7  ;;  %v909_v29 = vld [vmem:[#allocation8 + $0x24] sm:$0xf] }
 0x3d7   :  { %v917_v40 = vunpack.c.l.bf16 %v909_v29  ;;  %v767_v29 = vld [vmem:[#allocation8 + $0x30] sm:$0xf] }
 0x3d8   :  { %v736_v39 = vsel %vm709_vm10, %v729_v34, %v735_v36 }
 0x3d9   :  { %v737_v41 = vsel %vm711_vm11, %v730_v37, %v736_v39  ;;  %v773_v37 = vunpack.c.h.bf16 %v908_v23  ;;  %v766_v39 = vld [vmem:[#allocation8 + $0x28] sm:$0xff]  }
 0x3da   :  { %v740_v44 = vsel %vm739_vm12, %v712_v42, %v737_v41  ;;  %v2205_v41 = vld [vmem:[#allocation8 + $0x34] sm:$0xff]  }
 0x3dd   :  { %v746_v43 = vpop.permute.xlu2 %745 }
 0x3de   :  { %v748_v45 = vadd.f32 %v746_v43, %v740_v44 }
 0x3e0   :  { %v750_v46 = vsel %vm749_vm13, %v748_v45, -inf }
 0x3e1   :  { %751 = vmax.xlane.f32.xlu0 %v750_v46 }
 0x454   :  { %v752_v47 = vpop.xlane.xlu0 %751 }
 0x455   :  { %v753_v48 = vsub.f32 %v748_v45, %v752_v47 }
 0x457   :  { %v754_v49 = vmul.f32 1.442695, %v753_v48  ;;  %v918_v48 = vunpack.c.h.bf16 %v766_v39 }
 0x459   :  { %1446 = vpow2.f32 %v754_v49 }
 0x45f   :  { %v1447_v51 = vpop.eup %1446 }
 0x460   :  { %v756_v52 = vsel %vm749_vm13, %v1447_v51, 0.0 }
 0x461   :  { %757 = vadd.xlane.f32.xlu1 %v756_v52 }
 0x4d4   :  { %v758_v55 = vpop.xlane.xlu1 %757 }
 0x4d5   :  { %1448 = vrcp.f32 %v758_v55  ;;  %v919_v55 = vunpack.c.l.bf16 %v2205_v41 }
 0x4db   :  { %v1449_v56 = vpop.eup %1448 }
 0x4dc   :  { %v760_v57 = vmul.f32 %v1449_v56, %v1447_v51 }
 0x4de   :  { %v784_v58 = vperm.slane %v760_v57, 1  ;;  %v777_v60 = vperm.slane %v760_v57, 0  ;;  %v791_v61 = vperm.slane %v760_v57, 2  ;;  %v805_v62 = vperm.slane %v760_v57, 4 }
 0x4df   :  { %v798_v0 = vperm.slane %v760_v57, 3  ;;  %v812_v63 = vperm.slane %v760_v57, 5  ;;  %v819_v2 = vperm.slane %v760_v57, 6  ;;  %v826_v5 = vperm.slane %v760_v57, 7 }
 0x4e0   :  { %789 = vperm.xlu1 %1394, %v784_v58   ;;  %925 = vperm.xlu2 %1395, %v777_v60  }
 0x4e1   :  { %782 = vperm.xlu0 %1393, %v777_v60  }
 0x4e8   :  { %796 = vperm.xlu1 %1394, %v791_v61   ;;  %931 = vperm.xlu2 %1395, %v784_v58  }
 0x4e9   :  { %810 = vperm.xlu0 %1393, %v805_v62  }
 0x4f0   :  { %803 = vperm.xlu1 %1394, %v798_v0   ;;  %937 = vperm.xlu2 %1395, %v791_v61  }
 0x4f1   :  { %1398 = vset.pattern.permute.xlu0 %v923_v54 }
 0x4f8   :  { %1396 = vset.pattern.permute.xlu1 %v923_v54  ;;  %943 = vperm.xlu2 %1395, %v798_v0  }
 0x4f9   :  { %955 = vperm.xlu0 %1398, %v812_v63  }
 0x500   :  { %949 = vperm.xlu1 %1396, %v805_v62   ;;  %1397 = vset.pattern.permute.xlu2 %v779_v53 }
 0x508   :  { %1399 = vset.pattern.permute.xlu1 %v779_v53  ;;  %817 = vperm.xlu2 %1397, %v812_v63   ;;  %v774_v53 = vunpack.c.l.bf16 %v766_v39 }
 0x510   :  { %824 = vperm.xlu1 %1399, %v819_v2   ;;  %1400 = vset.pattern.permute.xlu2 %v923_v54 }
 0x518   :  { %831 = vperm.xlu1 %1399, %v826_v5   ;;  %961 = vperm.xlu2 %1400, %v819_v2  }
 0x520   :  { %1192 = vrot.lane.b32.xlu1 %v299_v6, %s1905_s12  ;;  %967 = vperm.xlu2 %1400, %v826_v5  }
 0x528   :  { %1213 = vrot.lane.b32.xlu1 %v2116_v59, %s1905_s12 }
 0x53a   :  { %v926_v7 = vpop.permute.xlu2 %925 }
 0x53b   :  { %v969_v15 = vmul.f32 %v926_v7, %v913_v1 }
 0x53d   :  { %v977_v20 = vsel %vm323_vm0, %v969_v15, 0.0 }
 0x53e   :  { %v978_v28 = vrot.slane %v977_v20, 4 }
 0x540   :  { %v979_v42 = vadd.f32 %v978_v28, %v977_v20 }
 0x542   :  { %v932_v8 = vpop.permute.xlu2 %931  ;;  %v980_v62 = vrot.slane %v979_v42, 2 }
 0x543   :  { %v970_v33 = vmul.f32 %v932_v8, %v914_v21 }
 0x544   :  { %v981_v20 = vadd.f32 %v980_v62, %v979_v42  ;;  %v1363_v42 = vld [vmem:[#allocation21 + $0x8] sm:$0xff] }
 0x545   :  { %v984_v45 = vsel %vm323_vm0, %v970_v33, 0.0  ;;  %1127 = vmatpush.bf16.msrb.mxu2 %v1363_v42 }
 0x546   :  { %v985_v0 = vrot.slane %v984_v45, 4 }
 0x548   :  { %v986_v15 = vadd.f32 %v985_v0, %v984_v45 }
 0x54a   :  { %v938_v9 = vpop.permute.xlu2 %937 }
 0x54b   :  { %v971_v34 = vmul.f32 %v938_v9, %v915_v22 }
 0x54d   :  { %v991_v46 = vsel %vm323_vm0, %v971_v34, 0.0 }
 0x54e   :  { %v992_v7 = vrot.slane %v991_v46, 4 }
 0x550   :  { %v993_v21 = vadd.f32 %v992_v7, %v991_v46 }
 0x552   :  { %v790_v31 = vpop.permute.xlu1 %789  ;;  %v944_v13 = vpop.permute.xlu2 %943 }
 0x553   :  { %v783_v11 = vpop.permute.xlu0 %782  ;;  %v834_v30 = vmul.f32 %v790_v31, %v770_v4  ;;  %v972_v47 = vmul.f32 %v944_v13, %v916_v35 }
 0x554   :  { %v833_v32 = vmul.f32 %v783_v11, %v769_v19  ;;  %v920_v19 = vunpack.c.l.bf16 %v912_v10 }
 0x555   :  { %v848_v43 = vsel %vm323_vm0, %v834_v30, 0.0  ;;  %v998_v63 = vsel %vm323_vm0, %v972_v47, 0.0  ;;  %v775_v47 = vunpack.c.l.bf16 %v767_v29 }
 0x556   :  { %v841_v44 = vsel %vm323_vm0, %v833_v32, 0.0  ;;  %v849_v57 = vrot.slane %v848_v43, 4  ;;  %v999_v16 = vrot.slane %v998_v63, 4 }
 0x557   :  { %v842_v58 = vrot.slane %v841_v44, 4 }
 0x558   :  { %v850_v11 = vadd.f32 %v849_v57, %v848_v43  ;;  %v1000_v30 = vadd.f32 %v999_v16, %v998_v63  ;;  %v1367_v43 = vld [vmem:[#allocation24 + $0x8] sm:$0xff] }
 0x559   :  { %1156 = vmatpush.bf16.msrb.mxu3 %v1367_v43 }
 0x55a   :  { %v797_v12 = vpop.permute.xlu1 %796 }
 0x55b   :  { %v811_v59 = vpop.permute.xlu0 %810  ;;  %v835_v36 = vmul.f32 %v797_v12, %v771_v24  ;;  %v843_v12 = vadd.f32 %v842_v58, %v841_v44  ;;  %v851_v24 = vrot.slane %v850_v11, 2 }
 0x55c   :  { %v837_v52 = vmul.f32 %v811_v59, %v773_v37  ;;  %v982_v37 = vrot.slane %v981_v20, 1 }
 0x55d   :  { %v855_v51 = vsel %vm323_vm0, %v835_v36, 0.0  ;;  %v852_v44 = vadd.f32 %v851_v24, %v850_v11 }
 0x55e   :  { %v856_v2 = vrot.slane %v855_v51, 4  ;;  %v869_v8 = vsel %vm323_vm0, %v837_v52, 0.0  ;;  %v1366_v52 = vld [vmem:[#allocation24] sm:$0xff]  ;;  %v983_v58 = vadd.f32 %v982_v37, %v981_v20  ;;  %v776_v20 = vunpack.c.h.bf16 %v2205_v41 }
 0x55f   :  { %v870_v18 = vrot.slane %v869_v8, 4  ;;  %v853_v63 = vrot.slane %v852_v44, 1  ;;  %1157 = vmatpush.bf16.msrb.mxu3 %v1366_v52 }
 0x560   :  { %v857_v17 = vadd.f32 %v856_v2, %v855_v51 }
 0x561   :  { %v871_v34 = vadd.f32 %v870_v18, %v869_v8  ;;  %v854_v18 = vadd.f32 %v853_v63, %v852_v44 }
 0x562   :  { %v804_v25 = vpop.permute.xlu1 %803  ;;  %v818_v26 = vpop.permute.xlu2 %817  ;;  %v858_v33 = vrot.slane %v857_v17, 2  ;;  %1350 = vmatmul.msk.bf16.vlgmr.msrb.gmra.mxu3 %vm323_vm0, %v2096_v14 }
 0x563   :  { %v836_v38 = vmul.f32 %v804_v25, %v772_v27  ;;  %v838_v1 = vmul.f32 %v818_v26, %v774_v53  ;;  %v844_v25 = vrot.slane %v843_v12, 2  ;;  %v987_v26 = vrot.slane %v986_v15, 2  ;;  %v1362_v53 = vld [vmem:[#allocation21] sm:$0xff] }
 0x564   :  { %1128 = vmatpush.bf16.msrb.mxu2 %v1362_v53 }
 0x565   :  { %v862_v60 = vsel %vm323_vm0, %v836_v38, 0.0  ;;  %v876_v27 = vsel %vm323_vm0, %v838_v1, 0.0  ;;  %v994_v38 = vrot.slane %v993_v21, 2  ;;  %v845_v45 = vadd.f32 %v844_v25, %v843_v12 }
 0x566   :  { %v863_v31 = vrot.slane %v862_v60, 4 }
 0x567   :  { %v846_v2 = vrot.slane %v845_v45, 1 }
 0x568   :  { %v864_v22 = vadd.f32 %v863_v31, %v862_v60  ;;  %v995_v60 = vadd.f32 %v994_v38, %v993_v21 }
 0x56a   :  { %v865_v39 = vrot.slane %v864_v22, 2 }
 0x56b   :  { %v956_v49 = vpop.permute.xlu0 %955 }
 0x56c   :  { %v974_v5 = vmul.f32 %v956_v49, %v918_v48  ;;  %v988_v48 = vadd.f32 %v987_v26, %v986_v15  ;;  %v1001_v49 = vrot.slane %v1000_v30, 2 }
 0x56e   :  { %v1012_v4 = vsel %vm323_vm0, %v974_v5, 0.0  ;;  %v989_v7 = vrot.slane %v988_v48, 1  ;;  %v1002_v8 = vadd.f32 %v1001_v49, %v1000_v30 }
 0x56f   :  { %v1013_v32 = vrot.slane %v1012_v4, 4 }
 0x570   :  { %v1003_v21 = vrot.slane %v1002_v8, 1  ;;  %v990_v24 = vadd.f32 %v989_v7, %v988_v48 }
 0x571   :  { %v1014_v51 = vadd.f32 %v1013_v32, %v1012_v4  ;;  %v847_v4 = vadd.f32 %v846_v2, %v845_v45 }
 0x572   :  { %v950_v54 = vpop.permute.xlu1 %949  ;;  %v962_v56 = vpop.permute.xlu2 %961  ;;  %v1004_v37 = vadd.f32 %v1003_v21, %v1002_v8 }
 0x573   :  { %v973_v61 = vmul.f32 %v950_v54, %v917_v40  ;;  %v975_v9 = vmul.f32 %v962_v56, %v919_v55  ;;  %v877_v40 = vrot.slane %v876_v27, 4  ;;  %v859_v54 = vadd.f32 %v858_v33, %v857_v17 }
 0x574   :  { %v872_v55 = vrot.slane %v871_v34, 2  ;;  %v1015_v31 = vrot.slane %v1014_v51, 2 }
 0x575   :  { %v1005_v6 = vsel %vm323_vm0, %v973_v61, 0.0  ;;  %v1019_v59 = vsel %vm323_vm0, %v975_v9, 0.0  ;;  %v866_v61 = vadd.f32 %v865_v39, %v864_v22  ;;  %v878_v62 = vadd.f32 %v877_v40, %v876_v27 }
 0x576   :  { %v1006_v13 = vrot.slane %v1005_v6, 4  ;;  %v1020_v35 = vrot.slane %v1019_v59, 4  ;;  %v860_v10 = vrot.slane %v859_v54, 1  ;;  %v873_v11 = vadd.f32 %v872_v55, %v871_v34 }
 0x577   :  { %v867_v15 = vrot.slane %v866_v61, 1  ;;  %v879_v16 = vrot.slane %v878_v62, 2  ;;  %v1016_v22 = vadd.f32 %v1015_v31, %v1014_v51  ;;  %v1034_v34 = vadd.f32 %v990_v24, %v854_v18 }
 0x578   :  { %v1007_v28 = vadd.f32 %v1006_v13, %v1005_v6  ;;  %v1021_v56 = vadd.f32 %v1020_v35, %v1019_v59  ;;  %v996_v13 = vrot.slane %v995_v60, 1  ;;  %v861_v25 = vadd.f32 %v860_v10, %v859_v54 }
 0x579   :  { %v874_v27 = vrot.slane %v873_v11, 1  ;;  %v868_v30 = vadd.f32 %v867_v15, %v866_v61  ;;  %v880_v32 = vadd.f32 %v879_v16, %v878_v62  ;;  %v1033_v35 = vadd.f32 %v983_v58, %v847_v4 }
 0x57a   :  { %v968_v23 = vpop.permute.xlu2 %967  ;;  %v1008_v46 = vrot.slane %v1007_v28, 2  ;;  %v1022_v12 = vrot.slane %v1021_v56, 2  ;;  %v997_v26 = vadd.f32 %v996_v13, %v995_v60  ;;  %v1017_v38 = vrot.slane %v1016_v22, 1 }
 0x57b   :  { %v976_v36 = vmul.f32 %v968_v23, %v920_v19  ;;  %v875_v42 = vadd.f32 %v874_v27, %v873_v11  ;;  %v1036_v45 = vadd.f32 %v1004_v37, %v868_v30  ;;  %v1042_v49 = vpack.c.bf16 %v1034_v34, %v1034_v34  ;;  %v1405_v34 = vld [vmem:[#allocation26] ss:$0 sm:$0xff] }
 0x57c   :  { %v1009_v5 = vadd.f32 %v1008_v46, %v1007_v28  ;;  %v1023_v28 = vadd.f32 %v1022_v12, %v1021_v56  ;;  %v1035_v40 = vadd.f32 %v997_v26, %v861_v25  ;;  %v881_v46 = vrot.slane %v880_v32, 1 }
 0x57d   :  { %v1026_v57 = vsel %vm323_vm0, %v976_v36, 0.0  ;;  %v1041_v51 = vpack.c.bf16 %v1033_v35, %v1033_v35  ;;  %v1018_v53 = vadd.f32 %v1017_v38, %v1016_v22  ;;  %v1044_v60 = vpack.c.bf16 %v1036_v45, %v1036_v45 }
 0x57e   :  { %v1027_v9 = vrot.slane %v1026_v57, 4  ;;  %v1010_v19 = vrot.slane %v1009_v5, 1  ;;  %v1024_v43 = vrot.slane %v1023_v28, 1  ;;  %v882_v61 = vadd.f32 %v881_v46, %v880_v32 }
 0x57f   :  { %v1091_v63 = vunpack.c.l.b16 %v1042_v49  ;;  %v1093_v10 = vunpack.c.l.b16 %v1044_v60 }
 0x580   :  { %v1028_v59 = vadd.f32 %v1027_v9, %v1026_v57  ;;  %v1011_v36 = vadd.f32 %v1010_v19, %v1009_v5  ;;  %v1043_v57 = vpack.c.bf16 %v1035_v40, %v1035_v40  ;;  %v1025_v58 = vadd.f32 %v1024_v43, %v1023_v28 }
 0x581   :  { %v1038_v7 = vadd.f32 %v1018_v53, %v882_v61 }
 0x582   :  { %v825_v0 = vpop.permute.xlu1 %824  ;;  %v1029_v14 = vrot.slane %v1028_v59, 2  ;;  %v1037_v52 = vadd.f32 %v1011_v36, %v875_v42  ;;  %v1092_v9 = vunpack.c.l.b16 %v1043_v57 }
 0x583   :  { %v839_v6 = vmul.f32 %v825_v0, %v775_v47  ;;  %v1046_v15 = vpack.c.bf16 %v1038_v7, %v1038_v7 }
 0x584   :  { %v1030_v54 = vadd.f32 %v1029_v14, %v1028_v59  ;;  %v1045_v2 = vpack.c.bf16 %v1037_v52, %v1037_v52 }
 0x585   :  { %v883_v1 = vsel %vm323_vm0, %v839_v6, 0.0  ;;  %v1090_v6 = vunpack.c.l.b16 %v1041_v51  ;;  %v1095_v59 = vunpack.c.l.b16 %v1046_v15 }
 0x586   :  { %v884_v17 = vrot.slane %v883_v1, 4  ;;  %v1031_v8 = vrot.slane %v1030_v54, 1  ;;  %v1094_v12 = vunpack.c.l.b16 %v1045_v2 }
 0x587   :  { %v1098_v13 = vsel %vm699_vm5, %v1091_v63, %v1090_v6 }
 0x588   :  { %v885_v23 = vadd.f32 %v884_v17, %v883_v1  ;;  %v1032_v16 = vadd.f32 %v1031_v8, %v1030_v54  ;;  %v1099_v18 = vsel %vm701_vm6, %v1092_v9, %v1098_v13 }
 0x589   :  { %v1100_v4 = vsel %vm703_vm7, %v1093_v10, %v1099_v18 }
 0x58a   :  { %v886_v29 = vrot.slane %v885_v23, 2  ;;  %v832_v33 = vpop.permute.xlu1 %831  ;;  %v1101_v22 = vsel %vm705_vm8, %v1094_v12, %v1100_v4 }
 0x58b   :  { %v840_v41 = vmul.f32 %v832_v33, %v776_v20  ;;  %v1102_v25 = vsel %vm707_vm9, %v1095_v59, %v1101_v22 }
 0x58c   :  { %v887_v39 = vadd.f32 %v886_v29, %v885_v23 }
 0x58d   :  { %v890_v44 = vsel %vm323_vm0, %v840_v41, 0.0 }
 0x58e   :  { %v888_v47 = vrot.slane %v887_v39, 1  ;;  %v891_v48 = vrot.slane %v890_v44, 4 }
 0x590   :  { %v889_v55 = vadd.f32 %v888_v47, %v887_v39  ;;  %v892_v56 = vadd.f32 %v891_v48, %v890_v44 }
 0x592   :  { %v893_v62 = vrot.slane %v892_v56, 2  ;;  %v2226_v0 = vpop.permute.xlu1 %1192  ;;  %v1039_v5 = vadd.f32 %v1025_v58, %v889_v55 }
 0x594   :  { %v894_v31 = vadd.f32 %v893_v62, %v892_v56  ;;  %v1047_v1 = vpack.c.bf16 %v1039_v5, %v1039_v5 }
 0x596   :  { %v895_v11 = vrot.slane %v894_v31, 1  ;;  %v1096_v21 = vunpack.c.l.b16 %v1047_v1 }
 0x598   :  { %v896_v17 = vadd.f32 %v895_v11, %v894_v31  ;;  %v1103_v27 = vsel %vm709_vm10, %v1096_v21, %v1102_v25 }
 0x59a   :  { %v1040_v19 = vadd.f32 %v1032_v16, %v896_v17  ;;  %v1214_v20 = vpop.permute.xlu1 %1213 }
 0x59b   :  { %1216 = vst.msk [vmem:[#allocation27] sm:$0xff] %vm323_vm0, %v1214_v20 }
 0x59c   :  { %v1048_v23 = vpack.c.bf16 %v1040_v19, %v1040_v19 }
 0x59e   :  { %v1097_v24 = vunpack.c.l.b16 %v1048_v23 }
 0x5a0   :  { %v1104_v28 = vsel %vm711_vm11, %v1097_v24, %v1103_v27 }
 0x5a1   :  { %v1105_v26 = vpack.c.b16 %v1104_v28, %v1104_v28 }
 0x5a3   :  { %1341 = vmatmul.msk.bf16.vlgmr.msrb.gmra.mxu2 %vm323_vm0, %v1105_v26 }
 0x5e5   :  { %v1159_v30 = vpop.f32.mrf.mxu3 }
 0x5ed   :  { %v1161_v32 = vpop.f32.mrf.mxu3 }
 0x626   :  { %v1130_v29 = vpop.f32.mrf.mxu2 }
 0x627   :  { %v1131_v33 = vadd.f32 %v1130_v29, %v2128_v3 }
 0x629   :  { %v1163_v35 = vadd.f32 %v1159_v30, %v1131_v33 }
 0x62b   :  { %v1168_v36 = vadd.f32 %v1405_v34, %v1163_v35 }
 0x62d   :  { %1450 = vtanh.f32 %v1168_v36  ;;  %v1351_v38 = vmul.f32 -1.442695, %v1168_v36 }
 0x62e   :  { %v1132_v41 = vpop.f32.mrf.mxu2 }
 0x62f   :  { %1452 = vpow2.f32 %v1351_v38 }
 0x633   :  { %v1451_v37 = vpop.eup %1450 }
 0x634   :  { %1197 = vrot.lane.b32.xlu0 %v1451_v37, %s1888_s0  ;;  %v1189_v58 = vmul.f32 0.0, %v1451_v37 }
 0x635   :  { %v1453_v14 = vpop.eup %1452 }
 0x636   :  { %v1172_v39 = vadd.f32 1.0, %v1453_v14 }
 0x638   :  { %1454 = vrcp.f32 %v1172_v39  ;;  %v1184_v3 = vand.u32 2147483648, %v1172_v39  ;;  %vm1178_vm15 = vweird.f32 %v1172_v39  ;;  %v1182_v46 = vand.u32 2147483647, %v1172_v39 }
 0x63a   :  { %v1185_v48 = vor.u32 1.1754944e-38, %v1184_v3  ;;  %vm1183_vm2 = vcmp.eq.f32.partialorder %v1182_v46, 8.507059e+37 }
 0x63e   :  { %v1455_v40 = vpop.eup %1454 }
 0x63f   :  { %v1174_v42 = vmul.f32 %v1455_v40, %v1172_v39  ;;  %vm1179_vm14 = vweird.f32 %v1455_v40 }
 0x640   :  { %vm1180_vm1 = vmor %vm1178_vm15, %vm1179_vm14 }
 0x641   :  { %v1175_v43 = vsub.f32 1.0, %v1174_v42 }
 0x643   :  { %v1176_v44 = vmul.f32 %v1455_v40, %v1175_v43 }
 0x645   :  { %v1177_v45 = vadd.f32 %v1455_v40, %v1176_v44 }
 0x647   :  { %v1181_v47 = vsel %vm1180_vm1, %v1455_v40, %v1177_v45 }
 0x648   :  { %v1186_v51 = vsel %vm1183_vm2, %v1185_v48, %v1181_v47 }
 0x649   :  { %v1195_v53 = vmul.f32 %v2226_v0, %v1186_v51  ;;  %v1190_v60 = vadd.f32 %v1189_v58, %v1186_v51 }
 0x6a6   :  { %v1198_v49 = vpop.permute.xlu0 %1197 }
 0x6a7   :  { %v1200_v52 = vmul.f32 %v1198_v49, %v1186_v51 }
 0x6a9   :  { %1202 = vrot.lane.b32.xlu2 %v1200_v52, %s1905_s12 }
 0x703   :  { %v1203_v54 = vpop.permute.xlu2 %1202 }
 0x704   :  { %v1205_v55 = vadd.f32 %v1203_v54, %v1195_v53 }
 0x706   :  { %1456 = vtanh.f32 %v1205_v55  ;;  %1229 = vrot.lane.b32.xlu1 %v1205_v55, %s1907_s17 }
 0x70c   :  { %v1457_v56 = vpop.eup %1456 }
 0x70d   :  { %1208 = vrot.lane.b32.xlu0 %v1457_v56, %s1888_s0  ;;  %s1909_s0 = smov [#allocation27]  }
 0x70e   :  { %s1238_s3 = sshll.u32 %s1909_s0, 4  ;;  %s1239_s3 = int_to_ptr.vmem [resolvable:$true] %s1238_s3 }
 0x715   :  { %1224 = vrot.lane.b32.xlu0 %v2106_v50, %s1907_s17 }
 0x778   :  { %v1230_v57 = vpop.permute.xlu1 %1229 }
 0x779   :  { %1233 = vst.msk [vmem:[#allocation28 + $0x8] sm:$0xff] %vm323_vm0, %v1230_v57 }
 0x77f   :  { %v1209_v61 = vpop.permute.xlu0 %1208 }
 0x780   :  { %v1211_v62 = vmul.f32 %v1209_v61, %v1190_v60 }
 0x782   :  { %1218 = vrot.lane.b32.xlu2 %v1211_v62, %s1905_s12 }
 0x787   :  { %v1225_v0 = vpop.permute.xlu0 %1224 }
 0x788   :  { %1227 = vst.msk [vmem:[#allocation28] sm:$0xff] %vm323_vm0, %v1225_v0 }
 0x789   :  { %1259 = dma.vmem_to_hbm [thread:$0]  %s1252_s22, 256, %s1254_s8, [#allocation29], %s1891_s18, %s1891_s18, %s1892_s27  }
 0x7dc   :  { %v1219_v50 = vpop.permute.xlu2 %1218 }
 0x7dd   :  { %1222 = vst.msk [vmem:[#allocation27 + $0x8] sm:$0xff] %vm323_vm0, %v1219_v50 }
 0x7de   :  { %1246 = dma.vmem_to_hbm [thread:$0]  %s1239_s3, 256, %s1241_s28, [#allocation5], %s1891_s18, %s1891_s18, %s1892_s27  }
 0x7df   :  { %1882 = dma.done.wait [#allocation5], 256  }
 0x7e0   :  { %1883 = vsyncadd [#allocation5], 4294967040 }
 0x7e1   :  { %1884 = dma.done.wait [#allocation29], 256  }
 0x7e2   :  { %1885 = vsyncadd [#allocation29], 4294967040 }
 0x7e3   :  { %1268 = vsyncpa [#allocation4], 1 }
 0x7e4   :  { %1269 = vsyncpa [#allocation7], 1 }
 0x7e5   :  { %1270 = vsyncpa [#allocation10], 1 }
 0x7e6   :  { %1271 = vsyncpa [#allocation13], 1 }
 0x7e7   :  { %1272 = vsyncpa [#allocation16], 1 }
 0x7e8   :  { %1273 = vsyncpa [#allocation19], 1 }
 0x7e9   :  { %1274 = vsyncpa [#allocation22], 1 }
 0x7ea   :  { %1275 = vsyncpa [#allocation25], 1 }
 0x7eb   :  { %1276 = vsyncpa [#allocation5], 1 }
 0x7ec   :  { %1277 = vsyncpa [#allocation29], 1 }

</bundles_post_ra>
